<compile_context>
chip_gen: v5e
topology: v5e:2x2
jax: 0.10.0
libtpu: 0.0.40
codegen_flags: <defaults>
</compile_context>

<pallas_src>
import functools

import jax
import jax.numpy as jnp
from jax.experimental import pallas as pl
from jax.experimental.pallas import tpu as pltpu


DILATIONS = (1, 2, 3, 4)   # d1..d4 of the reference ASPP


def _round_up(x, m):
    return (x + m - 1) // m * m


def _aspp_kernel(x_ref, w_ref, b_ref, o_ref, *, tile_h, W, Wp8, P, dilations):
    """Fused 4-branch dilated 3x3 conv + folded-BN bias + ReLU (one row tile).

    x_ref: (1, Hp_in, Wp8, C_in)      bf16 zero-padded NHWC image (resident)
    w_ref: (nb*9, C_in, C_out)        bf16 BN-folded tap weights (ky*3+kx)
    b_ref: (nb, 1, C_out)             f32 BN-folded biases
    o_ref: (1, nb, tile_h, W, C_out)  output row tile, per-branch slabs
    """
    C_in = x_ref.shape[-1]
    C_out = w_ref.shape[-1]
    L = tile_h * Wp8
    t = pl.program_id(1)
    row0 = t * tile_h                      # first padded row of this tile

    for b, d in enumerate(dilations):      # static unroll: 4 branches
        # One f32 accumulator per tap COLUMN (kx); the kx==1 accumulator is
        # initialized with the folded-BN bias (fused epilogue).
        accs = [
            jnp.zeros((L, C_out), jnp.float32),
            jnp.broadcast_to(b_ref[b], (L, C_out)),
            jnp.zeros((L, C_out), jnp.float32),
        ]
        for ky in range(3):                # static unroll: 3 tap rows
            # Row shift = leading-axis slice of the resident image: free.
            lhs = x_ref[0, pl.ds(row0 + P + (ky - 1) * d, tile_h), :, :]
            lhs = lhs.reshape(L, C_in)     # Wp8 % 8 == 0 -> layout-free merge
            for kx in range(3):            # 3 matmuls share this LHS
                accs[kx] = accs[kx] + jnp.dot(
                    lhs, w_ref[b * 9 + ky * 3 + kx],
                    preferred_element_type=jnp.float32)
        # Column shift: one W-wide slice per kx; halo columns are discarded
        # only here (never copied/shifted on the C_in-wide input side).
        y = None
        for kx in range(3):
            a3 = accs[kx].reshape(tile_h, Wp8, C_out)
            c0 = P + (kx - 1) * d          # static, in [P - d, P + d] >= 0
            part = a3[:, c0:c0 + W, :]
            y = part if y is None else y + part
        o_ref[0, b] = jnp.maximum(y, 0.0).astype(o_ref.dtype)


def aspp_pallas(x_nchw, params, *, dilations=DILATIONS, eps=1e-5, tile_h=8,
                compute_dtype=jnp.bfloat16, out_dtype=jnp.float32):
    """ASPP forward.  x_nchw: (N, C_in, H, W) f32.  Returns (N, C_in, H, W)."""
    N, C_in, H, W = x_nchw.shape
    C_out = params[0][0].shape[0]
    nb = len(params)
    P = max(dilations)

    tile_h = max(1, min(tile_h, H))
    Hpad = _round_up(H, tile_h)            # output rows padded to tile multiple
    n_tiles = Hpad // tile_h
    Wp8 = _round_up(W + 2 * P, 8)          # padded width, multiple of 8
    Hp_in = Hpad + 2 * P

    # Layout change + halo pad + bf16 cast at the module boundary (a real
    # pipeline would keep features channels-last / bf16 throughout).
    x_nhwc = jnp.transpose(x_nchw, (0, 2, 3, 1))
    x_pad = jnp.pad(x_nhwc, ((0, 0), (P, Hp_in - H - P),
                             (P, Wp8 - W - P), (0, 0)))
    x_pad = x_pad.astype(compute_dtype)

    # Fold BatchNorm (inference) into conv weight/bias; tap-major layout.
    w_taps, b_all = [], []
    for (cw, cb, gamma, beta, mean, var) in params:
        scale = gamma / jnp.sqrt(var + eps)                    # (C_out,)
        shift = beta - mean * scale
        wf = cw * scale[:, None, None, None]                   # (C_out,C_in,3,3)
        bf = cb * scale + shift                                # (C_out,)
        w_taps.append(jnp.transpose(wf, (2, 3, 1, 0)).reshape(9, C_in, C_out))
        b_all.append(bf)
    w_all = jnp.concatenate(w_taps, axis=0).astype(compute_dtype)
    b_cat = jnp.stack(b_all, axis=0).reshape(nb, 1, C_out).astype(jnp.float32)

    kernel = functools.partial(_aspp_kernel, tile_h=tile_h, W=W, Wp8=Wp8, P=P,
                               dilations=dilations)

    out5 = pl.pallas_call(
        kernel,
        out_shape=jax.ShapeDtypeStruct((N, nb, Hpad, W, C_out), out_dtype),
        grid_spec=pltpu.PrefetchScalarGridSpec(
            num_scalar_prefetch=0,
            grid=(N, n_tiles),                                 # image x row-tile
            in_specs=[
                # whole padded image, resident across the row-tile axis
                pl.BlockSpec((1, Hp_in, Wp8, C_in), lambda n, t: (n, 0, 0, 0)),
                # grid-invariant weights / biases
                pl.BlockSpec((nb * 9, C_in, C_out), lambda n, t: (0, 0, 0)),
                pl.BlockSpec((nb, 1, C_out), lambda n, t: (0, 0, 0)),
            ],
            out_specs=pl.BlockSpec((1, nb, tile_h, W, C_out),
                                   lambda n, t: (n, 0, t, 0, 0)),
        ),
        compiler_params=pltpu.CompilerParams(
            dimension_semantics=("parallel", "parallel"),      # megacore-friendly
            vmem_limit_bytes=48 * 1024 * 1024,                 # fits v7x 64 MiB
        ),
    )(x_pad, w_all, b_cat)

    out5 = out5[:, :, :H]                                      # drop row padding
    # (N, nb, H, W, C_out) -> (N, nb, C_out, H, W) -> NCHW (branch-major cat).
    return jnp.transpose(out5, (0, 1, 4, 2, 3)).reshape(N, nb * C_out, H, W)


def aspp_reference(x_nchw, params, *, dilations=DILATIONS, eps=1e-5):
    """Plain-JAX f32 reference: dilated 3x3 conv as 9 shifted einsums + BN + ReLU."""
    N, C_in, H, W = x_nchw.shape
    outs = []
    for (cw, cb, gamma, beta, mean, var), d in zip(params, dilations):
        xp = jnp.pad(x_nchw, ((0, 0), (0, 0), (d, d), (d, d)))
        C_out = cw.shape[0]
        acc = jnp.zeros((N, C_out, H, W), jnp.float32)
        for ky in range(3):
            for kx in range(3):
                patch = xp[:, :, ky * d:ky * d + H, kx * d:kx * d + W]
                acc = acc + jnp.einsum('nchw,oc->nohw', patch, cw[:, :, ky, kx])
        y = acc + cb[None, :, None, None]
        scale = gamma / jnp.sqrt(var + eps)
        shift = beta - mean * scale
        y = y * scale[None, :, None, None] + shift[None, :, None, None]
        outs.append(jnp.maximum(y, 0.0))
    return jnp.concatenate(outs, axis=1)


def init_params(key, in_ch, reduction=4):
    """Deterministic params matching Conv2d(in_ch, in_ch//reduction, 3) + BN."""
    C_out = in_ch // reduction
    keys = jax.random.split(key, 6 * len(DILATIONS))
    bound = float(1.0 / (in_ch * 9) ** 0.5)
    params = []
    for b in range(len(DILATIONS)):
        kw, kb, kg, kbe, km, kv = keys[6 * b:6 * b + 6]
        cw = jax.random.uniform(kw, (C_out, in_ch, 3, 3), jnp.float32,
                                -bound, bound)
        cb = jax.random.uniform(kb, (C_out,), jnp.float32, -bound, bound)
        gamma = jax.random.uniform(kg, (C_out,), jnp.float32, 0.5, 1.5)
        beta = jax.random.uniform(kbe, (C_out,), jnp.float32, -0.5, 0.5)
        mean = jax.random.uniform(km, (C_out,), jnp.float32, -0.5, 0.5)
        var = jax.random.uniform(kv, (C_out,), jnp.float32, 0.5, 1.5)
        params.append((cw, cb, gamma, beta, mean, var))
    return params


if __name__ == "__main__":
    key = jax.random.PRNGKey(0)
    key_x, key_p = jax.random.split(key)

    # Small layer_4-like feature map: batch=2, channels=32 (reduction 4 ->
    # 8 per branch, 32 after concat), spatial 16x16.
    N, C, H, W = 2, 32, 16, 16
    x = jax.random.normal(key_x, (N, C, H, W), jnp.float32)
    params = init_params(key_p, in_ch=C, reduction=4)

    out = jax.block_until_ready(aspp_pallas(x, params))
    ref = jax.block_until_ready(aspp_reference(x, params))

    assert out.shape == (N, C, H, W), out.shape
    max_err = float(jnp.max(jnp.abs(out - ref)))
    # bf16 operands / f32 accumulation vs f32 reference.
    assert max_err < 6e-2, max_err
    print("KERNEL_OK")
</pallas_src>

<mosaic_0001>
module attributes {stable_mosaic.version = 11 : i64} {
  func.func @_aspp_kernel(%arg0: i32, %arg1: i32, %arg2: memref<1x24x24x32xbf16, #tpu.memory_space<vmem>>, %arg3: memref<36x32x8xbf16, #tpu.memory_space<vmem>>, %arg4: memref<4x1x8xf32, #tpu.memory_space<vmem>>, %arg5: memref<1x4x8x16x8xf32, #tpu.memory_space<vmem>>) attributes {dimension_semantics = [#tpu.dimension_semantics<parallel>, #tpu.dimension_semantics<parallel>], iteration_bounds = array<i64: 2, 2>, scalar_prefetch = 0 : i64, scratch_operands = 0 : i64, tpu.core_type = #tpu.core_type<tc>, window_params = [{transform_indices = @transform_0, window_bounds = array<i64: 1, 24, 24, 32>}, {pipeline_mode = #tpu.pipeline_mode<synchronous>, transform_indices = @transform_1, window_bounds = array<i64: 36, 32, 8>}, {pipeline_mode = #tpu.pipeline_mode<synchronous>, transform_indices = @transform_2, window_bounds = array<i64: 4, 1, 8>}, {transform_indices = @transform_3, window_bounds = array<i64: 1, 4, 8, 16, 8>}]} {
    %c8_i32 = arith.constant 8 : i32
    %0 = arith.muli %arg1, %c8_i32 : i32
    %cst = arith.constant 0.000000e+00 : f32
    %1 = vector.broadcast %cst : f32 to vector<192x8xf32>
    %c0 = arith.constant 0 : index
    %c0_0 = arith.constant 0 : index
    %c0_1 = arith.constant 0 : index
    %2 = vector.load %arg4[%c0, %c0_0, %c0_1] : memref<4x1x8xf32, #tpu.memory_space<vmem>>, vector<1x1x8xf32>
    %3 = vector.shape_cast %2 : vector<1x1x8xf32> to vector<1x8xf32>
    %4 = vector.shape_cast %3 : vector<1x8xf32> to vector<1x8xf32>
    %5 = vector.broadcast %4 : vector<1x8xf32> to vector<192x8xf32>
    %cst_2 = arith.constant 0.000000e+00 : f32
    %6 = vector.broadcast %cst_2 : f32 to vector<192x8xf32>
    %c4_i32 = arith.constant 4 : i32
    %7 = arith.addi %0, %c4_i32 : i32
    %c-1_i32 = arith.constant -1 : i32
    %8 = arith.addi %7, %c-1_i32 : i32
    %c0_3 = arith.constant 0 : index
    %9 = arith.index_cast %8 : i32 to index
    %c0_4 = arith.constant 0 : index
    %c0_5 = arith.constant 0 : index
    %10 = vector.load %arg2[%c0_3, %9, %c0_4, %c0_5] : memref<1x24x24x32xbf16, #tpu.memory_space<vmem>>, vector<1x8x24x32xbf16>
    %11 = vector.shape_cast %10 : vector<1x8x24x32xbf16> to vector<8x24x32xbf16>
    %12 = vector.shape_cast %11 : vector<8x24x32xbf16> to vector<192x32xbf16>
    %c0_6 = arith.constant 0 : index
    %c0_7 = arith.constant 0 : index
    %c0_8 = arith.constant 0 : index
    %13 = vector.load %arg3[%c0_6, %c0_7, %c0_8] : memref<36x32x8xbf16, #tpu.memory_space<vmem>>, vector<1x32x8xbf16>
    %14 = vector.shape_cast %13 : vector<1x32x8xbf16> to vector<32x8xbf16>
    %cst_9 = arith.constant dense<0.000000e+00> : vector<192x8xf32>
    %15 = tpu.matmul %12, %14, %cst_9 {dimension_numbers = #tpu.dot_dimension_numbers<[1], [0], [0], [1], [0, 0, 1, 1], [], []>} : vector<192x32xbf16>, vector<32x8xbf16>, vector<192x8xf32> -> vector<192x8xf32>
    %16 = arith.addf %1, %15 : vector<192x8xf32>
    %c1 = arith.constant 1 : index
    %c0_10 = arith.constant 0 : index
    %c0_11 = arith.constant 0 : index
    %17 = vector.load %arg3[%c1, %c0_10, %c0_11] : memref<36x32x8xbf16, #tpu.memory_space<vmem>>, vector<1x32x8xbf16>
    %18 = vector.shape_cast %17 : vector<1x32x8xbf16> to vector<32x8xbf16>
    %cst_12 = arith.constant dense<0.000000e+00> : vector<192x8xf32>
    %19 = tpu.matmul %12, %18, %cst_12 {dimension_numbers = #tpu.dot_dimension_numbers<[1], [0], [0], [1], [0, 0, 1, 1], [], []>} : vector<192x32xbf16>, vector<32x8xbf16>, vector<192x8xf32> -> vector<192x8xf32>
    %20 = arith.addf %5, %19 : vector<192x8xf32>
    %c2 = arith.constant 2 : index
    %c0_13 = arith.constant 0 : index
    %c0_14 = arith.constant 0 : index
    %21 = vector.load %arg3[%c2, %c0_13, %c0_14] : memref<36x32x8xbf16, #tpu.memory_space<vmem>>, vector<1x32x8xbf16>
    %22 = vector.shape_cast %21 : vector<1x32x8xbf16> to vector<32x8xbf16>
    %cst_15 = arith.constant dense<0.000000e+00> : vector<192x8xf32>
    %23 = tpu.matmul %12, %22, %cst_15 {dimension_numbers = #tpu.dot_dimension_numbers<[1], [0], [0], [1], [0, 0, 1, 1], [], []>} : vector<192x32xbf16>, vector<32x8xbf16>, vector<192x8xf32> -> vector<192x8xf32>
    %24 = arith.addf %6, %23 : vector<192x8xf32>
    %c4_i32_16 = arith.constant 4 : i32
    %25 = arith.addi %0, %c4_i32_16 : i32
    %c0_i32 = arith.constant 0 : i32
    %26 = arith.addi %25, %c0_i32 : i32
    %c0_17 = arith.constant 0 : index
    %27 = arith.index_cast %26 : i32 to index
    %c0_18 = arith.constant 0 : index
    %c0_19 = arith.constant 0 : index
    %28 = vector.load %arg2[%c0_17, %27, %c0_18, %c0_19] : memref<1x24x24x32xbf16, #tpu.memory_space<vmem>>, vector<1x8x24x32xbf16>
    %29 = vector.shape_cast %28 : vector<1x8x24x32xbf16> to vector<8x24x32xbf16>
    %30 = vector.shape_cast %29 : vector<8x24x32xbf16> to vector<192x32xbf16>
    %c3 = arith.constant 3 : index
    %c0_20 = arith.constant 0 : index
    %c0_21 = arith.constant 0 : index
    %31 = vector.load %arg3[%c3, %c0_20, %c0_21] : memref<36x32x8xbf16, #tpu.memory_space<vmem>>, vector<1x32x8xbf16>
    %32 = vector.shape_cast %31 : vector<1x32x8xbf16> to vector<32x8xbf16>
    %cst_22 = arith.constant dense<0.000000e+00> : vector<192x8xf32>
    %33 = tpu.matmul %30, %32, %cst_22 {dimension_numbers = #tpu.dot_dimension_numbers<[1], [0], [0], [1], [0, 0, 1, 1], [], []>} : vector<192x32xbf16>, vector<32x8xbf16>, vector<192x8xf32> -> vector<192x8xf32>
    %34 = arith.addf %16, %33 : vector<192x8xf32>
    %c4 = arith.constant 4 : index
    %c0_23 = arith.constant 0 : index
    %c0_24 = arith.constant 0 : index
    %35 = vector.load %arg3[%c4, %c0_23, %c0_24] : memref<36x32x8xbf16, #tpu.memory_space<vmem>>, vector<1x32x8xbf16>
    %36 = vector.shape_cast %35 : vector<1x32x8xbf16> to vector<32x8xbf16>
    %cst_25 = arith.constant dense<0.000000e+00> : vector<192x8xf32>
    %37 = tpu.matmul %30, %36, %cst_25 {dimension_numbers = #tpu.dot_dimension_numbers<[1], [0], [0], [1], [0, 0, 1, 1], [], []>} : vector<192x32xbf16>, vector<32x8xbf16>, vector<192x8xf32> -> vector<192x8xf32>
    %38 = arith.addf %20, %37 : vector<192x8xf32>
    %c5 = arith.constant 5 : index
    %c0_26 = arith.constant 0 : index
    %c0_27 = arith.constant 0 : index
    %39 = vector.load %arg3[%c5, %c0_26, %c0_27] : memref<36x32x8xbf16, #tpu.memory_space<vmem>>, vector<1x32x8xbf16>
    %40 = vector.shape_cast %39 : vector<1x32x8xbf16> to vector<32x8xbf16>
    %cst_28 = arith.constant dense<0.000000e+00> : vector<192x8xf32>
    %41 = tpu.matmul %30, %40, %cst_28 {dimension_numbers = #tpu.dot_dimension_numbers<[1], [0], [0], [1], [0, 0, 1, 1], [], []>} : vector<192x32xbf16>, vector<32x8xbf16>, vector<192x8xf32> -> vector<192x8xf32>
    %42 = arith.addf %24, %41 : vector<192x8xf32>
    %c4_i32_29 = arith.constant 4 : i32
    %43 = arith.addi %0, %c4_i32_29 : i32
    %c1_i32 = arith.constant 1 : i32
    %44 = arith.addi %43, %c1_i32 : i32
    %c0_30 = arith.constant 0 : index
    %45 = arith.index_cast %44 : i32 to index
    %c0_31 = arith.constant 0 : index
    %c0_32 = arith.constant 0 : index
    %46 = vector.load %arg2[%c0_30, %45, %c0_31, %c0_32] : memref<1x24x24x32xbf16, #tpu.memory_space<vmem>>, vector<1x8x24x32xbf16>
    %47 = vector.shape_cast %46 : vector<1x8x24x32xbf16> to vector<8x24x32xbf16>
    %48 = vector.shape_cast %47 : vector<8x24x32xbf16> to vector<192x32xbf16>
    %c6 = arith.constant 6 : index
    %c0_33 = arith.constant 0 : index
    %c0_34 = arith.constant 0 : index
    %49 = vector.load %arg3[%c6, %c0_33, %c0_34] : memref<36x32x8xbf16, #tpu.memory_space<vmem>>, vector<1x32x8xbf16>
    %50 = vector.shape_cast %49 : vector<1x32x8xbf16> to vector<32x8xbf16>
    %cst_35 = arith.constant dense<0.000000e+00> : vector<192x8xf32>
    %51 = tpu.matmul %48, %50, %cst_35 {dimension_numbers = #tpu.dot_dimension_numbers<[1], [0], [0], [1], [0, 0, 1, 1], [], []>} : vector<192x32xbf16>, vector<32x8xbf16>, vector<192x8xf32> -> vector<192x8xf32>
    %52 = arith.addf %34, %51 : vector<192x8xf32>
    %c7 = arith.constant 7 : index
    %c0_36 = arith.constant 0 : index
    %c0_37 = arith.constant 0 : index
    %53 = vector.load %arg3[%c7, %c0_36, %c0_37] : memref<36x32x8xbf16, #tpu.memory_space<vmem>>, vector<1x32x8xbf16>
    %54 = vector.shape_cast %53 : vector<1x32x8xbf16> to vector<32x8xbf16>
    %cst_38 = arith.constant dense<0.000000e+00> : vector<192x8xf32>
    %55 = tpu.matmul %48, %54, %cst_38 {dimension_numbers = #tpu.dot_dimension_numbers<[1], [0], [0], [1], [0, 0, 1, 1], [], []>} : vector<192x32xbf16>, vector<32x8xbf16>, vector<192x8xf32> -> vector<192x8xf32>
    %56 = arith.addf %38, %55 : vector<192x8xf32>
    %c8 = arith.constant 8 : index
    %c0_39 = arith.constant 0 : index
    %c0_40 = arith.constant 0 : index
    %57 = vector.load %arg3[%c8, %c0_39, %c0_40] : memref<36x32x8xbf16, #tpu.memory_space<vmem>>, vector<1x32x8xbf16>
    %58 = vector.shape_cast %57 : vector<1x32x8xbf16> to vector<32x8xbf16>
    %cst_41 = arith.constant dense<0.000000e+00> : vector<192x8xf32>
    %59 = tpu.matmul %48, %58, %cst_41 {dimension_numbers = #tpu.dot_dimension_numbers<[1], [0], [0], [1], [0, 0, 1, 1], [], []>} : vector<192x32xbf16>, vector<32x8xbf16>, vector<192x8xf32> -> vector<192x8xf32>
    %60 = arith.addf %42, %59 : vector<192x8xf32>
    %61 = vector.shape_cast %52 : vector<192x8xf32> to vector<8x24x8xf32>
    %62 = vector.extract_strided_slice %61 {offsets = [0, 3, 0], sizes = [8, 16, 8], strides = [1, 1, 1]} : vector<8x24x8xf32> to vector<8x16x8xf32>
    %63 = vector.shape_cast %56 : vector<192x8xf32> to vector<8x24x8xf32>
    %64 = vector.extract_strided_slice %63 {offsets = [0, 4, 0], sizes = [8, 16, 8], strides = [1, 1, 1]} : vector<8x24x8xf32> to vector<8x16x8xf32>
    %65 = arith.addf %62, %64 : vector<8x16x8xf32>
    %66 = vector.shape_cast %60 : vector<192x8xf32> to vector<8x24x8xf32>
    %67 = vector.extract_strided_slice %66 {offsets = [0, 5, 0], sizes = [8, 16, 8], strides = [1, 1, 1]} : vector<8x24x8xf32> to vector<8x16x8xf32>
    %68 = arith.addf %65, %67 : vector<8x16x8xf32>
    %cst_42 = arith.constant 0.000000e+00 : f32
    %69 = vector.broadcast %cst_42 : f32 to vector<8x16x8xf32>
    %70 = arith.maximumf %68, %69 : vector<8x16x8xf32>
    %c0_43 = arith.constant 0 : index
    %c0_44 = arith.constant 0 : index
    %c0_45 = arith.constant 0 : index
    %c0_46 = arith.constant 0 : index
    %c0_47 = arith.constant 0 : index
    %71 = vector.load %arg5[%c0_43, %c0_44, %c0_45, %c0_46, %c0_47] : memref<1x4x8x16x8xf32, #tpu.memory_space<vmem>>, vector<1x1x8x16x8xf32>
    %72 = vector.shape_cast %71 : vector<1x1x8x16x8xf32> to vector<8x16x8xf32>
    %73 = vector.shape_cast %70 : vector<8x16x8xf32> to vector<1x1x8x16x8xf32>
    tpu.vector_store %arg5[%c0_43, %c0_44, %c0_45, %c0_46, %c0_47], %73 {strides = array<i32>} : memref<1x4x8x16x8xf32, #tpu.memory_space<vmem>>, vector<1x1x8x16x8xf32>,
    %cst_48 = arith.constant 0.000000e+00 : f32
    %74 = vector.broadcast %cst_48 : f32 to vector<192x8xf32>
    %c1_49 = arith.constant 1 : index
    %c0_50 = arith.constant 0 : index
    %c0_51 = arith.constant 0 : index
    %75 = vector.load %arg4[%c1_49, %c0_50, %c0_51] : memref<4x1x8xf32, #tpu.memory_space<vmem>>, vector<1x1x8xf32>
    %76 = vector.shape_cast %75 : vector<1x1x8xf32> to vector<1x8xf32>
    %77 = vector.shape_cast %76 : vector<1x8xf32> to vector<1x8xf32>
    %78 = vector.broadcast %77 : vector<1x8xf32> to vector<192x8xf32>
    %cst_52 = arith.constant 0.000000e+00 : f32
    %79 = vector.broadcast %cst_52 : f32 to vector<192x8xf32>
    %c4_i32_53 = arith.constant 4 : i32
    %80 = arith.addi %0, %c4_i32_53 : i32
    %c-2_i32 = arith.constant -2 : i32
    %81 = arith.addi %80, %c-2_i32 : i32
    %c0_54 = arith.constant 0 : index
    %82 = arith.index_cast %81 : i32 to index
    %c0_55 = arith.constant 0 : index
    %c0_56 = arith.constant 0 : index
    %83 = vector.load %arg2[%c0_54, %82, %c0_55, %c0_56] : memref<1x24x24x32xbf16, #tpu.memory_space<vmem>>, vector<1x8x24x32xbf16>
    %84 = vector.shape_cast %83 : vector<1x8x24x32xbf16> to vector<8x24x32xbf16>
    %85 = vector.shape_cast %84 : vector<8x24x32xbf16> to vector<192x32xbf16>
    %c9 = arith.constant 9 : index
    %c0_57 = arith.constant 0 : index
    %c0_58 = arith.constant 0 : index
    %86 = vector.load %arg3[%c9, %c0_57, %c0_58] : memref<36x32x8xbf16, #tpu.memory_space<vmem>>, vector<1x32x8xbf16>
    %87 = vector.shape_cast %86 : vector<1x32x8xbf16> to vector<32x8xbf16>
    %cst_59 = arith.constant dense<0.000000e+00> : vector<192x8xf32>
    %88 = tpu.matmul %85, %87, %cst_59 {dimension_numbers = #tpu.dot_dimension_numbers<[1], [0], [0], [1], [0, 0, 1, 1], [], []>} : vector<192x32xbf16>, vector<32x8xbf16>, vector<192x8xf32> -> vector<192x8xf32>
    %89 = arith.addf %74, %88 : vector<192x8xf32>
    %c10 = arith.constant 10 : index
    %c0_60 = arith.constant 0 : index
    %c0_61 = arith.constant 0 : index
    %90 = vector.load %arg3[%c10, %c0_60, %c0_61] : memref<36x32x8xbf16, #tpu.memory_space<vmem>>, vector<1x32x8xbf16>
    %91 = vector.shape_cast %90 : vector<1x32x8xbf16> to vector<32x8xbf16>
    %cst_62 = arith.constant dense<0.000000e+00> : vector<192x8xf32>
    %92 = tpu.matmul %85, %91, %cst_62 {dimension_numbers = #tpu.dot_dimension_numbers<[1], [0], [0], [1], [0, 0, 1, 1], [], []>} : vector<192x32xbf16>, vector<32x8xbf16>, vector<192x8xf32> -> vector<192x8xf32>
    %93 = arith.addf %78, %92 : vector<192x8xf32>
    %c11 = arith.constant 11 : index
    %c0_63 = arith.constant 0 : index
    %c0_64 = arith.constant 0 : index
    %94 = vector.load %arg3[%c11, %c0_63, %c0_64] : memref<36x32x8xbf16, #tpu.memory_space<vmem>>, vector<1x32x8xbf16>
    %95 = vector.shape_cast %94 : vector<1x32x8xbf16> to vector<32x8xbf16>
    %cst_65 = arith.constant dense<0.000000e+00> : vector<192x8xf32>
    %96 = tpu.matmul %85, %95, %cst_65 {dimension_numbers = #tpu.dot_dimension_numbers<[1], [0], [0], [1], [0, 0, 1, 1], [], []>} : vector<192x32xbf16>, vector<32x8xbf16>, vector<192x8xf32> -> vector<192x8xf32>
    %97 = arith.addf %79, %96 : vector<192x8xf32>
    %c4_i32_66 = arith.constant 4 : i32
    %98 = arith.addi %0, %c4_i32_66 : i32
    %c0_i32_67 = arith.constant 0 : i32
    %99 = arith.addi %98, %c0_i32_67 : i32
    %c0_68 = arith.constant 0 : index
    %100 = arith.index_cast %99 : i32 to index
    %c0_69 = arith.constant 0 : index
    %c0_70 = arith.constant 0 : index
    %101 = vector.load %arg2[%c0_68, %100, %c0_69, %c0_70] : memref<1x24x24x32xbf16, #tpu.memory_space<vmem>>, vector<1x8x24x32xbf16>
    %102 = vector.shape_cast %101 : vector<1x8x24x32xbf16> to vector<8x24x32xbf16>
    %103 = vector.shape_cast %102 : vector<8x24x32xbf16> to vector<192x32xbf16>
    %c12 = arith.constant 12 : index
    %c0_71 = arith.constant 0 : index
    %c0_72 = arith.constant 0 : index
    %104 = vector.load %arg3[%c12, %c0_71, %c0_72] : memref<36x32x8xbf16, #tpu.memory_space<vmem>>, vector<1x32x8xbf16>
    %105 = vector.shape_cast %104 : vector<1x32x8xbf16> to vector<32x8xbf16>
    %cst_73 = arith.constant dense<0.000000e+00> : vector<192x8xf32>
    %106 = tpu.matmul %103, %105, %cst_73 {dimension_numbers = #tpu.dot_dimension_numbers<[1], [0], [0], [1], [0, 0, 1, 1], [], []>} : vector<192x32xbf16>, vector<32x8xbf16>, vector<192x8xf32> -> vector<192x8xf32>
    %107 = arith.addf %89, %106 : vector<192x8xf32>
    %c13 = arith.constant 13 : index
    %c0_74 = arith.constant 0 : index
    %c0_75 = arith.constant 0 : index
    %108 = vector.load %arg3[%c13, %c0_74, %c0_75] : memref<36x32x8xbf16, #tpu.memory_space<vmem>>, vector<1x32x8xbf16>
    %109 = vector.shape_cast %108 : vector<1x32x8xbf16> to vector<32x8xbf16>
    %cst_76 = arith.constant dense<0.000000e+00> : vector<192x8xf32>
    %110 = tpu.matmul %103, %109, %cst_76 {dimension_numbers = #tpu.dot_dimension_numbers<[1], [0], [0], [1], [0, 0, 1, 1], [], []>} : vector<192x32xbf16>, vector<32x8xbf16>, vector<192x8xf32> -> vector<192x8xf32>
    %111 = arith.addf %93, %110 : vector<192x8xf32>
    %c14 = arith.constant 14 : index
    %c0_77 = arith.constant 0 : index
    %c0_78 = arith.constant 0 : index
    %112 = vector.load %arg3[%c14, %c0_77, %c0_78] : memref<36x32x8xbf16, #tpu.memory_space<vmem>>, vector<1x32x8xbf16>
    %113 = vector.shape_cast %112 : vector<1x32x8xbf16> to vector<32x8xbf16>
    %cst_79 = arith.constant dense<0.000000e+00> : vector<192x8xf32>
    %114 = tpu.matmul %103, %113, %cst_79 {dimension_numbers = #tpu.dot_dimension_numbers<[1], [0], [0], [1], [0, 0, 1, 1], [], []>} : vector<192x32xbf16>, vector<32x8xbf16>, vector<192x8xf32> -> vector<192x8xf32>
    %115 = arith.addf %97, %114 : vector<192x8xf32>
    %c4_i32_80 = arith.constant 4 : i32
    %116 = arith.addi %0, %c4_i32_80 : i32
    %c2_i32 = arith.constant 2 : i32
    %117 = arith.addi %116, %c2_i32 : i32
    %c0_81 = arith.constant 0 : index
    %118 = arith.index_cast %117 : i32 to index
    %c0_82 = arith.constant 0 : index
    %c0_83 = arith.constant 0 : index
    %119 = vector.load %arg2[%c0_81, %118, %c0_82, %c0_83] : memref<1x24x24x32xbf16, #tpu.memory_space<vmem>>, vector<1x8x24x32xbf16>
    %120 = vector.shape_cast %119 : vector<1x8x24x32xbf16> to vector<8x24x32xbf16>
    %121 = vector.shape_cast %120 : vector<8x24x32xbf16> to vector<192x32xbf16>
    %c15 = arith.constant 15 : index
    %c0_84 = arith.constant 0 : index
    %c0_85 = arith.constant 0 : index
    %122 = vector.load %arg3[%c15, %c0_84, %c0_85] : memref<36x32x8xbf16, #tpu.memory_space<vmem>>, vector<1x32x8xbf16>
    %123 = vector.shape_cast %122 : vector<1x32x8xbf16> to vector<32x8xbf16>
    %cst_86 = arith.constant dense<0.000000e+00> : vector<192x8xf32>
    %124 = tpu.matmul %121, %123, %cst_86 {dimension_numbers = #tpu.dot_dimension_numbers<[1], [0], [0], [1], [0, 0, 1, 1], [], []>} : vector<192x32xbf16>, vector<32x8xbf16>, vector<192x8xf32> -> vector<192x8xf32>
    %125 = arith.addf %107, %124 : vector<192x8xf32>
    %c16 = arith.constant 16 : index
    %c0_87 = arith.constant 0 : index
    %c0_88 = arith.constant 0 : index
    %126 = vector.load %arg3[%c16, %c0_87, %c0_88] : memref<36x32x8xbf16, #tpu.memory_space<vmem>>, vector<1x32x8xbf16>
    %127 = vector.shape_cast %126 : vector<1x32x8xbf16> to vector<32x8xbf16>
    %cst_89 = arith.constant dense<0.000000e+00> : vector<192x8xf32>
    %128 = tpu.matmul %121, %127, %cst_89 {dimension_numbers = #tpu.dot_dimension_numbers<[1], [0], [0], [1], [0, 0, 1, 1], [], []>} : vector<192x32xbf16>, vector<32x8xbf16>, vector<192x8xf32> -> vector<192x8xf32>
    %129 = arith.addf %111, %128 : vector<192x8xf32>
    %c17 = arith.constant 17 : index
    %c0_90 = arith.constant 0 : index
    %c0_91 = arith.constant 0 : index
    %130 = vector.load %arg3[%c17, %c0_90, %c0_91] : memref<36x32x8xbf16, #tpu.memory_space<vmem>>, vector<1x32x8xbf16>
    %131 = vector.shape_cast %130 : vector<1x32x8xbf16> to vector<32x8xbf16>
    %cst_92 = arith.constant dense<0.000000e+00> : vector<192x8xf32>
    %132 = tpu.matmul %121, %131, %cst_92 {dimension_numbers = #tpu.dot_dimension_numbers<[1], [0], [0], [1], [0, 0, 1, 1], [], []>} : vector<192x32xbf16>, vector<32x8xbf16>, vector<192x8xf32> -> vector<192x8xf32>
    %133 = arith.addf %115, %132 : vector<192x8xf32>
    %134 = vector.shape_cast %125 : vector<192x8xf32> to vector<8x24x8xf32>
    %135 = vector.extract_strided_slice %134 {offsets = [0, 2, 0], sizes = [8, 16, 8], strides = [1, 1, 1]} : vector<8x24x8xf32> to vector<8x16x8xf32>
    %136 = vector.shape_cast %129 : vector<192x8xf32> to vector<8x24x8xf32>
    %137 = vector.extract_strided_slice %136 {offsets = [0, 4, 0], sizes = [8, 16, 8], strides = [1, 1, 1]} : vector<8x24x8xf32> to vector<8x16x8xf32>
    %138 = arith.addf %135, %137 : vector<8x16x8xf32>
    %139 = vector.shape_cast %133 : vector<192x8xf32> to vector<8x24x8xf32>
    %140 = vector.extract_strided_slice %139 {offsets = [0, 6, 0], sizes = [8, 16, 8], strides = [1, 1, 1]} : vector<8x24x8xf32> to vector<8x16x8xf32>
    %141 = arith.addf %138, %140 : vector<8x16x8xf32>
    %cst_93 = arith.constant 0.000000e+00 : f32
    %142 = vector.broadcast %cst_93 : f32 to vector<8x16x8xf32>
    %143 = arith.maximumf %141, %142 : vector<8x16x8xf32>
    %c0_94 = arith.constant 0 : index
    %c1_95 = arith.constant 1 : index
    %c0_96 = arith.constant 0 : index
    %c0_97 = arith.constant 0 : index
    %c0_98 = arith.constant 0 : index
    %144 = vector.load %arg5[%c0_94, %c1_95, %c0_96, %c0_97, %c0_98] : memref<1x4x8x16x8xf32, #tpu.memory_space<vmem>>, vector<1x1x8x16x8xf32>
    %145 = vector.shape_cast %144 : vector<1x1x8x16x8xf32> to vector<8x16x8xf32>
    %146 = vector.shape_cast %143 : vector<8x16x8xf32> to vector<1x1x8x16x8xf32>
    tpu.vector_store %arg5[%c0_94, %c1_95, %c0_96, %c0_97, %c0_98], %146 {strides = array<i32>} : memref<1x4x8x16x8xf32, #tpu.memory_space<vmem>>, vector<1x1x8x16x8xf32>,
    %cst_99 = arith.constant 0.000000e+00 : f32
    %147 = vector.broadcast %cst_99 : f32 to vector<192x8xf32>
    %c2_100 = arith.constant 2 : index
    %c0_101 = arith.constant 0 : index
    %c0_102 = arith.constant 0 : index
    %148 = vector.load %arg4[%c2_100, %c0_101, %c0_102] : memref<4x1x8xf32, #tpu.memory_space<vmem>>, vector<1x1x8xf32>
    %149 = vector.shape_cast %148 : vector<1x1x8xf32> to vector<1x8xf32>
    %150 = vector.shape_cast %149 : vector<1x8xf32> to vector<1x8xf32>
    %151 = vector.broadcast %150 : vector<1x8xf32> to vector<192x8xf32>
    %cst_103 = arith.constant 0.000000e+00 : f32
    %152 = vector.broadcast %cst_103 : f32 to vector<192x8xf32>
    %c4_i32_104 = arith.constant 4 : i32
    %153 = arith.addi %0, %c4_i32_104 : i32
    %c-3_i32 = arith.constant -3 : i32
    %154 = arith.addi %153, %c-3_i32 : i32
    %c0_105 = arith.constant 0 : index
    %155 = arith.index_cast %154 : i32 to index
    %c0_106 = arith.constant 0 : index
    %c0_107 = arith.constant 0 : index
    %156 = vector.load %arg2[%c0_105, %155, %c0_106, %c0_107] : memref<1x24x24x32xbf16, #tpu.memory_space<vmem>>, vector<1x8x24x32xbf16>
    %157 = vector.shape_cast %156 : vector<1x8x24x32xbf16> to vector<8x24x32xbf16>
    %158 = vector.shape_cast %157 : vector<8x24x32xbf16> to vector<192x32xbf16>
    %c18 = arith.constant 18 : index
    %c0_108 = arith.constant 0 : index
    %c0_109 = arith.constant 0 : index
    %159 = vector.load %arg3[%c18, %c0_108, %c0_109] : memref<36x32x8xbf16, #tpu.memory_space<vmem>>, vector<1x32x8xbf16>
    %160 = vector.shape_cast %159 : vector<1x32x8xbf16> to vector<32x8xbf16>
    %cst_110 = arith.constant dense<0.000000e+00> : vector<192x8xf32>
    %161 = tpu.matmul %158, %160, %cst_110 {dimension_numbers = #tpu.dot_dimension_numbers<[1], [0], [0], [1], [0, 0, 1, 1], [], []>} : vector<192x32xbf16>, vector<32x8xbf16>, vector<192x8xf32> -> vector<192x8xf32>
    %162 = arith.addf %147, %161 : vector<192x8xf32>
    %c19 = arith.constant 19 : index
    %c0_111 = arith.constant 0 : index
    %c0_112 = arith.constant 0 : index
    %163 = vector.load %arg3[%c19, %c0_111, %c0_112] : memref<36x32x8xbf16, #tpu.memory_space<vmem>>, vector<1x32x8xbf16>
    %164 = vector.shape_cast %163 : vector<1x32x8xbf16> to vector<32x8xbf16>
    %cst_113 = arith.constant dense<0.000000e+00> : vector<192x8xf32>
    %165 = tpu.matmul %158, %164, %cst_113 {dimension_numbers = #tpu.dot_dimension_numbers<[1], [0], [0], [1], [0, 0, 1, 1], [], []>} : vector<192x32xbf16>, vector<32x8xbf16>, vector<192x8xf32> -> vector<192x8xf32>
    %166 = arith.addf %151, %165 : vector<192x8xf32>
    %c20 = arith.constant 20 : index
    %c0_114 = arith.constant 0 : index
    %c0_115 = arith.constant 0 : index
    %167 = vector.load %arg3[%c20, %c0_114, %c0_115] : memref<36x32x8xbf16, #tpu.memory_space<vmem>>, vector<1x32x8xbf16>
    %168 = vector.shape_cast %167 : vector<1x32x8xbf16> to vector<32x8xbf16>
    %cst_116 = arith.constant dense<0.000000e+00> : vector<192x8xf32>
    %169 = tpu.matmul %158, %168, %cst_116 {dimension_numbers = #tpu.dot_dimension_numbers<[1], [0], [0], [1], [0, 0, 1, 1], [], []>} : vector<192x32xbf16>, vector<32x8xbf16>, vector<192x8xf32> -> vector<192x8xf32>
    %170 = arith.addf %152, %169 : vector<192x8xf32>
    %c4_i32_117 = arith.constant 4 : i32
    %171 = arith.addi %0, %c4_i32_117 : i32
    %c0_i32_118 = arith.constant 0 : i32
    %172 = arith.addi %171, %c0_i32_118 : i32
    %c0_119 = arith.constant 0 : index
    %173 = arith.index_cast %172 : i32 to index
    %c0_120 = arith.constant 0 : index
    %c0_121 = arith.constant 0 : index
    %174 = vector.load %arg2[%c0_119, %173, %c0_120, %c0_121] : memref<1x24x24x32xbf16, #tpu.memory_space<vmem>>, vector<1x8x24x32xbf16>
    %175 = vector.shape_cast %174 : vector<1x8x24x32xbf16> to vector<8x24x32xbf16>
    %176 = vector.shape_cast %175 : vector<8x24x32xbf16> to vector<192x32xbf16>
    %c21 = arith.constant 21 : index
    %c0_122 = arith.constant 0 : index
    %c0_123 = arith.constant 0 : index
    %177 = vector.load %arg3[%c21, %c0_122, %c0_123] : memref<36x32x8xbf16, #tpu.memory_space<vmem>>, vector<1x32x8xbf16>
    %178 = vector.shape_cast %177 : vector<1x32x8xbf16> to vector<32x8xbf16>
    %cst_124 = arith.constant dense<0.000000e+00> : vector<192x8xf32>
    %179 = tpu.matmul %176, %178, %cst_124 {dimension_numbers = #tpu.dot_dimension_numbers<[1], [0], [0], [1], [0, 0, 1, 1], [], []>} : vector<192x32xbf16>, vector<32x8xbf16>, vector<192x8xf32> -> vector<192x8xf32>
    %180 = arith.addf %162, %179 : vector<192x8xf32>
    %c22 = arith.constant 22 : index
    %c0_125 = arith.constant 0 : index
    %c0_126 = arith.constant 0 : index
    %181 = vector.load %arg3[%c22, %c0_125, %c0_126] : memref<36x32x8xbf16, #tpu.memory_space<vmem>>, vector<1x32x8xbf16>
    %182 = vector.shape_cast %181 : vector<1x32x8xbf16> to vector<32x8xbf16>
    %cst_127 = arith.constant dense<0.000000e+00> : vector<192x8xf32>
    %183 = tpu.matmul %176, %182, %cst_127 {dimension_numbers = #tpu.dot_dimension_numbers<[1], [0], [0], [1], [0, 0, 1, 1], [], []>} : vector<192x32xbf16>, vector<32x8xbf16>, vector<192x8xf32> -> vector<192x8xf32>
    %184 = arith.addf %166, %183 : vector<192x8xf32>
    %c23 = arith.constant 23 : index
    %c0_128 = arith.constant 0 : index
    %c0_129 = arith.constant 0 : index
    %185 = vector.load %arg3[%c23, %c0_128, %c0_129] : memref<36x32x8xbf16, #tpu.memory_space<vmem>>, vector<1x32x8xbf16>
    %186 = vector.shape_cast %185 : vector<1x32x8xbf16> to vector<32x8xbf16>
    %cst_130 = arith.constant dense<0.000000e+00> : vector<192x8xf32>
    %187 = tpu.matmul %176, %186, %cst_130 {dimension_numbers = #tpu.dot_dimension_numbers<[1], [0], [0], [1], [0, 0, 1, 1], [], []>} : vector<192x32xbf16>, vector<32x8xbf16>, vector<192x8xf32> -> vector<192x8xf32>
    %188 = arith.addf %170, %187 : vector<192x8xf32>
    %c4_i32_131 = arith.constant 4 : i32
    %189 = arith.addi %0, %c4_i32_131 : i32
    %c3_i32 = arith.constant 3 : i32
    %190 = arith.addi %189, %c3_i32 : i32
    %c0_132 = arith.constant 0 : index
    %191 = arith.index_cast %190 : i32 to index
    %c0_133 = arith.constant 0 : index
    %c0_134 = arith.constant 0 : index
    %192 = vector.load %arg2[%c0_132, %191, %c0_133, %c0_134] : memref<1x24x24x32xbf16, #tpu.memory_space<vmem>>, vector<1x8x24x32xbf16>
    %193 = vector.shape_cast %192 : vector<1x8x24x32xbf16> to vector<8x24x32xbf16>
    %194 = vector.shape_cast %193 : vector<8x24x32xbf16> to vector<192x32xbf16>
    %c24 = arith.constant 24 : index
    %c0_135 = arith.constant 0 : index
    %c0_136 = arith.constant 0 : index
    %195 = vector.load %arg3[%c24, %c0_135, %c0_136] : memref<36x32x8xbf16, #tpu.memory_space<vmem>>, vector<1x32x8xbf16>
    %196 = vector.shape_cast %195 : vector<1x32x8xbf16> to vector<32x8xbf16>
    %cst_137 = arith.constant dense<0.000000e+00> : vector<192x8xf32>
    %197 = tpu.matmul %194, %196, %cst_137 {dimension_numbers = #tpu.dot_dimension_numbers<[1], [0], [0], [1], [0, 0, 1, 1], [], []>} : vector<192x32xbf16>, vector<32x8xbf16>, vector<192x8xf32> -> vector<192x8xf32>
    %198 = arith.addf %180, %197 : vector<192x8xf32>
    %c25 = arith.constant 25 : index
    %c0_138 = arith.constant 0 : index
    %c0_139 = arith.constant 0 : index
    %199 = vector.load %arg3[%c25, %c0_138, %c0_139] : memref<36x32x8xbf16, #tpu.memory_space<vmem>>, vector<1x32x8xbf16>
    %200 = vector.shape_cast %199 : vector<1x32x8xbf16> to vector<32x8xbf16>
    %cst_140 = arith.constant dense<0.000000e+00> : vector<192x8xf32>
    %201 = tpu.matmul %194, %200, %cst_140 {dimension_numbers = #tpu.dot_dimension_numbers<[1], [0], [0], [1], [0, 0, 1, 1], [], []>} : vector<192x32xbf16>, vector<32x8xbf16>, vector<192x8xf32> -> vector<192x8xf32>
    %202 = arith.addf %184, %201 : vector<192x8xf32>
    %c26 = arith.constant 26 : index
    %c0_141 = arith.constant 0 : index
    %c0_142 = arith.constant 0 : index
    %203 = vector.load %arg3[%c26, %c0_141, %c0_142] : memref<36x32x8xbf16, #tpu.memory_space<vmem>>, vector<1x32x8xbf16>
    %204 = vector.shape_cast %203 : vector<1x32x8xbf16> to vector<32x8xbf16>
    %cst_143 = arith.constant dense<0.000000e+00> : vector<192x8xf32>
    %205 = tpu.matmul %194, %204, %cst_143 {dimension_numbers = #tpu.dot_dimension_numbers<[1], [0], [0], [1], [0, 0, 1, 1], [], []>} : vector<192x32xbf16>, vector<32x8xbf16>, vector<192x8xf32> -> vector<192x8xf32>
    %206 = arith.addf %188, %205 : vector<192x8xf32>
    %207 = vector.shape_cast %198 : vector<192x8xf32> to vector<8x24x8xf32>
    %208 = vector.extract_strided_slice %207 {offsets = [0, 1, 0], sizes = [8, 16, 8], strides = [1, 1, 1]} : vector<8x24x8xf32> to vector<8x16x8xf32>
    %209 = vector.shape_cast %202 : vector<192x8xf32> to vector<8x24x8xf32>
    %210 = vector.extract_strided_slice %209 {offsets = [0, 4, 0], sizes = [8, 16, 8], strides = [1, 1, 1]} : vector<8x24x8xf32> to vector<8x16x8xf32>
    %211 = arith.addf %208, %210 : vector<8x16x8xf32>
    %212 = vector.shape_cast %206 : vector<192x8xf32> to vector<8x24x8xf32>
    %213 = vector.extract_strided_slice %212 {offsets = [0, 7, 0], sizes = [8, 16, 8], strides = [1, 1, 1]} : vector<8x24x8xf32> to vector<8x16x8xf32>
    %214 = arith.addf %211, %213 : vector<8x16x8xf32>
    %cst_144 = arith.constant 0.000000e+00 : f32
    %215 = vector.broadcast %cst_144 : f32 to vector<8x16x8xf32>
    %216 = arith.maximumf %214, %215 : vector<8x16x8xf32>
    %c0_145 = arith.constant 0 : index
    %c2_146 = arith.constant 2 : index
    %c0_147 = arith.constant 0 : index
    %c0_148 = arith.constant 0 : index
    %c0_149 = arith.constant 0 : index
    %217 = vector.load %arg5[%c0_145, %c2_146, %c0_147, %c0_148, %c0_149] : memref<1x4x8x16x8xf32, #tpu.memory_space<vmem>>, vector<1x1x8x16x8xf32>
    %218 = vector.shape_cast %217 : vector<1x1x8x16x8xf32> to vector<8x16x8xf32>
    %219 = vector.shape_cast %216 : vector<8x16x8xf32> to vector<1x1x8x16x8xf32>
    tpu.vector_store %arg5[%c0_145, %c2_146, %c0_147, %c0_148, %c0_149], %219 {strides = array<i32>} : memref<1x4x8x16x8xf32, #tpu.memory_space<vmem>>, vector<1x1x8x16x8xf32>,
    %cst_150 = arith.constant 0.000000e+00 : f32
    %220 = vector.broadcast %cst_150 : f32 to vector<192x8xf32>
    %c3_151 = arith.constant 3 : index
    %c0_152 = arith.constant 0 : index
    %c0_153 = arith.constant 0 : index
    %221 = vector.load %arg4[%c3_151, %c0_152, %c0_153] : memref<4x1x8xf32, #tpu.memory_space<vmem>>, vector<1x1x8xf32>
    %222 = vector.shape_cast %221 : vector<1x1x8xf32> to vector<1x8xf32>
    %223 = vector.shape_cast %222 : vector<1x8xf32> to vector<1x8xf32>
    %224 = vector.broadcast %223 : vector<1x8xf32> to vector<192x8xf32>
    %cst_154 = arith.constant 0.000000e+00 : f32
    %225 = vector.broadcast %cst_154 : f32 to vector<192x8xf32>
    %c4_i32_155 = arith.constant 4 : i32
    %226 = arith.addi %0, %c4_i32_155 : i32
    %c-4_i32 = arith.constant -4 : i32
    %227 = arith.addi %226, %c-4_i32 : i32
    %c0_156 = arith.constant 0 : index
    %228 = arith.index_cast %227 : i32 to index
    %c0_157 = arith.constant 0 : index
    %c0_158 = arith.constant 0 : index
    %229 = vector.load %arg2[%c0_156, %228, %c0_157, %c0_158] : memref<1x24x24x32xbf16, #tpu.memory_space<vmem>>, vector<1x8x24x32xbf16>
    %230 = vector.shape_cast %229 : vector<1x8x24x32xbf16> to vector<8x24x32xbf16>
    %231 = vector.shape_cast %230 : vector<8x24x32xbf16> to vector<192x32xbf16>
    %c27 = arith.constant 27 : index
    %c0_159 = arith.constant 0 : index
    %c0_160 = arith.constant 0 : index
    %232 = vector.load %arg3[%c27, %c0_159, %c0_160] : memref<36x32x8xbf16, #tpu.memory_space<vmem>>, vector<1x32x8xbf16>
    %233 = vector.shape_cast %232 : vector<1x32x8xbf16> to vector<32x8xbf16>
    %cst_161 = arith.constant dense<0.000000e+00> : vector<192x8xf32>
    %234 = tpu.matmul %231, %233, %cst_161 {dimension_numbers = #tpu.dot_dimension_numbers<[1], [0], [0], [1], [0, 0, 1, 1], [], []>} : vector<192x32xbf16>, vector<32x8xbf16>, vector<192x8xf32> -> vector<192x8xf32>
    %235 = arith.addf %220, %234 : vector<192x8xf32>
    %c28 = arith.constant 28 : index
    %c0_162 = arith.constant 0 : index
    %c0_163 = arith.constant 0 : index
    %236 = vector.load %arg3[%c28, %c0_162, %c0_163] : memref<36x32x8xbf16, #tpu.memory_space<vmem>>, vector<1x32x8xbf16>
    %237 = vector.shape_cast %236 : vector<1x32x8xbf16> to vector<32x8xbf16>
    %cst_164 = arith.constant dense<0.000000e+00> : vector<192x8xf32>
    %238 = tpu.matmul %231, %237, %cst_164 {dimension_numbers = #tpu.dot_dimension_numbers<[1], [0], [0], [1], [0, 0, 1, 1], [], []>} : vector<192x32xbf16>, vector<32x8xbf16>, vector<192x8xf32> -> vector<192x8xf32>
    %239 = arith.addf %224, %238 : vector<192x8xf32>
    %c29 = arith.constant 29 : index
    %c0_165 = arith.constant 0 : index
    %c0_166 = arith.constant 0 : index
    %240 = vector.load %arg3[%c29, %c0_165, %c0_166] : memref<36x32x8xbf16, #tpu.memory_space<vmem>>, vector<1x32x8xbf16>
    %241 = vector.shape_cast %240 : vector<1x32x8xbf16> to vector<32x8xbf16>
    %cst_167 = arith.constant dense<0.000000e+00> : vector<192x8xf32>
    %242 = tpu.matmul %231, %241, %cst_167 {dimension_numbers = #tpu.dot_dimension_numbers<[1], [0], [0], [1], [0, 0, 1, 1], [], []>} : vector<192x32xbf16>, vector<32x8xbf16>, vector<192x8xf32> -> vector<192x8xf32>
    %243 = arith.addf %225, %242 : vector<192x8xf32>
    %c4_i32_168 = arith.constant 4 : i32
    %244 = arith.addi %0, %c4_i32_168 : i32
    %c0_i32_169 = arith.constant 0 : i32
    %245 = arith.addi %244, %c0_i32_169 : i32
    %c0_170 = arith.constant 0 : index
    %246 = arith.index_cast %245 : i32 to index
    %c0_171 = arith.constant 0 : index
    %c0_172 = arith.constant 0 : index
    %247 = vector.load %arg2[%c0_170, %246, %c0_171, %c0_172] : memref<1x24x24x32xbf16, #tpu.memory_space<vmem>>, vector<1x8x24x32xbf16>
    %248 = vector.shape_cast %247 : vector<1x8x24x32xbf16> to vector<8x24x32xbf16>
    %249 = vector.shape_cast %248 : vector<8x24x32xbf16> to vector<192x32xbf16>
    %c30 = arith.constant 30 : index
    %c0_173 = arith.constant 0 : index
    %c0_174 = arith.constant 0 : index
    %250 = vector.load %arg3[%c30, %c0_173, %c0_174] : memref<36x32x8xbf16, #tpu.memory_space<vmem>>, vector<1x32x8xbf16>
    %251 = vector.shape_cast %250 : vector<1x32x8xbf16> to vector<32x8xbf16>
    %cst_175 = arith.constant dense<0.000000e+00> : vector<192x8xf32>
    %252 = tpu.matmul %249, %251, %cst_175 {dimension_numbers = #tpu.dot_dimension_numbers<[1], [0], [0], [1], [0, 0, 1, 1], [], []>} : vector<192x32xbf16>, vector<32x8xbf16>, vector<192x8xf32> -> vector<192x8xf32>
    %253 = arith.addf %235, %252 : vector<192x8xf32>
    %c31 = arith.constant 31 : index
    %c0_176 = arith.constant 0 : index
    %c0_177 = arith.constant 0 : index
    %254 = vector.load %arg3[%c31, %c0_176, %c0_177] : memref<36x32x8xbf16, #tpu.memory_space<vmem>>, vector<1x32x8xbf16>
    %255 = vector.shape_cast %254 : vector<1x32x8xbf16> to vector<32x8xbf16>
    %cst_178 = arith.constant dense<0.000000e+00> : vector<192x8xf32>
    %256 = tpu.matmul %249, %255, %cst_178 {dimension_numbers = #tpu.dot_dimension_numbers<[1], [0], [0], [1], [0, 0, 1, 1], [], []>} : vector<192x32xbf16>, vector<32x8xbf16>, vector<192x8xf32> -> vector<192x8xf32>
    %257 = arith.addf %239, %256 : vector<192x8xf32>
    %c32 = arith.constant 32 : index
    %c0_179 = arith.constant 0 : index
    %c0_180 = arith.constant 0 : index
    %258 = vector.load %arg3[%c32, %c0_179, %c0_180] : memref<36x32x8xbf16, #tpu.memory_space<vmem>>, vector<1x32x8xbf16>
    %259 = vector.shape_cast %258 : vector<1x32x8xbf16> to vector<32x8xbf16>
    %cst_181 = arith.constant dense<0.000000e+00> : vector<192x8xf32>
    %260 = tpu.matmul %249, %259, %cst_181 {dimension_numbers = #tpu.dot_dimension_numbers<[1], [0], [0], [1], [0, 0, 1, 1], [], []>} : vector<192x32xbf16>, vector<32x8xbf16>, vector<192x8xf32> -> vector<192x8xf32>
    %261 = arith.addf %243, %260 : vector<192x8xf32>
    %c4_i32_182 = arith.constant 4 : i32
    %262 = arith.addi %0, %c4_i32_182 : i32
    %c4_i32_183 = arith.constant 4 : i32
    %263 = arith.addi %262, %c4_i32_183 : i32
    %c0_184 = arith.constant 0 : index
    %264 = arith.index_cast %263 : i32 to index
    %c0_185 = arith.constant 0 : index
    %c0_186 = arith.constant 0 : index
    %265 = vector.load %arg2[%c0_184, %264, %c0_185, %c0_186] : memref<1x24x24x32xbf16, #tpu.memory_space<vmem>>, vector<1x8x24x32xbf16>
    %266 = vector.shape_cast %265 : vector<1x8x24x32xbf16> to vector<8x24x32xbf16>
    %267 = vector.shape_cast %266 : vector<8x24x32xbf16> to vector<192x32xbf16>
    %c33 = arith.constant 33 : index
    %c0_187 = arith.constant 0 : index
    %c0_188 = arith.constant 0 : index
    %268 = vector.load %arg3[%c33, %c0_187, %c0_188] : memref<36x32x8xbf16, #tpu.memory_space<vmem>>, vector<1x32x8xbf16>
    %269 = vector.shape_cast %268 : vector<1x32x8xbf16> to vector<32x8xbf16>
    %cst_189 = arith.constant dense<0.000000e+00> : vector<192x8xf32>
    %270 = tpu.matmul %267, %269, %cst_189 {dimension_numbers = #tpu.dot_dimension_numbers<[1], [0], [0], [1], [0, 0, 1, 1], [], []>} : vector<192x32xbf16>, vector<32x8xbf16>, vector<192x8xf32> -> vector<192x8xf32>
    %271 = arith.addf %253, %270 : vector<192x8xf32>
    %c34 = arith.constant 34 : index
    %c0_190 = arith.constant 0 : index
    %c0_191 = arith.constant 0 : index
    %272 = vector.load %arg3[%c34, %c0_190, %c0_191] : memref<36x32x8xbf16, #tpu.memory_space<vmem>>, vector<1x32x8xbf16>
    %273 = vector.shape_cast %272 : vector<1x32x8xbf16> to vector<32x8xbf16>
    %cst_192 = arith.constant dense<0.000000e+00> : vector<192x8xf32>
    %274 = tpu.matmul %267, %273, %cst_192 {dimension_numbers = #tpu.dot_dimension_numbers<[1], [0], [0], [1], [0, 0, 1, 1], [], []>} : vector<192x32xbf16>, vector<32x8xbf16>, vector<192x8xf32> -> vector<192x8xf32>
    %275 = arith.addf %257, %274 : vector<192x8xf32>
    %c35 = arith.constant 35 : index
    %c0_193 = arith.constant 0 : index
    %c0_194 = arith.constant 0 : index
    %276 = vector.load %arg3[%c35, %c0_193, %c0_194] : memref<36x32x8xbf16, #tpu.memory_space<vmem>>, vector<1x32x8xbf16>
    %277 = vector.shape_cast %276 : vector<1x32x8xbf16> to vector<32x8xbf16>
    %cst_195 = arith.constant dense<0.000000e+00> : vector<192x8xf32>
    %278 = tpu.matmul %267, %277, %cst_195 {dimension_numbers = #tpu.dot_dimension_numbers<[1], [0], [0], [1], [0, 0, 1, 1], [], []>} : vector<192x32xbf16>, vector<32x8xbf16>, vector<192x8xf32> -> vector<192x8xf32>
    %279 = arith.addf %261, %278 : vector<192x8xf32>
    %280 = vector.shape_cast %271 : vector<192x8xf32> to vector<8x24x8xf32>
    %281 = vector.extract_strided_slice %280 {offsets = [0, 0, 0], sizes = [8, 16, 8], strides = [1, 1, 1]} : vector<8x24x8xf32> to vector<8x16x8xf32>
    %282 = vector.shape_cast %275 : vector<192x8xf32> to vector<8x24x8xf32>
    %283 = vector.extract_strided_slice %282 {offsets = [0, 4, 0], sizes = [8, 16, 8], strides = [1, 1, 1]} : vector<8x24x8xf32> to vector<8x16x8xf32>
    %284 = arith.addf %281, %283 : vector<8x16x8xf32>
    %285 = vector.shape_cast %279 : vector<192x8xf32> to vector<8x24x8xf32>
    %286 = vector.extract_strided_slice %285 {offsets = [0, 8, 0], sizes = [8, 16, 8], strides = [1, 1, 1]} : vector<8x24x8xf32> to vector<8x16x8xf32>
    %287 = arith.addf %284, %286 : vector<8x16x8xf32>
    %cst_196 = arith.constant 0.000000e+00 : f32
    %288 = vector.broadcast %cst_196 : f32 to vector<8x16x8xf32>
    %289 = arith.maximumf %287, %288 : vector<8x16x8xf32>
    %c0_197 = arith.constant 0 : index
    %c3_198 = arith.constant 3 : index
    %c0_199 = arith.constant 0 : index
    %c0_200 = arith.constant 0 : index
    %c0_201 = arith.constant 0 : index
    %290 = vector.load %arg5[%c0_197, %c3_198, %c0_199, %c0_200, %c0_201] : memref<1x4x8x16x8xf32, #tpu.memory_space<vmem>>, vector<1x1x8x16x8xf32>
    %291 = vector.shape_cast %290 : vector<1x1x8x16x8xf32> to vector<8x16x8xf32>
    %292 = vector.shape_cast %289 : vector<8x16x8xf32> to vector<1x1x8x16x8xf32>
    tpu.vector_store %arg5[%c0_197, %c3_198, %c0_199, %c0_200, %c0_201], %292 {strides = array<i32>} : memref<1x4x8x16x8xf32, #tpu.memory_space<vmem>>, vector<1x1x8x16x8xf32>,
    return
  }
  func.func @transform_0(%arg0: i32, %arg1: i32) -> (i32, i32, i32, i32) {
    %c0_i32 = arith.constant 0 : i32
    %c0_i32_0 = arith.constant 0 : i32
    %c0_i32_1 = arith.constant 0 : i32
    %c0_i32_2 = arith.constant 0 : i32
    return %arg0, %c0_i32, %c0_i32_0, %c0_i32_1 : i32, i32, i32, i32
  }
  func.func @transform_1(%arg0: i32, %arg1: i32) -> (i32, i32, i32) {
    %c0_i32 = arith.constant 0 : i32
    %c0_i32_0 = arith.constant 0 : i32
    %c0_i32_1 = arith.constant 0 : i32
    %c0_i32_2 = arith.constant 0 : i32
    return %c0_i32, %c0_i32_0, %c0_i32_1 : i32, i32, i32
  }
  func.func @transform_2(%arg0: i32, %arg1: i32) -> (i32, i32, i32) {
    %c0_i32 = arith.constant 0 : i32
    %c0_i32_0 = arith.constant 0 : i32
    %c0_i32_1 = arith.constant 0 : i32
    %c0_i32_2 = arith.constant 0 : i32
    return %c0_i32, %c0_i32_0, %c0_i32_1 : i32, i32, i32
  }
  func.func @transform_3(%arg0: i32, %arg1: i32) -> (i32, i32, i32, i32, i32) {
    %c0_i32 = arith.constant 0 : i32
    %c0_i32_0 = arith.constant 0 : i32
    %c0_i32_1 = arith.constant 0 : i32
    %c0_i32_2 = arith.constant 0 : i32
    return %arg0, %c0_i32, %arg1, %c0_i32_0, %c0_i32_1 : i32, i32, i32, i32, i32
  }
}

</mosaic_0001>

<bundles_post_ra>
// kernel: tpu_custom_call.1
= control target key start
LH: loop header
LB: loop body
LE: loop exit
PB: predicated region body
PF: predicated region fallthrough
CT: control target
= control target key end

     0   :  { %s8727_s12 = smov 0   ;;  %s8729_s13 = smov 0   ;;  %s11939_s0 = inlined_call_operand.vmem [shape: bf16[2,24,24,32], index: 0, kind: input, shape index: {}]   ;;  %s11940_s1 = inlined_call_operand.vmem [shape: bf16[36,32,8], index: 1, kind: input, shape index: {}]   ;;  %s11941_s2 = inlined_call_operand.vmem [shape: f32[4,1,8], index: 2, kind: input, shape index: {}]   ;;  %s11942_s3 = inlined_call_operand.vmem [shape: f32[2,4,16,16,8], index: 3, kind: output, shape index: {}]  }
   0x1   :  { %s8731_s14 = smov 0   ;;  %s8733_s15 = smov 0  }
   0x2   :  { %s8735_s16 = smov 0   ;;  %s8737_s17 = smov 0  }
   0x3   :  { %s8739_s18 = smov 0  }
   0x4 LB: > { %s22_s19 = sadd.s32 1, %s8697_s16  ;;  %s25_s20 = sadd.s32 1, %s8701_s17  ;;  %s8705_s18 = sphi %s8739_s18, %s13_s18   ;;  %s8701_s17 = sphi %s8737_s17, %s12351_s17   ;;  %s8697_s16 = sphi %s8735_s16, %s12350_s16   ;;  %s8693_s15 = sphi %s8733_s15, %s12349_s15   ;;  %s8689_s14 = sphi %s8731_s14, %s12348_s14   ;;  %s8685_s13 = sphi %s8729_s13, %s12347_s13   ;;  %s8681_s12 = sphi %s8727_s12, %s12346_s12  }
   0x5   : > { %p23_p0 = scmp.ge.s32.totalorder %s22_s19, 2  ;;  %s6560_s21 = sadd.s32 4294967295, %s8705_s18  }
   0x6   : > { %p112_p1 = scmp.ne.s32.totalorder %s8685_s13, %s8681_s12  ;;  %p113_p2 = scmp.eq.s32.totalorder %s6560_s21, 3 }
   0x7   : > { %s12353_s19 = smov (%p23_p0, %s22_s19), 0  ;;  %s12355_s20 = smov (!%p23_p0, %s25_s20), %s8701_s17 }
   0x8   : > { %s98_s22 = ssub.s32 %s8697_s16, %s12353_s19  ;;  %p27_p3 = scmp.ge.s32.totalorder %s12355_s20, 2 }
   0x9   : > { %p6564_p4 = scmp.ge.s32.totalorder %s8705_s18, 1  ;;  %p8773_p5 = por %p113_p2, %p112_p1 }
   0xa   : > { %p151_p6 = scmp.lt.s32.totalorder %s8705_s18, 5  ;;  %s12357_s20 = smov (%p27_p3, %s12355_s20), 0 }
   0xb   : > { %s97_s24 = ssub.s32 %s8701_s17, %s12357_s20  ;;  %s102_s26 = sadd.s32 1, %s8685_s13 }
   0xc   : > { %p152_p7 = pnand %p6564_p4, %p151_p6  ;;  %s99_s25 = sor.u32 %s98_s22, %s97_s24 }
   0xd   : > { %p100_p8 = scmp.eq.s32.totalorder %s99_s25, 0 }
   0xe   : > { %155 = sbr.rel (%p152_p7) target bundleno = 1918 (0x77e), region = 32 }
   0xf   : > { %s8784_s27 = scalar_select %p100_p8, %s8685_s13, %s102_s26  }
  0x13   : > { %v8375_v0 = vld [vmem:[%s11940_s1 + $0x18] sm:$0xff]  ;;  %v8373_v2 = vld [vmem:[%s11940_s1 + $0x8] sm:$0xff]  ;;  %p174_p9 = scmp.lt.s32.totalorder %s8693_s15, 1  ;;  %v8374_v4 = vld [vmem:[%s11940_s1 + $0x10] sm:$0xff]  ;;  %s6569_s29 = smul.u32 96, %s8689_s14  ;;  %vm295_vm0 = vcmask 261120  }
  0x14   : > { %v8391_v1 = vld [vmem:[%s11940_s1 + $0x38] sm:$0xff]  ;;  %v8393_v3 = vld [vmem:[%s11940_s1 + $0x48] sm:$0xff]  ;;  %338 = vmatpush.bf16.msra.mxu0 %v8375_v0  ;;  %v8390_v5 = vld [vmem:[%s11940_s1 + $0x30] sm:$0xff]  ;;  %658 = vmatpush.bf16.msra.mxu2 %v8373_v2  ;;  %vm1476_vm1 = vcmask 1046528   ;;  %s171_s21 = sand.u32 1, %s8681_s12   ;;  %vm1589_vm2 = vcmask 1045504  }
  0x15   : > { %577 = vmatpush.bf16.msra.mxu1 %v8391_v1  ;;  %v8372_v6 = vld [vmem:[%s11940_s1] sm:$0xff]  ;;  %s175_s25 = scalar_select %p174_p9, %s8693_s15, 1  ;;  %744 = vmatpush.bf16.msra.mxu3 %v8393_v3  ;;  %v8409_v8 = vld [vmem:[%s11940_s1 + $0x68] sm:$0xff]  ;;  %v8411_v9 = vld [vmem:[%s11940_s1 + $0x78] sm:$0xff]  ;;  %vm1702_vm3 = vcmask 64515   ;;  %vm1706_vm4 = vcmask 59392  }
  0x16   : > { %v8392_v7 = vld [vmem:[%s11940_s1 + $0x40] sm:$0xff]  ;;  %v8395_v10 = vld [vmem:[%s11940_s1 + $0x58] sm:$0xff]  ;;  %v8377_v11 = vld [vmem:[%s11940_s1 + $0x28] sm:$0xff]  ;;  %s6565_s22 = sshll.u32 %s171_s21, 9  ;;  %vm1704_vm5 = vcmask 64512   ;;  %vm3132_vm6 = vcmask 1043456  }
  0x17   : > { %s8578_s7 = smul.u32 288, %s175_s25  ;;  %v8408_v22 = vld [vmem:[%s11940_s1 + $0x60] sm:$0xff]  ;;  %v8410_v23 = vld [vmem:[%s11940_s1 + $0x70] sm:$0xff]  ;;  %s9623_s12 = scalar_lea.vmem [#allocation2], %s6565_s22  ;;  %vm3246_vm7 = vcmask 64514   ;;  %vm3249_vm8 = vcmask 58368  }
  0x18   : > { %339 = vmatpush.bf16.msra.mxu0 %v8374_v4  ;;  %659 = vmatpush.bf16.msra.mxu2 %v8372_v6  ;;  %v8394_v24 = vld [vmem:[%s11940_s1 + $0x50] sm:$0xff]  ;;  %v8376_v27 = vld [vmem:[%s11940_s1 + $0x20] sm:$0xff]  ;;  %v8445_v6 = vld [vmem:[%s11940_s1 + $0xc8] sm:$0xff]  ;;  %vm4563_vm9 = vcmask 1044480   ;;  %vm4676_vm10 = vcmask 1041408   ;;  %vm4790_vm11 = vcmask 64513  }
  0x19   : > { %578 = vmatpush.bf16.msra.mxu1 %v8390_v5  ;;  %s178_s24 = scalar_lea.vmem %s11939_s0, %s8578_s7  ;;  %745 = vmatpush.bf16.msra.mxu3 %v8392_v7  ;;  %v8963_v34 = vld [vmem:[%s11941_s2] ss:$0 sm:$0xff]  ;;  %vm4793_vm12 = vcmask 57344   ;;  %s8356_s10 = sshll.u32 (%p8773_p5), %s8693_s15, 7 }
  0x1a   : > { %s8828_s26 = scalar_lea.vmem %s178_s24, %s6569_s29 }
  0x1b   : > { %v8831_v12 = vld [vmem:[%s8828_s26 + $0x24] sm:$0xff]  ;;  %v8834_v13 = vld [vmem:[%s8828_s26 + $0x30] sm:$0xff]  ;;  %v8848_v15 = vld [vmem:[%s8828_s26 + $0x38] sm:$0xff] }
  0x1c   : > { %1145 = vmatpush.bf16.msrb.mxu2 %v8409_v8  ;;  %854 = vmatpush.bf16.msrb.mxu0 %v8395_v10  ;;  %v8845_v14 = vld [vmem:[%s8828_s26 + $0x2c] sm:$0xff]  ;;  %v8859_v16 = vld [vmem:[%s8828_s26 + $0x34] sm:$0xff]  ;;  %v8862_v17 = vld [vmem:[%s8828_s26 + $0x40] sm:$0xff] }
  0x1d   : > { %1255 = vmatpush.bf16.msrb.mxu3 %v8411_v9  ;;  %935 = vmatpush.bf16.msrb.mxu1 %v8377_v11  ;;  %v8873_v18 = vld [vmem:[%s8828_s26 + $0x3c] sm:$0xff]  ;;  %v8876_v19 = vld [vmem:[%s8828_s26 + $0x48] sm:$0xff]  ;;  %v8890_v21 = vld [vmem:[%s8828_s26 + $0x50] sm:$0xff] }
  0x1e   : > { %6654 = vmatmul.msk.bf16.vlgmr.msra.gmra.mxu0 %vm295_vm0, %v8831_v12  ;;  %6756 = vmatmul.msk.bf16.vlgmr.msra.gmra.mxu1 %vm295_vm0, %v8834_v13  ;;  %v8887_v20 = vld [vmem:[%s8828_s26 + $0x44] sm:$0xff]  ;;  %v8910_v25 = vld [vmem:[%s8828_s26 + $0x4c] sm:$0xff]  ;;  %v8913_v26 = vld [vmem:[%s8828_s26 + $0x58] sm:$0xff] }
  0x1f   : > { %6776 = vmatmul.msk.bf16.vlgmr.msra.gmra.mxu2 %vm295_vm0, %v8831_v12  ;;  %6800 = vmatmul.msk.bf16.vlgmr.msra.gmra.mxu3 %vm295_vm0, %v8834_v13  ;;  %v8927_v28 = vld [vmem:[%s8828_s26 + $0x54] sm:$0xff]  ;;  %v8930_v29 = vld [vmem:[%s8828_s26 + $0x60] sm:$0xff]  ;;  %v8944_v31 = vld [vmem:[%s8828_s26 + $0x68] sm:$0xff] }
  0x20   : > { %1146 = vmatpush.bf16.msrb.mxu2 %v8408_v22  ;;  %855 = vmatpush.bf16.msrb.mxu0 %v8394_v24  ;;  %v8941_v30 = vld [vmem:[%s8828_s26 + $0x5c] sm:$0xff]  ;;  %v8955_v32 = vld [vmem:[%s8828_s26 + $0x64] sm:$0xff]  ;;  %v8958_v33 = vld [vmem:[%s8828_s26 + $0x70] sm:$0xff] }
  0x21   : > { %1256 = vmatpush.bf16.msrb.mxu3 %v8410_v23  ;;  %936 = vmatpush.bf16.msrb.mxu1 %v8376_v27  ;;  %v8980_v47 = vld [vmem:[%s8828_s26 + $0x6c] sm:$0xff]  ;;  %v8983_v48 = vld [vmem:[%s8828_s26 + $0x78] sm:$0xff]  ;;  %v9007_v0 = vld [vmem:[%s8828_s26 + $0x80] sm:$0xff] }
  0x22   : > { %v9004_v63 = vld [vmem:[%s8828_s26 + $0x74] sm:$0xff]  ;;  %v8413_v24 = vld [vmem:[%s11940_s1 + $0x88] sm:$0xff] }
  0x23   : > { %v8427_v23 = vld [vmem:[%s11940_s1 + $0x98] sm:$0xff] }
  0x24   : > { %2121 = vmatpush.bf16.msra.mxu2 %v8445_v6  ;;  %1365 = vmatpush.bf16.msra.mxu0 %v8413_v24  ;;  %v9068_v6 = vld [vmem:[%s8828_s26 + $0x3c] sm:$0xff] }
  0x25   : > { %2202 = vmatpush.bf16.msra.mxu3 %v8427_v23 }
  0x2e   : > { %6655 = vmatmul.msk.bf16.gmra.mxu0 %vm295_vm0, %v8845_v14  ;;  %6757 = vmatmul.msk.bf16.gmra.mxu1 %vm295_vm0, %v8848_v15 }
  0x2f   : > { %6777 = vmatmul.msk.bf16.gmra.mxu2 %vm295_vm0, %v8845_v14  ;;  %6801 = vmatmul.msk.bf16.gmra.mxu3 %vm295_vm0, %v8848_v15 }
  0x3e   : > { %6656 = vmatmul.msk.bf16.gmra.mxu0 %vm295_vm0, %v8859_v16  ;;  %6758 = vmatmul.msk.bf16.gmra.mxu1 %vm295_vm0, %v8862_v17 }
  0x3f   : > { %6778 = vmatmul.msk.bf16.gmra.mxu2 %vm295_vm0, %v8859_v16  ;;  %6802 = vmatmul.msk.bf16.gmra.mxu3 %vm295_vm0, %v8862_v17 }
  0x4e   : > { %6657 = vmatmul.msk.bf16.gmra.mxu0 %vm295_vm0, %v8873_v18  ;;  %6759 = vmatmul.msk.bf16.gmra.mxu1 %vm295_vm0, %v8876_v19 }
  0x4f   : > { %6779 = vmatmul.msk.bf16.gmra.mxu2 %vm295_vm0, %v8873_v18  ;;  %6803 = vmatmul.msk.bf16.gmra.mxu3 %vm295_vm0, %v8876_v19 }
  0x5e   : > { %6658 = vmatmul.msk.bf16.gmra.mxu0 %vm295_vm0, %v8887_v20  ;;  %6760 = vmatmul.msk.bf16.gmra.mxu1 %vm295_vm0, %v8890_v21 }
  0x5f   : > { %6780 = vmatmul.msk.bf16.gmra.mxu2 %vm295_vm0, %v8887_v20  ;;  %6804 = vmatmul.msk.bf16.gmra.mxu3 %vm295_vm0, %v8890_v21 }
  0x6e   : > { %6659 = vmatmul.msk.bf16.gmra.mxu0 %vm295_vm0, %v8910_v25  ;;  %6761 = vmatmul.msk.bf16.gmra.mxu1 %vm295_vm0, %v8913_v26 }
  0x6f   : > { %6781 = vmatmul.msk.bf16.gmra.mxu2 %vm295_vm0, %v8910_v25  ;;  %6805 = vmatmul.msk.bf16.gmra.mxu3 %vm295_vm0, %v8913_v26 }
  0x7e   : > { %6660 = vmatmul.msk.bf16.gmra.mxu0 %vm295_vm0, %v8927_v28  ;;  %6762 = vmatmul.msk.bf16.gmra.mxu1 %vm295_vm0, %v8930_v29 }
  0x7f   : > { %6782 = vmatmul.msk.bf16.gmra.mxu2 %vm295_vm0, %v8927_v28  ;;  %6806 = vmatmul.msk.bf16.gmra.mxu3 %vm295_vm0, %v8930_v29 }
  0x8e   : > { %6661 = vmatmul.msk.bf16.gmra.mxu0 %vm295_vm0, %v8941_v30  ;;  %6763 = vmatmul.msk.bf16.gmra.mxu1 %vm295_vm0, %v8944_v31 }
  0x8f   : > { %6783 = vmatmul.msk.bf16.gmra.mxu2 %vm295_vm0, %v8941_v30  ;;  %6807 = vmatmul.msk.bf16.gmra.mxu3 %vm295_vm0, %v8944_v31 }
  0x9b   : > { %v341_v35 = vpop.f32.mrf.mxu0  ;;  %v580_v36 = vpop.f32.mrf.mxu1 }
  0x9c   : > { %v401_v37 = vadd.f32 %v8963_v34, %v341_v35 }
  0x9e   : > { %6662 = vmatmul.msk.bf16.gmra.mxu0 %vm295_vm0, %v8955_v32  ;;  %6764 = vmatmul.msk.bf16.gmra.mxu1 %vm295_vm0, %v8958_v33 }
  0x9f   : > { %6784 = vmatmul.msk.bf16.gmra.mxu2 %vm295_vm0, %v8955_v32  ;;  %6808 = vmatmul.msk.bf16.gmra.mxu3 %vm295_vm0, %v8958_v33 }
  0xa2   : > { %v661_v38 = vpop.f32.mrf.mxu2  ;;  %v747_v39 = vpop.f32.mrf.mxu3 }
  0xa3   : > { %v8974_v40 = vadd.f32 %v661_v38, %v580_v36  ;;  %v8976_v41 = vadd.f32 %v747_v39, %v401_v37  ;;  %v343_v42 = vpop.f32.mrf.mxu0  ;;  %v582_v43 = vpop.f32.mrf.mxu1  ;;  %v9037_v37 = vld [vmem:[%s8828_s26 + $0x7c] sm:$0xff]  ;;  %v9040_v38 = vld [vmem:[%s8828_s26 + $0x88] sm:$0xff] }
  0xa4   : > { %v402_v44 = vadd.f32 %v8963_v34, %v343_v42 }
  0xaa   : > { %v663_v45 = vpop.f32.mrf.mxu2  ;;  %v749_v46 = vpop.f32.mrf.mxu3 }
  0xab   : > { %v8985_v49 = vadd.f32 %v663_v45, %v582_v43  ;;  %v8987_v50 = vadd.f32 %v749_v46, %v402_v44  ;;  %v346_v51 = vpop.f32.mrf.mxu0  ;;  %v585_v52 = vpop.f32.mrf.mxu1  ;;  %v8429_v46 = vld [vmem:[%s11940_s1 + $0xa8] sm:$0xff] }
  0xac   : > { %v403_v53 = vadd.f32 %v8963_v34, %v346_v51  ;;  %1886 = vmatpush.bf16.msra.mxu1 %v8429_v46  ;;  %v9089_v46 = vld [vmem:[%s8828_s26 + $0x44] sm:$0xff] }
  0xae   : > { %6663 = vmatmul.msk.bf16.gmra.mxu0 %vm295_vm0, %v8980_v47  ;;  %6765 = vmatmul.msk.bf16.gmra.mxu1 %vm295_vm0, %v8983_v48 }
  0xaf   : > { %6785 = vmatmul.msk.bf16.gmra.mxu2 %vm295_vm0, %v8980_v47  ;;  %6809 = vmatmul.msk.bf16.gmra.mxu3 %vm295_vm0, %v8983_v48 }
  0xb2   : > { %v666_v54 = vpop.f32.mrf.mxu2  ;;  %v752_v55 = vpop.f32.mrf.mxu3 }
  0xb3   : > { %v8998_v56 = vadd.f32 %v666_v54, %v585_v52  ;;  %v9000_v57 = vadd.f32 %v752_v55, %v403_v53  ;;  %v348_v58 = vpop.f32.mrf.mxu0  ;;  %v587_v59 = vpop.f32.mrf.mxu1 }
  0xb4   : > { %v404_v60 = vadd.f32 %v8963_v34, %v348_v58 }
  0xba   : > { %v668_v61 = vpop.f32.mrf.mxu2  ;;  %v754_v62 = vpop.f32.mrf.mxu3 }
  0xbb   : > { %v9009_v1 = vadd.f32 %v668_v61, %v587_v59  ;;  %v9011_v2 = vadd.f32 %v754_v62, %v404_v60  ;;  %v351_v3 = vpop.f32.mrf.mxu0  ;;  %v590_v4 = vpop.f32.mrf.mxu1 }
  0xbc   : > { %v405_v5 = vadd.f32 %v8963_v34, %v351_v3 }
  0xbe   : > { %6664 = vmatmul.msk.bf16.gmra.mxu0 %vm295_vm0, %v9004_v63  ;;  %6766 = vmatmul.msk.bf16.gmra.mxu1 %vm295_vm0, %v9007_v0 }
  0xbf   : > { %6786 = vmatmul.msk.bf16.gmra.mxu2 %vm295_vm0, %v9004_v63  ;;  %6810 = vmatmul.msk.bf16.gmra.mxu3 %vm295_vm0, %v9007_v0 }
  0xc2   : > { %v671_v7 = vpop.f32.mrf.mxu2  ;;  %v757_v8 = vpop.f32.mrf.mxu3 }
  0xc3   : > { %v9025_v9 = vadd.f32 %v671_v7, %v590_v4  ;;  %v9027_v10 = vadd.f32 %v757_v8, %v405_v5  ;;  %v353_v11 = vpop.f32.mrf.mxu0  ;;  %v592_v22 = vpop.f32.mrf.mxu1 }
  0xc4   : > { %v406_v27 = vadd.f32 %v8963_v34, %v353_v11 }
  0xca   : > { %v673_v35 = vpop.f32.mrf.mxu2  ;;  %v759_v36 = vpop.f32.mrf.mxu3 }
  0xcb   : > { %v9042_v39 = vadd.f32 %v673_v35, %v592_v22  ;;  %v9044_v42 = vadd.f32 %v759_v36, %v406_v27  ;;  %v356_v43 = vpop.f32.mrf.mxu0  ;;  %v595_v44 = vpop.f32.mrf.mxu1 }
  0xcc   : > { %v407_v45 = vadd.f32 %v8963_v34, %v356_v43 }
  0xce   : > { %6665 = vmatmul.msk.bf16.gmra.mxu0 %vm295_vm0, %v9037_v37  ;;  %6767 = vmatmul.msk.bf16.gmra.mxu1 %vm295_vm0, %v9040_v38 }
  0xcf   : > { %6787 = vmatmul.msk.bf16.gmra.mxu2 %vm295_vm0, %v9037_v37  ;;  %6811 = vmatmul.msk.bf16.gmra.mxu3 %vm295_vm0, %v9040_v38 }
  0xd2   : > { %v676_v51 = vpop.f32.mrf.mxu2  ;;  %v762_v52 = vpop.f32.mrf.mxu3 }
  0xd3   : > { %v9058_v53 = vadd.f32 %v676_v51, %v595_v44  ;;  %v9060_v54 = vadd.f32 %v762_v52, %v407_v45  ;;  %v358_v55 = vpop.f32.mrf.mxu0  ;;  %v597_v58 = vpop.f32.mrf.mxu1 }
  0xd4   : > { %v408_v59 = vadd.f32 %v8963_v34, %v358_v55 }
  0xda   : > { %v678_v60 = vpop.f32.mrf.mxu2  ;;  %v764_v61 = vpop.f32.mrf.mxu3 }
  0xdb   : > { %v9063_v62 = vadd.f32 %v678_v60, %v597_v58  ;;  %v9065_v3 = vadd.f32 %v764_v61, %v408_v59  ;;  %v361_v4 = vpop.f32.mrf.mxu0  ;;  %v600_v5 = vpop.f32.mrf.mxu1 }
  0xdc   : > { %v409_v7 = vadd.f32 %v8963_v34, %v361_v4 }
  0xde   : > { %6824 = vmatmul.msk.bf16.vlgmr.msrb.gmra.mxu0 %vm295_vm0, %v8834_v13  ;;  %6844 = vmatmul.msk.bf16.vlgmr.msrb.gmra.mxu1 %vm295_vm0, %v8831_v12 }
  0xdf   : > { %6942 = vmatmul.msk.bf16.vlgmr.msrb.gmra.mxu2 %vm295_vm0, %v9068_v6  ;;  %6966 = vmatmul.msk.bf16.vlgmr.msrb.gmra.mxu3 %vm295_vm0, %v9068_v6 }
  0xe2   : > { %v681_v8 = vpop.f32.mrf.mxu2  ;;  %v767_v11 = vpop.f32.mrf.mxu3 }
  0xe3   : > { %v9079_v22 = vadd.f32 %v681_v8, %v600_v5  ;;  %v9081_v23 = vadd.f32 %v767_v11, %v409_v7  ;;  %v363_v24 = vpop.f32.mrf.mxu0  ;;  %v602_v13 = vpop.f32.mrf.mxu1 }
  0xe4   : > { %v410_v27 = vadd.f32 %v8963_v34, %v363_v24  ;;  %v9110_v24 = vld [vmem:[%s8828_s26 + $0x4c] sm:$0xff] }
  0xea   : > { %v683_v12 = vpop.f32.mrf.mxu2  ;;  %v769_v35 = vpop.f32.mrf.mxu3 }
  0xeb   : > { %v9084_v36 = vadd.f32 %v683_v12, %v602_v13  ;;  %v9086_v43 = vadd.f32 %v769_v35, %v410_v27  ;;  %v366_v44 = vpop.f32.mrf.mxu0  ;;  %v605_v45 = vpop.f32.mrf.mxu1 }
  0xec   : > { %v411_v51 = vadd.f32 %v8963_v34, %v366_v44 }
  0xee   : > { %6825 = vmatmul.msk.bf16.gmra.mxu0 %vm295_vm0, %v8848_v15  ;;  %6845 = vmatmul.msk.bf16.gmra.mxu1 %vm295_vm0, %v8845_v14 }
  0xef   : > { %6943 = vmatmul.msk.bf16.gmra.mxu2 %vm295_vm0, %v9089_v46  ;;  %6967 = vmatmul.msk.bf16.gmra.mxu3 %vm295_vm0, %v9089_v46 }
  0xf2   : > { %v686_v52 = vpop.f32.mrf.mxu2  ;;  %v772_v55 = vpop.f32.mrf.mxu3 }
  0xf3   : > { %v9100_v58 = vadd.f32 %v686_v52, %v605_v45  ;;  %v9102_v59 = vadd.f32 %v772_v55, %v411_v51  ;;  %v368_v60 = vpop.f32.mrf.mxu0  ;;  %v607_v15 = vpop.f32.mrf.mxu1 }
  0xf4   : > { %v412_v61 = vadd.f32 %v8963_v34, %v368_v60 }
  0xfa   : > { %v688_v14 = vpop.f32.mrf.mxu2  ;;  %v774_v4 = vpop.f32.mrf.mxu3 }
  0xfb   : > { %v9105_v5 = vadd.f32 %v688_v14, %v607_v15  ;;  %v9107_v7 = vadd.f32 %v774_v4, %v412_v61  ;;  %v371_v8 = vpop.f32.mrf.mxu0  ;;  %v610_v11 = vpop.f32.mrf.mxu1  ;;  %v9131_v14 = vld [vmem:[%s8828_s26 + $0x54] sm:$0xff] }
  0xfc   : > { %v413_v13 = vadd.f32 %v8963_v34, %v371_v8 }
  0xfe   : > { %6826 = vmatmul.msk.bf16.gmra.mxu0 %vm295_vm0, %v8862_v17  ;;  %6846 = vmatmul.msk.bf16.gmra.mxu1 %vm295_vm0, %v8859_v16 }
  0xff   : > { %6944 = vmatmul.msk.bf16.gmra.mxu2 %vm295_vm0, %v9110_v24  ;;  %6968 = vmatmul.msk.bf16.gmra.mxu3 %vm295_vm0, %v9110_v24 }
 0x102   : > { %v691_v27 = vpop.f32.mrf.mxu2  ;;  %v777_v12 = vpop.f32.mrf.mxu3 }
 0x103   : > { %v9121_v35 = vadd.f32 %v691_v27, %v610_v11  ;;  %v9123_v44 = vadd.f32 %v777_v12, %v413_v13  ;;  %v373_v45 = vpop.f32.mrf.mxu0  ;;  %v612_v17 = vpop.f32.mrf.mxu1 }
 0x104   : > { %v414_v51 = vadd.f32 %v8963_v34, %v373_v45 }
 0x10a   : > { %v693_v16 = vpop.f32.mrf.mxu2  ;;  %v779_v52 = vpop.f32.mrf.mxu3 }
 0x10b   : > { %v9126_v55 = vadd.f32 %v693_v16, %v612_v17  ;;  %v9128_v60 = vadd.f32 %v779_v52, %v414_v51  ;;  %v376_v15 = vpop.f32.mrf.mxu0  ;;  %v615_v61 = vpop.f32.mrf.mxu1 }
 0x10c   : > { %v415_v4 = vadd.f32 %v8963_v34, %v376_v15 }
 0x10d   : > { %12016 = vst [vmem:[#allocation3_spill] sm:$0xff] %v9128_v60  ;;  %v9152_v60 = vld [vmem:[%s8828_s26 + $0x5c] sm:$0xff] }
 0x10e   : > { %6827 = vmatmul.msk.bf16.gmra.mxu0 %vm295_vm0, %v8876_v19  ;;  %6847 = vmatmul.msk.bf16.gmra.mxu1 %vm295_vm0, %v8873_v18  ;;  %12018 = vst [vmem:[#allocation5_spill] sm:$0xff] %v9152_v60 }
 0x10f   : > { %6945 = vmatmul.msk.bf16.gmra.mxu2 %vm295_vm0, %v9131_v14  ;;  %6969 = vmatmul.msk.bf16.gmra.mxu3 %vm295_vm0, %v9131_v14 }
 0x112   : > { %v696_v8 = vpop.f32.mrf.mxu2  ;;  %v782_v11 = vpop.f32.mrf.mxu3 }
 0x113   : > { %v9142_v13 = vadd.f32 %v696_v8, %v615_v61  ;;  %v9144_v27 = vadd.f32 %v782_v11, %v415_v4  ;;  %v378_v12 = vpop.f32.mrf.mxu0  ;;  %v617_v19 = vpop.f32.mrf.mxu1  ;;  %v8444_v4 = vld [vmem:[%s11940_s1 + $0xc0] sm:$0xff] }
 0x114   : > { %v416_v45 = vadd.f32 %v8963_v34, %v378_v12  ;;  %2122 = vmatpush.bf16.msra.mxu2 %v8444_v4 }
 0x11a   : > { %v698_v18 = vpop.f32.mrf.mxu2  ;;  %v784_v17 = vpop.f32.mrf.mxu3 }
 0x11b   : > { %v9147_v51 = vadd.f32 %v698_v18, %v617_v19  ;;  %v9149_v16 = vadd.f32 %v784_v17, %v416_v45  ;;  %v381_v52 = vpop.f32.mrf.mxu0  ;;  %v620_v15 = vpop.f32.mrf.mxu1  ;;  %v8426_v45 = vld [vmem:[%s11940_s1 + $0x90] sm:$0xff]  ;;  %v8412_v18 = vld [vmem:[%s11940_s1 + $0x80] sm:$0xff] }
 0x11c   : > { %v417_v61 = vadd.f32 %v8963_v34, %v381_v52  ;;  %2203 = vmatpush.bf16.msra.mxu3 %v8426_v45  ;;  %1366 = vmatpush.bf16.msra.mxu0 %v8412_v18 }
 0x11d   : > { %12017 = vst [vmem:[#allocation4_spill] sm:$0xff] %v9149_v16  ;;  %v9206_v16 = vld [vmem:[%s8828_s26 + $0x6c] sm:$0xff] }
 0x11e   : > { %6828 = vmatmul.msk.bf16.gmra.mxu0 %vm295_vm0, %v8890_v21  ;;  %6848 = vmatmul.msk.bf16.gmra.mxu1 %vm295_vm0, %v8887_v20 }
 0x11f   : > { %6946 = vmatmul.msk.bf16.gmra.mxu2 %vm295_vm0, %v9152_v60  ;;  %6970 = vmatmul.msk.bf16.gmra.mxu3 %vm295_vm0, %v9152_v60 }
 0x122   : > { %v701_v8 = vpop.f32.mrf.mxu2  ;;  %v787_v11 = vpop.f32.mrf.mxu3 }
 0x123   : > { %v9166_v21 = vadd.f32 %v701_v8, %v620_v15  ;;  %v9168_v12 = vadd.f32 %v787_v11, %v417_v61  ;;  %v383_v20 = vpop.f32.mrf.mxu0  ;;  %v622_v19 = vpop.f32.mrf.mxu1 }
 0x124   : > { %v418_v17 = vadd.f32 %v8963_v34, %v383_v20  ;;  %v8428_v20 = vld [vmem:[%s11940_s1 + $0xa0] sm:$0xff] }
 0x125   : > { %12019 = vst [vmem:[#allocation6_spill] sm:$0xff] %v9166_v21  ;;  %1887 = vmatpush.bf16.msra.mxu1 %v8428_v20 }
 0x126   : > { %12020 = vst [vmem:[#allocation7_spill] sm:$0xff] %v9168_v12  ;;  %v9182_v12 = vld [vmem:[%s8828_s26 + $0x64] sm:$0xff] }
 0x127   : > { %12023 = vst [vmem:[#allocation10_spill] sm:$0xff] %v9182_v12 }
 0x12a   : > { %v703_v52 = vpop.f32.mrf.mxu2  ;;  %v789_v4 = vpop.f32.mrf.mxu3 }
 0x12b   : > { %v9177_v15 = vadd.f32 %v703_v52, %v622_v19  ;;  %v9179_v61 = vadd.f32 %v789_v4, %v418_v17  ;;  %v386_v8 = vpop.f32.mrf.mxu0  ;;  %v625_v11 = vpop.f32.mrf.mxu1 }
 0x12c   : > { %v419_v45 = vadd.f32 %v8963_v34, %v386_v8 }
 0x12d   : > { %12021 = vst [vmem:[#allocation8_spill] sm:$0xff] %v9177_v15 }
 0x12e   : > { %12022 = vst [vmem:[#allocation9_spill] sm:$0xff] %v9179_v61  ;;  %6829 = vmatmul.msk.bf16.gmra.mxu0 %vm295_vm0, %v8913_v26  ;;  %6849 = vmatmul.msk.bf16.gmra.mxu1 %vm295_vm0, %v8910_v25 }
 0x12f   : > { %6947 = vmatmul.msk.bf16.gmra.mxu2 %vm295_vm0, %v9182_v12  ;;  %6971 = vmatmul.msk.bf16.gmra.mxu3 %vm295_vm0, %v9182_v12 }
 0x132   : > { %v706_v19 = vpop.f32.mrf.mxu2  ;;  %v792_v18 = vpop.f32.mrf.mxu3 }
 0x133   : > { %v9196_v26 = vadd.f32 %v706_v19, %v625_v11  ;;  %v9198_v17 = vadd.f32 %v792_v18, %v419_v45  ;;  %v388_v25 = vpop.f32.mrf.mxu0  ;;  %v627_v52 = vpop.f32.mrf.mxu1 }
 0x134   : > { %v420_v4 = vadd.f32 %v8963_v34, %v388_v25 }
 0x13a   : > { %v708_v8 = vpop.f32.mrf.mxu2  ;;  %v794_v61 = vpop.f32.mrf.mxu3 }
 0x13b   : > { %v9201_v15 = vadd.f32 %v708_v8, %v627_v52  ;;  %v9203_v12 = vadd.f32 %v794_v61, %v420_v4  ;;  %v391_v21 = vpop.f32.mrf.mxu0  ;;  %v630_v60 = vpop.f32.mrf.mxu1 }
 0x13c   : > { %v421_v11 = vadd.f32 %v8963_v34, %v391_v21 }
 0x13d   : > { %12024 = vst [vmem:[#allocation11_spill] sm:$0xff] %v9201_v15  ;;  %v9227_v15 = vld [vmem:[%s8828_s26 + $0x74] sm:$0xff] }
 0x13e   : > { %12025 = vst [vmem:[#allocation12_spill] sm:$0xff] %v9203_v12  ;;  %6830 = vmatmul.msk.bf16.gmra.mxu0 %vm295_vm0, %v8930_v29  ;;  %6850 = vmatmul.msk.bf16.gmra.mxu1 %vm295_vm0, %v8927_v28 }
 0x13f   : > { %6948 = vmatmul.msk.bf16.gmra.mxu2 %vm295_vm0, %v9206_v16  ;;  %6972 = vmatmul.msk.bf16.gmra.mxu3 %vm295_vm0, %v9206_v16  ;;  %12029 = vst [vmem:[#allocation16_spill] sm:$0xff] %v9227_v15 }
 0x142   : > { %v711_v61 = vpop.f32.mrf.mxu2  ;;  %v797_v45 = vpop.f32.mrf.mxu3 }
 0x143   : > { %v9217_v20 = vadd.f32 %v711_v61, %v630_v60  ;;  %v9219_v19 = vadd.f32 %v797_v45, %v421_v11  ;;  %v393_v18 = vpop.f32.mrf.mxu0  ;;  %v632_v29 = vpop.f32.mrf.mxu1 }
 0x144   : > { %v422_v25 = vadd.f32 %v8963_v34, %v393_v18 }
 0x145   : > { %12026 = vst [vmem:[#allocation13_spill] sm:$0xff] %v9219_v19  ;;  %v9248_v19 = vld [vmem:[%s8828_s26 + $0x7c] sm:$0xff] }
 0x14a   : > { %v713_v28 = vpop.f32.mrf.mxu2  ;;  %v799_v52 = vpop.f32.mrf.mxu3 }
 0x14b   : > { %v9222_v21 = vadd.f32 %v713_v28, %v632_v29  ;;  %v9224_v4 = vadd.f32 %v799_v52, %v422_v25  ;;  %v396_v8 = vpop.f32.mrf.mxu0  ;;  %v635_v12 = vpop.f32.mrf.mxu1 }
 0x14c   : > { %v423_v60 = vadd.f32 %v8963_v34, %v396_v8 }
 0x14d   : > { %12027 = vst [vmem:[#allocation14_spill] sm:$0xff] %v9222_v21 }
 0x14e   : > { %12028 = vst [vmem:[#allocation15_spill] sm:$0xff] %v9224_v4  ;;  %6831 = vmatmul.msk.bf16.gmra.mxu0 %vm295_vm0, %v8944_v31  ;;  %6851 = vmatmul.msk.bf16.gmra.mxu1 %vm295_vm0, %v8941_v30 }
 0x14f   : > { %6949 = vmatmul.msk.bf16.gmra.mxu2 %vm295_vm0, %v9227_v15  ;;  %6973 = vmatmul.msk.bf16.gmra.mxu3 %vm295_vm0, %v9227_v15 }
 0x152   : > { %v716_v11 = vpop.f32.mrf.mxu2  ;;  %v802_v61 = vpop.f32.mrf.mxu3 }
 0x153   : > { %v9238_v45 = vadd.f32 %v716_v11, %v635_v12  ;;  %v9240_v18 = vadd.f32 %v802_v61, %v423_v60  ;;  %v398_v29 = vpop.f32.mrf.mxu0  ;;  %v637_v31 = vpop.f32.mrf.mxu1 }
 0x154   : > { %v424_v25 = vadd.f32 %v8963_v34, %v398_v29 }
 0x15a   : > { %v718_v30 = vpop.f32.mrf.mxu2  ;;  %v804_v28 = vpop.f32.mrf.mxu3 }
 0x15b   : > { %v9243_v52 = vadd.f32 %v718_v30, %v637_v31  ;;  %v9245_v8 = vadd.f32 %v804_v28, %v424_v25  ;;  %v857_v4 = vpop.f32.mrf.mxu0  ;;  %v938_v21 = vpop.f32.mrf.mxu1  ;;  %v9267_v28 = vld [vmem:[%s8828_s26 + $0x84] sm:$0xff] }
 0x15c   : > { %v9250_v15 = vadd.f32 %v938_v21, %v857_v4 }
 0x15e   : > { %12030 = vst [vmem:[#allocation17_spill] sm:$0xff] %v9250_v15  ;;  %6832 = vmatmul.msk.bf16.gmra.mxu0 %vm295_vm0, %v8958_v33  ;;  %6852 = vmatmul.msk.bf16.gmra.mxu1 %vm295_vm0, %v8955_v32 }
 0x15f   : > { %6950 = vmatmul.msk.bf16.gmra.mxu2 %vm295_vm0, %v9248_v19  ;;  %6974 = vmatmul.msk.bf16.gmra.mxu3 %vm295_vm0, %v9248_v19 }
 0x162   : > { %v1148_v34 = vpop.f32.mrf.mxu2  ;;  %v1258_v12 = vpop.f32.mrf.mxu3 }
 0x163   : > { %v1208_v60 = vadd.f32 %v1148_v34, %v8974_v40  ;;  %v1318_v21 = vadd.f32 %v1258_v12, %v8976_v41  ;;  %v859_v4 = vpop.f32.mrf.mxu0  ;;  %v940_v11 = vpop.f32.mrf.mxu1 }
 0x164   : > { %v9262_v61 = vadd.f32 %v940_v11, %v859_v4 }
 0x165   : > { %v1477_v40 = vrot.slane %v1318_v21, 1 }
 0x16a   : > { %v1150_v33 = vpop.f32.mrf.mxu2  ;;  %v1260_v29 = vpop.f32.mrf.mxu3 }
 0x16b   : > { %v1209_v32 = vadd.f32 %v1150_v33, %v8985_v49  ;;  %v1319_v31 = vadd.f32 %v1260_v29, %v8987_v50  ;;  %v862_v25 = vpop.f32.mrf.mxu0  ;;  %v943_v30 = vpop.f32.mrf.mxu1 }
 0x16c   : > { %v9269_v15 = vadd.f32 %v943_v30, %v862_v25 }
 0x16d   : > { %v1478_v34 = vrot.slane %v1319_v31, 1 }
 0x16e   : > { %6833 = vmatmul.msk.bf16.gmra.mxu0 %vm295_vm0, %v8983_v48  ;;  %6853 = vmatmul.msk.bf16.gmra.mxu1 %vm295_vm0, %v8980_v47 }
 0x16f   : > { %v1479_v41 = vsel %vm1476_vm1, %v1477_v40, %v1478_v34  ;;  %6951 = vmatmul.msk.bf16.gmra.mxu2 %vm295_vm0, %v9267_v28  ;;  %6975 = vmatmul.msk.bf16.gmra.mxu3 %vm295_vm0, %v9267_v28 }
 0x170   : > { %v9280_v49 = vadd.f32 %v1479_v41, %v1208_v60 }
 0x172   : > { %v1153_v50 = vpop.f32.mrf.mxu2  ;;  %v1263_v12 = vpop.f32.mrf.mxu3 }
 0x173   : > { %v1210_v21 = vadd.f32 %v1153_v50, %v8998_v56  ;;  %v1320_v48 = vadd.f32 %v1263_v12, %v9000_v57  ;;  %v864_v4 = vpop.f32.mrf.mxu0  ;;  %v945_v11 = vpop.f32.mrf.mxu1  ;;  %v9294_v57 = vld [vmem:[%s8828_s26 + $0x8c] sm:$0xff] }
 0x174   : > { %v9284_v47 = vadd.f32 %v945_v11, %v864_v4 }
 0x175   : > { %v1480_v33 = vrot.slane %v1320_v48, 1 }
 0x177   : > { %v1481_v29 = vsel %vm1476_vm1, %v1478_v34, %v1480_v33  ;;  %v9287_v31 = vadd.f32 %v1480_v33, %v1210_v21 }
 0x178   : > { %v9289_v25 = vadd.f32 %v1481_v29, %v1209_v32 }
 0x17a   : > { %v1155_v60 = vpop.f32.mrf.mxu2  ;;  %v1265_v30 = vpop.f32.mrf.mxu3 }
 0x17b   : > { %v1211_v40 = vadd.f32 %v1155_v60, %v9009_v1  ;;  %v1321_v41 = vadd.f32 %v1265_v30, %v9011_v2  ;;  %v867_v56 = vpop.f32.mrf.mxu0  ;;  %v948_v50 = vpop.f32.mrf.mxu1  ;;  %v8431_v1 = vld [vmem:[%s11940_s1 + $0xb8] sm:$0xff] }
 0x17c   : > { %v9296_v12 = vadd.f32 %v948_v50, %v867_v56  ;;  %2479 = vmatpush.bf16.msrb.mxu2 %v8431_v1  ;;  %v8463_v60 = vld [vmem:[%s11940_s1 + $0xf8] sm:$0xff] }
 0x17d   : > { %v1482_v4 = vrot.slane %v1321_v41, 1  ;;  %2689 = vmatpush.bf16.msrb.mxu3 %v8463_v60 }
 0x17e   : > { %6834 = vmatmul.msk.bf16.gmra.mxu0 %vm295_vm0, %v9007_v0  ;;  %6854 = vmatmul.msk.bf16.gmra.mxu1 %vm295_vm0, %v9004_v63 }
 0x17f   : > { %6952 = vmatmul.msk.bf16.gmra.mxu2 %vm295_vm0, %v9294_v57  ;;  %6976 = vmatmul.msk.bf16.gmra.mxu3 %vm295_vm0, %v9294_v57 }
 0x182   : > { %v1158_v2 = vpop.f32.mrf.mxu2  ;;  %v1268_v32 = vpop.f32.mrf.mxu3 }
 0x183   : > { %v1212_v34 = vadd.f32 %v1158_v2, %v9025_v9  ;;  %v1322_v0 = vadd.f32 %v1268_v32, %v9027_v10  ;;  %v869_v21 = vpop.f32.mrf.mxu0  ;;  %v950_v48 = vpop.f32.mrf.mxu1  ;;  %v8447_v9 = vld [vmem:[%s11940_s1 + $0xd8] sm:$0xff] }
 0x184   : > { %v9311_v63 = vadd.f32 %v950_v48, %v869_v21  ;;  %2288 = vmatpush.bf16.msrb.mxu0 %v8447_v9 }
 0x185   : > { %v1483_v11 = vrot.slane %v1322_v0, 1 }
 0x187   : > { %v1484_v33 = vsel %vm1476_vm1, %v1482_v4, %v1483_v11 }
 0x188   : > { %v9314_v29 = vadd.f32 %v1484_v33, %v1211_v40  ;;  %v9325_v40 = vld [vmem:[%s8828_s26 + $0x94] sm:$0xff] }
 0x18a   : > { %v1160_v10 = vpop.f32.mrf.mxu2  ;;  %v1270_v30 = vpop.f32.mrf.mxu3 }
 0x18b   : > { %v1213_v56 = vadd.f32 %v1160_v10, %v9042_v39  ;;  %v1323_v41 = vadd.f32 %v1270_v30, %v9044_v42  ;;  %v872_v50 = vpop.f32.mrf.mxu0  ;;  %v953_v1 = vpop.f32.mrf.mxu1  ;;  %v8449_v39 = vld [vmem:[%s11940_s1 + $0xe8] sm:$0xff]  ;;  %v9350_v30 = vld [vmem:[%s8828_s26 + $0x18] sm:$0xff] }
 0x18c   : > { %v9327_v2 = vadd.f32 %v953_v1, %v872_v50  ;;  %2398 = vmatpush.bf16.msrb.mxu1 %v8449_v39  ;;  %v9355_v1 = vld [vmem:[%s8828_s26 + $0x30] sm:$0xff] }
 0x18d   : > { %v1485_v32 = vrot.slane %v1323_v41, 1 }
 0x18e   : > { %6835 = vmatmul.msk.bf16.gmra.mxu0 %vm295_vm0, %v9040_v38  ;;  %6855 = vmatmul.msk.bf16.gmra.mxu1 %vm295_vm0, %v9037_v37 }
 0x18f   : > { %v1486_v0 = vsel %vm1476_vm1, %v1483_v11, %v1485_v32  ;;  %v9334_v21 = vadd.f32 %v1485_v32, %v1213_v56  ;;  %6953 = vmatmul.msk.bf16.gmra.mxu2 %vm295_vm0, %v9325_v40  ;;  %6977 = vmatmul.msk.bf16.gmra.mxu3 %vm295_vm0, %v9325_v40 }
 0x190   : > { %v9343_v42 = vadd.f32 %v1486_v0, %v1212_v34 }
 0x192   : > { %v1163_v37 = vpop.f32.mrf.mxu2  ;;  %v1273_v38 = vpop.f32.mrf.mxu3 }
 0x193   : > { %v1214_v48 = vadd.f32 %v1163_v37, %v9058_v53  ;;  %v1324_v4 = vadd.f32 %v1273_v38, %v9060_v54  ;;  %v874_v11 = vpop.f32.mrf.mxu0  ;;  %v955_v33 = vpop.f32.mrf.mxu1 }
 0x194   : > { %v9347_v60 = vadd.f32 %v955_v33, %v874_v11 }
 0x195   : > { %v1487_v53 = vrot.slane %v1324_v4, 1 }
 0x19a   : > { %v1165_v9 = vpop.f32.mrf.mxu2  ;;  %v1275_v10 = vpop.f32.mrf.mxu3 }
 0x19b   : > { %v1215_v56 = vadd.f32 %v1165_v9, %v9063_v62  ;;  %v1325_v34 = vadd.f32 %v1275_v10, %v9065_v3  ;;  %v877_v41 = vpop.f32.mrf.mxu0  ;;  %v958_v50 = vpop.f32.mrf.mxu1 }
 0x19c   : > { %v9357_v32 = vadd.f32 %v958_v50, %v877_v41  ;;  %v9380_v50 = vld [vmem:[%s8828_s26 + $0x20] sm:$0xff] }
 0x19d   : > { %v1488_v54 = vrot.slane %v1325_v34, 1 }
 0x19e   : > { %6990 = vmatmul.msk.bf16.vlgmr.msra.gmra.mxu0 %vm295_vm0, %v9068_v6  ;;  %7093 = vmatmul.msk.bf16.vlgmr.msra.gmra.mxu1 %vm295_vm0, %v9350_v30 }
 0x19f   : > { %v1489_v0 = vsel %vm1476_vm1, %v1487_v53, %v1488_v54  ;;  %7193 = vmatmul.msk.bf16.vlgmr.msra.gmra.mxu2 %vm295_vm0, %v9355_v1  ;;  %7213 = vmatmul.msk.bf16.vlgmr.msra.gmra.mxu3 %vm295_vm0, %v9350_v30 }
 0x1a0   : > { %v9368_v62 = vadd.f32 %v1489_v0, %v1214_v48 }
 0x1a2   : > { %v1168_v3 = vpop.f32.mrf.mxu2  ;;  %v1278_v39 = vpop.f32.mrf.mxu3 }
 0x1a3   : > { %v1216_v37 = vadd.f32 %v1168_v3, %v9079_v22  ;;  %v1326_v6 = vadd.f32 %v1278_v39, %v9081_v23  ;;  %v879_v38 = vpop.f32.mrf.mxu0  ;;  %v960_v4 = vpop.f32.mrf.mxu1  ;;  %v9385_v3 = vld [vmem:[%s8828_s26 + $0x38] sm:$0xff] }
 0x1a4   : > { %v9372_v11 = vadd.f32 %v960_v4, %v879_v38 }
 0x1a5   : > { %v1490_v33 = vrot.slane %v1326_v6, 1 }
 0x1a7   : > { %v1491_v9 = vsel %vm1476_vm1, %v1488_v54, %v1490_v33  ;;  %v9375_v10 = vadd.f32 %v1490_v33, %v1216_v37 }
 0x1a8   : > { %v9377_v34 = vadd.f32 %v1491_v9, %v1215_v56 }
 0x1aa   : > { %v1170_v48 = vpop.f32.mrf.mxu2  ;;  %v1280_v41 = vpop.f32.mrf.mxu3 }
 0x1ab   : > { %v1217_v22 = vadd.f32 %v1170_v48, %v9084_v36  ;;  %v1327_v53 = vadd.f32 %v1280_v41, %v9086_v43  ;;  %v882_v23 = vpop.f32.mrf.mxu0  ;;  %v963_v0 = vpop.f32.mrf.mxu1 }
 0x1ac   : > { %v9387_v39 = vadd.f32 %v963_v0, %v882_v23  ;;  %v9405_v23 = vld [vmem:[%s8828_s26 + $0x28] sm:$0xff] }
 0x1ad   : > { %v1492_v38 = vrot.slane %v1327_v53, 1  ;;  %12031 = vst [vmem:[#allocation18_spill] sm:$0xff] %v9405_v23 }
 0x1ae   : > { %6991 = vmatmul.msk.bf16.gmra.mxu0 %vm295_vm0, %v9089_v46  ;;  %7094 = vmatmul.msk.bf16.gmra.mxu1 %vm295_vm0, %v9380_v50 }
 0x1af   : > { %7194 = vmatmul.msk.bf16.gmra.mxu2 %vm295_vm0, %v9385_v3  ;;  %7214 = vmatmul.msk.bf16.gmra.mxu3 %vm295_vm0, %v9380_v50 }
 0x1b2   : > { %v1173_v36 = vpop.f32.mrf.mxu2  ;;  %v1283_v43 = vpop.f32.mrf.mxu3 }
 0x1b3   : > { %v1218_v56 = vadd.f32 %v1173_v36, %v9100_v58  ;;  %v1328_v54 = vadd.f32 %v1283_v43, %v9102_v59  ;;  %v884_v37 = vpop.f32.mrf.mxu0  ;;  %v965_v6 = vpop.f32.mrf.mxu1  ;;  %v9410_v43 = vld [vmem:[%s8828_s26 + $0x40] sm:$0xff] }
 0x1b4   : > { %v9399_v46 = vadd.f32 %v965_v6, %v884_v37 }
 0x1b5   : > { %v1493_v4 = vrot.slane %v1328_v54, 1 }
 0x1b7   : > { %v1494_v33 = vsel %vm1476_vm1, %v1492_v38, %v1493_v4 }
 0x1b8   : > { %v9402_v9 = vadd.f32 %v1494_v33, %v1217_v22 }
 0x1ba   : > { %v1175_v48 = vpop.f32.mrf.mxu2  ;;  %v1285_v41 = vpop.f32.mrf.mxu3 }
 0x1bb   : > { %v1219_v0 = vadd.f32 %v1175_v48, %v9105_v5  ;;  %v1329_v58 = vadd.f32 %v1285_v41, %v9107_v7  ;;  %v887_v36 = vpop.f32.mrf.mxu0  ;;  %v968_v59 = vpop.f32.mrf.mxu1 }
 0x1bc   : > { %v9412_v37 = vadd.f32 %v968_v59, %v887_v36  ;;  %v12034_v59 = vld [vmem:[#allocation3_spill] sm:$0xff] }
 0x1bd   : > { %v1495_v53 = vrot.slane %v1329_v58, 1  ;;  %v9432_v58 = vld [vmem:[%s8828_s26 + $0x30] sm:$0xff] }
 0x1be   : > { %12032 = vst [vmem:[#allocation19_spill] sm:$0xff] %v9412_v37  ;;  %6992 = vmatmul.msk.bf16.gmra.mxu0 %vm295_vm0, %v9110_v24  ;;  %7095 = vmatmul.msk.bf16.gmra.mxu1 %vm295_vm0, %v9405_v23  ;;  %v9437_v37 = vld [vmem:[%s8828_s26 + $0x48] sm:$0xff] }
 0x1bf   : > { %v1496_v22 = vsel %vm1476_vm1, %v1493_v4, %v1495_v53  ;;  %v9419_v54 = vadd.f32 %v1495_v53, %v1219_v0  ;;  %7195 = vmatmul.msk.bf16.gmra.mxu2 %vm295_vm0, %v9410_v43  ;;  %7215 = vmatmul.msk.bf16.gmra.mxu3 %vm295_vm0, %v9405_v23  ;;  %12033 = vst [vmem:[#allocation20_spill] sm:$0xff] %v9432_v58 }
 0x1c0   : > { %v9425_v5 = vadd.f32 %v1496_v22, %v1218_v56  ;;  %12035 = vst [vmem:[#allocation3_spill] sm:$0xff] %v9437_v37 }
 0x1c2   : > { %v1178_v7 = vpop.f32.mrf.mxu2  ;;  %v1288_v6 = vpop.f32.mrf.mxu3 }
 0x1c3   : > { %v1220_v24 = vadd.f32 %v1178_v7, %v9121_v35  ;;  %v1330_v38 = vadd.f32 %v1288_v6, %v9123_v44  ;;  %v889_v33 = vpop.f32.mrf.mxu0  ;;  %v970_v48 = vpop.f32.mrf.mxu1 }
 0x1c4   : > { %v9429_v4 = vadd.f32 %v970_v48, %v889_v33 }
 0x1c5   : > { %v1497_v35 = vrot.slane %v1330_v38, 1 }
 0x1ca   : > { %v1180_v41 = vpop.f32.mrf.mxu2  ;;  %v1290_v0 = vpop.f32.mrf.mxu3 }
 0x1cb   : > { %v1221_v36 = vadd.f32 %v1180_v41, %v9126_v55  ;;  %v1331_v53 = vadd.f32 %v1290_v0, %v12034_v59  ;;  %v892_v56 = vpop.f32.mrf.mxu0  ;;  %v973_v22 = vpop.f32.mrf.mxu1 }
 0x1cc   : > { %v9439_v23 = vadd.f32 %v973_v22, %v892_v56 }
 0x1cd   : > { %v1498_v44 = vrot.slane %v1331_v53, 1 }
 0x1ce   : > { %6993 = vmatmul.msk.bf16.gmra.mxu0 %vm295_vm0, %v9131_v14  ;;  %7096 = vmatmul.msk.bf16.gmra.mxu1 %vm295_vm0, %v9432_v58 }
 0x1cf   : > { %v1499_v7 = vsel %vm1476_vm1, %v1497_v35, %v1498_v44  ;;  %7196 = vmatmul.msk.bf16.gmra.mxu2 %vm295_vm0, %v9437_v37  ;;  %7216 = vmatmul.msk.bf16.gmra.mxu3 %vm295_vm0, %v9432_v58  ;;  %v9467_v37 = vld [vmem:[%s8828_s26 + $0x50] sm:$0xff] }
 0x1d0   : > { %v9450_v55 = vadd.f32 %v1499_v7, %v1220_v24  ;;  %v9462_v7 = vld [vmem:[%s8828_s26 + $0x38] sm:$0xff] }
 0x1d1   : > { %12036 = vst [vmem:[#allocation21_spill] sm:$0xff] %v9462_v7 }
 0x1d2   : > { %v1183_v6 = vpop.f32.mrf.mxu2  ;;  %v1293_v38 = vpop.f32.mrf.mxu3 }
 0x1d3   : > { %v1222_v33 = vadd.f32 %v1183_v6, %v9142_v13  ;;  %v1332_v14 = vadd.f32 %v1293_v38, %v9144_v27  ;;  %v894_v48 = vpop.f32.mrf.mxu0  ;;  %v975_v41 = vpop.f32.mrf.mxu1  ;;  %v12037_v6 = vld [vmem:[#allocation4_spill] sm:$0xff] }
 0x1d4   : > { %v9454_v0 = vadd.f32 %v975_v41, %v894_v48  ;;  %12038 = vst [vmem:[#allocation4_spill] sm:$0xff] %v9467_v37 }
 0x1d5   : > { %v1500_v59 = vrot.slane %v1332_v14, 1  ;;  %v12040_v14 = vld [vmem:[#allocation5_spill] sm:$0xff] }
 0x1d7   : > { %v1501_v53 = vsel %vm1476_vm1, %v1498_v44, %v1500_v59  ;;  %v9457_v56 = vadd.f32 %v1500_v59, %v1222_v33  ;;  %v12041_v33 = vld [vmem:[#allocation6_spill] sm:$0xff]  ;;  %v12042_v59 = vld [vmem:[#allocation7_spill] sm:$0xff] }
 0x1d8   : > { %v9459_v22 = vadd.f32 %v1501_v53, %v1221_v36 }
 0x1da   : > { %v1185_v24 = vpop.f32.mrf.mxu2  ;;  %v1295_v35 = vpop.f32.mrf.mxu3 }
 0x1db   : > { %v1223_v13 = vadd.f32 %v1185_v24, %v9147_v51  ;;  %v1333_v58 = vadd.f32 %v1295_v35, %v12037_v6  ;;  %v897_v27 = vpop.f32.mrf.mxu0  ;;  %v978_v38 = vpop.f32.mrf.mxu1  ;;  %v8430_v51 = vld [vmem:[%s11940_s1 + $0xb0] sm:$0xff] }
 0x1dc   : > { %v9469_v48 = vadd.f32 %v978_v38, %v897_v27  ;;  %2480 = vmatpush.bf16.msrb.mxu2 %v8430_v51  ;;  %v8446_v51 = vld [vmem:[%s11940_s1 + $0xd0] sm:$0xff] }
 0x1dd   : > { %v1502_v27 = vrot.slane %v1333_v58, 1  ;;  %2289 = vmatpush.bf16.msrb.mxu0 %v8446_v51  ;;  %v12046_v58 = vld [vmem:[#allocation8_spill] sm:$0xff] }
 0x1de   : > { %12039 = vst [vmem:[#allocation22_spill] sm:$0xff] %v9469_v48  ;;  %6994 = vmatmul.msk.bf16.gmra.mxu0 %vm295_vm0, %v12040_v14  ;;  %7097 = vmatmul.msk.bf16.gmra.mxu1 %vm295_vm0, %v9462_v7 }
 0x1df   : > { %7197 = vmatmul.msk.bf16.gmra.mxu2 %vm295_vm0, %v9467_v37  ;;  %7217 = vmatmul.msk.bf16.gmra.mxu3 %vm295_vm0, %v9462_v7  ;;  %v8462_v37 = vld [vmem:[%s11940_s1 + $0xf0] sm:$0xff] }
 0x1e0   : > { %2690 = vmatpush.bf16.msrb.mxu3 %v8462_v37 }
 0x1e2   : > { %v1188_v36 = vpop.f32.mrf.mxu2  ;;  %v1298_v44 = vpop.f32.mrf.mxu3 }
 0x1e3   : > { %v1224_v41 = vadd.f32 %v1188_v36, %v12041_v33  ;;  %v1334_v53 = vadd.f32 %v1298_v44, %v12042_v59  ;;  %v899_v24 = vpop.f32.mrf.mxu0  ;;  %v980_v35 = vpop.f32.mrf.mxu1  ;;  %v9496_v33 = vld [vmem:[%s8828_s26 + $0x40] sm:$0xff] }
 0x1e4   : > { %v9484_v6 = vadd.f32 %v980_v35, %v899_v24  ;;  %12045 = vst [vmem:[#allocation7_spill] sm:$0xff] %v9496_v33 }
 0x1e5   : > { %v1503_v38 = vrot.slane %v1334_v53, 1  ;;  %v12047_v53 = vld [vmem:[#allocation9_spill] sm:$0xff] }
 0x1e6   : > { %12043 = vst [vmem:[#allocation5_spill] sm:$0xff] %v9484_v6 }
 0x1e7   : > { %v1504_v14 = vsel %vm1476_vm1, %v1502_v27, %v1503_v38  ;;  %v9501_v27 = vld [vmem:[%s8828_s26 + $0x58] sm:$0xff] }
 0x1e8   : > { %v9487_v7 = vadd.f32 %v1504_v14, %v1223_v13  ;;  %12048 = vst [vmem:[#allocation8_spill] sm:$0xff] %v9501_v27 }
 0x1ea   : > { %12044 = vst [vmem:[#allocation6_spill] sm:$0xff] %v9487_v7  ;;  %v1190_v36 = vpop.f32.mrf.mxu2  ;;  %v1300_v44 = vpop.f32.mrf.mxu3  ;;  %v12050_v7 = vld [vmem:[#allocation10_spill] sm:$0xff] }
 0x1eb   : > { %v1225_v59 = vadd.f32 %v1190_v36, %v12046_v58  ;;  %v1335_v24 = vadd.f32 %v1300_v44, %v12047_v53  ;;  %v902_v13 = vpop.f32.mrf.mxu0  ;;  %v983_v35 = vpop.f32.mrf.mxu1  ;;  %v8448_v36 = vld [vmem:[%s11940_s1 + $0xe0] sm:$0xff] }
 0x1ec   : > { %v9503_v14 = vadd.f32 %v983_v35, %v902_v13  ;;  %2399 = vmatpush.bf16.msrb.mxu1 %v8448_v36 }
 0x1ed   : > { %v1505_v6 = vrot.slane %v1335_v24, 1 }
 0x1ee   : > { %12049 = vst [vmem:[#allocation9_spill] sm:$0xff] %v9503_v14  ;;  %6995 = vmatmul.msk.bf16.gmra.mxu0 %vm295_vm0, %v12050_v7  ;;  %7098 = vmatmul.msk.bf16.gmra.mxu1 %vm295_vm0, %v9496_v33  ;;  %v9526_v14 = vld [vmem:[%s8828_s26 + $0x48] sm:$0xff] }
 0x1ef   : > { %v1506_v37 = vsel %vm1476_vm1, %v1503_v38, %v1505_v6  ;;  %v9510_v51 = vadd.f32 %v1505_v6, %v1225_v59  ;;  %7198 = vmatmul.msk.bf16.gmra.mxu2 %vm295_vm0, %v9501_v27  ;;  %7218 = vmatmul.msk.bf16.gmra.mxu3 %vm295_vm0, %v9496_v33  ;;  %12053 = vst [vmem:[#allocation24_spill] sm:$0xff] %v9526_v14  ;;  %v12054_v33 = vld [vmem:[#allocation11_spill] sm:$0xff] }
 0x1f0   : > { %v9519_v44 = vadd.f32 %v1506_v37, %v1224_v41  ;;  %v12055_v41 = vld [vmem:[#allocation12_spill] sm:$0xff] }
 0x1f1   : > { %12051 = vst [vmem:[#allocation10_spill] sm:$0xff] %v9510_v51  ;;  %v9531_v51 = vld [vmem:[%s8828_s26 + $0x60] sm:$0xff] }
 0x1f2   : > { %12052 = vst [vmem:[#allocation23_spill] sm:$0xff] %v9519_v44  ;;  %v1193_v7 = vpop.f32.mrf.mxu2  ;;  %v1303_v58 = vpop.f32.mrf.mxu3 }
 0x1f3   : > { %v1226_v38 = vadd.f32 %v1193_v7, %v9196_v26  ;;  %v1336_v6 = vadd.f32 %v1303_v58, %v9198_v17  ;;  %v904_v59 = vpop.f32.mrf.mxu0  ;;  %v985_v53 = vpop.f32.mrf.mxu1  ;;  %12056 = vst [vmem:[#allocation11_spill] sm:$0xff] %v9531_v51 }
 0x1f4   : > { %v9523_v24 = vadd.f32 %v985_v53, %v904_v59  ;;  %v12059_v59 = vld [vmem:[#allocation13_spill] sm:$0xff] }
 0x1f5   : > { %v1507_v26 = vrot.slane %v1336_v6, 1 }
 0x1fa   : > { %v1195_v13 = vpop.f32.mrf.mxu2  ;;  %v1305_v35 = vpop.f32.mrf.mxu3 }
 0x1fb   : > { %v1227_v27 = vadd.f32 %v1195_v13, %v12054_v33  ;;  %v1337_v37 = vadd.f32 %v1305_v35, %v12055_v41  ;;  %v907_v44 = vpop.f32.mrf.mxu0  ;;  %v988_v36 = vpop.f32.mrf.mxu1 }
 0x1fc   : > { %v9533_v48 = vadd.f32 %v988_v36, %v907_v44 }
 0x1fd   : > { %v1508_v17 = vrot.slane %v1337_v37, 1 }
 0x1fe   : > { %12057 = vst [vmem:[#allocation12_spill] sm:$0xff] %v9533_v48  ;;  %6996 = vmatmul.msk.bf16.gmra.mxu0 %vm295_vm0, %v9206_v16  ;;  %7099 = vmatmul.msk.bf16.gmra.mxu1 %vm295_vm0, %v9526_v14 }
 0x1ff   : > { %v1509_v7 = vsel %vm1476_vm1, %v1507_v26, %v1508_v17  ;;  %7199 = vmatmul.msk.bf16.gmra.mxu2 %vm295_vm0, %v9531_v51  ;;  %7219 = vmatmul.msk.bf16.gmra.mxu3 %vm295_vm0, %v9526_v14  ;;  %v9556_v14 = vld [vmem:[%s8828_s26 + $0x50] sm:$0xff]  ;;  %v12061_v51 = vld [vmem:[#allocation14_spill] sm:$0xff] }
 0x200   : > { %v9544_v33 = vadd.f32 %v1509_v7, %v1226_v38  ;;  %12060 = vst [vmem:[#allocation13_spill] sm:$0xff] %v9556_v14 }
 0x202   : > { %12058 = vst [vmem:[#allocation25_spill] sm:$0xff] %v9544_v33  ;;  %v1198_v44 = vpop.f32.mrf.mxu2  ;;  %v1308_v58 = vpop.f32.mrf.mxu3  ;;  %v9561_v33 = vld [vmem:[%s8828_s26 + $0x68] sm:$0xff] }
 0x203   : > { %v1228_v6 = vadd.f32 %v1198_v44, %v9217_v20  ;;  %v1338_v16 = vadd.f32 %v1308_v58, %v12059_v59  ;;  %v909_v53 = vpop.f32.mrf.mxu0  ;;  %v990_v13 = vpop.f32.mrf.mxu1  ;;  %v12062_v44 = vld [vmem:[#allocation15_spill] sm:$0xff]  ;;  %12063 = vst [vmem:[#allocation14_spill] sm:$0xff] %v9561_v33 }
 0x204   : > { %v9548_v35 = vadd.f32 %v990_v13, %v909_v53 }
 0x205   : > { %v1510_v41 = vrot.slane %v1338_v16, 1  ;;  %v12064_v16 = vld [vmem:[#allocation16_spill] sm:$0xff] }
 0x207   : > { %v1511_v37 = vsel %vm1476_vm1, %v1508_v17, %v1510_v41  ;;  %v9551_v36 = vadd.f32 %v1510_v41, %v1228_v6 }
 0x208   : > { %v9553_v26 = vadd.f32 %v1511_v37, %v1227_v27 }
 0x20a   : > { %v1200_v38 = vpop.f32.mrf.mxu2  ;;  %v1310_v7 = vpop.f32.mrf.mxu3 }
 0x20b   : > { %v1229_v20 = vadd.f32 %v1200_v38, %v12061_v51  ;;  %v1339_v48 = vadd.f32 %v1310_v7, %v12062_v44  ;;  %v912_v58 = vpop.f32.mrf.mxu0  ;;  %v993_v59 = vpop.f32.mrf.mxu1 }
 0x20c   : > { %v9563_v53 = vadd.f32 %v993_v59, %v912_v58 }
 0x20d   : > { %v1512_v38 = vrot.slane %v1339_v48, 1 }
 0x20e   : > { %6997 = vmatmul.msk.bf16.gmra.mxu0 %vm295_vm0, %v12064_v16  ;;  %7100 = vmatmul.msk.bf16.gmra.mxu1 %vm295_vm0, %v9556_v14 }
 0x20f   : > { %7200 = vmatmul.msk.bf16.gmra.mxu2 %vm295_vm0, %v9561_v33  ;;  %7220 = vmatmul.msk.bf16.gmra.mxu3 %vm295_vm0, %v9556_v14  ;;  %v9581_v14 = vld [vmem:[%s8828_s26 + $0x58] sm:$0xff] }
 0x212   : > { %v1203_v27 = vpop.f32.mrf.mxu2  ;;  %v1313_v51 = vpop.f32.mrf.mxu3 }
 0x213   : > { %v1230_v17 = vadd.f32 %v1203_v27, %v9238_v45  ;;  %v1340_v6 = vadd.f32 %v1313_v51, %v9240_v18  ;;  %v914_v13 = vpop.f32.mrf.mxu0  ;;  %v995_v41 = vpop.f32.mrf.mxu1  ;;  %v9588_v51 = vld [vmem:[%s8828_s26 + $0x70] sm:$0xff] }
 0x214   : > { %v9575_v37 = vadd.f32 %v995_v41, %v914_v13 }
 0x215   : > { %v1513_v7 = vrot.slane %v1340_v6, 1 }
 0x217   : > { %v1514_v44 = vsel %vm1476_vm1, %v1512_v38, %v1513_v7 }
 0x218   : > { %v9578_v58 = vadd.f32 %v1514_v44, %v1229_v20 }
 0x21a   : > { %v1205_v59 = vpop.f32.mrf.mxu2  ;;  %v1315_v16 = vpop.f32.mrf.mxu3 }
 0x21b   : > { %v1231_v33 = vadd.f32 %v1205_v59, %v9243_v52  ;;  %v1341_v45 = vadd.f32 %v1315_v16, %v9245_v8  ;;  %v1368_v27 = vpop.f32.mrf.mxu0  ;;  %v9585_v18 = vpop.f32.mrf.mxu1  ;;  %v12065_v8 = vld [vmem:[#allocation17_spill] sm:$0xff] }
 0x21c   : > { %v1428_v13 = vadd.f32 %v1368_v27, %v12065_v8 }
 0x21d   : > { %v1515_v48 = vrot.slane %v1341_v45, 1 }
 0x21e   : > { %6998 = vmatmul.msk.bf16.gmra.mxu0 %vm295_vm0, %v9248_v19  ;;  %7101 = vmatmul.msk.bf16.gmra.mxu1 %vm295_vm0, %v9581_v14 }
 0x21f   : > { %v1516_v20 = vsel %vm1476_vm1, %v1513_v7, %v1515_v48  ;;  %v9595_v6 = vadd.f32 %v1515_v48, %v1231_v33  ;;  %7201 = vmatmul.msk.bf16.gmra.mxu2 %vm295_vm0, %v9588_v51  ;;  %7221 = vmatmul.msk.bf16.gmra.mxu3 %vm295_vm0, %v9581_v14  ;;  %v1590_v7 = vrot.slane %v1428_v13, 2 }
 0x220   : > { %v9601_v52 = vadd.f32 %v1516_v20, %v1230_v17  ;;  %v9613_v20 = vld [vmem:[%s8828_s26 + $0x60] sm:$0xff] }
 0x222   : > { %v2124_v41 = vpop.f32.mrf.mxu2  ;;  %v2205_v19 = vpop.f32.mrf.mxu3 }
 0x223   : > { %v9604_v38 = vadd.f32 %v2205_v19, %v2124_v41  ;;  %v1370_v44 = vpop.f32.mrf.mxu0  ;;  %v9606_v59 = vpop.f32.mrf.mxu1 }
 0x224   : > { %v1429_v33 = vadd.f32 %v1370_v44, %v9262_v61  ;;  %v9620_v61 = vld [vmem:[%s8828_s26 + $0x78] sm:$0xff] }
 0x225   : > { %12066 = vst [vmem:[#allocation15_spill] sm:$0xff] %v9604_v38 }
 0x226   : > { %v1591_v16 = vrot.slane %v1429_v33, 2 }
 0x228   : > { %v1592_v17 = vsel %vm1589_vm2, %v1590_v7, %v1591_v16 }
 0x229   : > { %v1654_v45 = vadd.f32 %v1592_v17, %v9280_v49 }
 0x22a   : > { %v2126_v27 = vpop.f32.mrf.mxu2  ;;  %v2207_v48 = vpop.f32.mrf.mxu3 }
 0x22b   : > { %v1678_v8 = vmax.f32 %v1654_v45, 0.0  ;;  %v9615_v41 = vadd.f32 %v2207_v48, %v2126_v27  ;;  %v1373_v19 = vpop.f32.mrf.mxu0  ;;  %v9617_v38 = vpop.f32.mrf.mxu1 }
 0x22c   : > { %v1430_v13 = vadd.f32 %v1373_v19, %v9269_v15  ;;  %v9648_v19 = vld [vmem:[%s8828_s26 + $0x68] sm:$0xff] }
 0x22d   : > { %1703 = vst.msk [vmem:[%s9623_s12 - $0x3] sm:$0xf8] %vm1702_vm3, %v1678_v8 }
 0x22e   : > { %v1593_v49 = vrot.slane %v1430_v13, 2  ;;  %6999 = vmatmul.msk.bf16.gmra.mxu0 %vm295_vm0, %v9267_v28  ;;  %7102 = vmatmul.msk.bf16.gmra.mxu1 %vm295_vm0, %v9613_v20  ;;  %12067 = vst [vmem:[#allocation16_spill] sm:$0xff] %v9648_v19 }
 0x22f   : > { %7202 = vmatmul.msk.bf16.gmra.mxu2 %vm295_vm0, %v9620_v61  ;;  %7222 = vmatmul.msk.bf16.gmra.mxu3 %vm295_vm0, %v9613_v20 }
 0x230   : > { %v1594_v15 = vsel %vm1589_vm2, %v1591_v16, %v1593_v49  ;;  %v1656_v44 = vadd.f32 %v1593_v49, %v9287_v31 }
 0x231   : > { %v1655_v33 = vadd.f32 %v1594_v15, %v9289_v25 }
 0x232   : > { %v1680_v28 = vmax.f32 %v1656_v44, 0.0  ;;  %v2129_v7 = vpop.f32.mrf.mxu2  ;;  %v2210_v17 = vpop.f32.mrf.mxu3  ;;  %v9655_v44 = vld [vmem:[%s8828_s26 + $0x80] sm:$0xff] }
 0x233   : > { %v1679_v45 = vmax.f32 %v1655_v33, 0.0  ;;  %v9638_v27 = vadd.f32 %v2210_v17, %v2129_v7  ;;  %v1375_v48 = vpop.f32.mrf.mxu0  ;;  %v9640_v8 = vpop.f32.mrf.mxu1 }
 0x234   : > { %1707 = vst.msk [vmem:[%s9623_s12 + $0xd] sm:$0x7] %vm1706_vm4, %v1680_v28  ;;  %v1431_v31 = vadd.f32 %v1375_v48, %v9284_v47 }
 0x235   : > { %1705 = vst.msk [vmem:[%s9623_s12 + $0x5] sm:$0xff] %vm1704_vm5, %v1679_v45 }
 0x236   : > { %v1595_v7 = vrot.slane %v1431_v31, 2 }
 0x23a   : > { %v2131_v16 = vpop.f32.mrf.mxu2  ;;  %v2212_v25 = vpop.f32.mrf.mxu3 }
 0x23b   : > { %v9650_v13 = vadd.f32 %v2212_v25, %v2131_v16  ;;  %v1378_v49 = vpop.f32.mrf.mxu0  ;;  %v9652_v15 = vpop.f32.mrf.mxu1 }
 0x23c   : > { %v1432_v33 = vadd.f32 %v1378_v49, %v9296_v12  ;;  %v8483_v49 = vld [vmem:[%s11940_s1 + $0x138] sm:$0xff] }
 0x23d   : > { %3429 = vmatpush.bf16.msra.mxu2 %v8483_v49  ;;  %v9695_v49 = vld [vmem:[%s8828_s26 + $0x88] sm:$0xff] }
 0x23e   : > { %v1596_v28 = vrot.slane %v1432_v33, 2  ;;  %7000 = vmatmul.msk.bf16.gmra.mxu0 %vm295_vm0, %v9294_v57  ;;  %7103 = vmatmul.msk.bf16.gmra.mxu1 %vm295_vm0, %v9648_v19 }
 0x23f   : > { %7203 = vmatmul.msk.bf16.gmra.mxu2 %vm295_vm0, %v9655_v44  ;;  %7223 = vmatmul.msk.bf16.gmra.mxu3 %vm295_vm0, %v9648_v19 }
 0x240   : > { %v1597_v47 = vsel %vm1589_vm2, %v1595_v7, %v1596_v28  ;;  %v8465_v7 = vld [vmem:[%s11940_s1 + $0x108] sm:$0xff] }
 0x241   : > { %v1657_v17 = vadd.f32 %v1597_v47, %v9314_v29  ;;  %v8499_v29 = vld [vmem:[%s11940_s1 + $0x158] sm:$0xff]  ;;  %2799 = vmatpush.bf16.msra.mxu0 %v8465_v7 }
 0x242   : > { %v2134_v12 = vpop.f32.mrf.mxu2  ;;  %v2215_v45 = vpop.f32.mrf.mxu3  ;;  %3664 = vmatpush.bf16.msra.mxu3 %v8499_v29 }
 0x243   : > { %v1681_v48 = vmax.f32 %v1657_v17, 0.0  ;;  %v9668_v31 = vadd.f32 %v2215_v45, %v2134_v12  ;;  %v1380_v16 = vpop.f32.mrf.mxu0  ;;  %v9670_v57 = vpop.f32.mrf.mxu1 }
 0x244   : > { %12069 = vst [vmem:[#allocation26_spill] sm:$0xff] %v9670_v57  ;;  %v1433_v25 = vadd.f32 %v1380_v16, %v9311_v63  ;;  %v9688_v16 = vld [vmem:[%s8828_s26 + $0x70] sm:$0xff] }
 0x245   : > { %12068 = vst [vmem:[#allocation17_spill] sm:$0xff] %v9668_v31 }
 0x246   : > { %1708 = vst.msk [vmem:[%s9623_s12 + $0xd] sm:$0xf8] %vm1702_vm3, %v1681_v48  ;;  %v1598_v33 = vrot.slane %v1433_v25, 2 }
 0x248   : > { %v1599_v63 = vsel %vm1589_vm2, %v1596_v28, %v1598_v33  ;;  %v1659_v47 = vadd.f32 %v1598_v33, %v9334_v21 }
 0x249   : > { %v1658_v17 = vadd.f32 %v1599_v63, %v9343_v42  ;;  %v8467_v63 = vld [vmem:[%s11940_s1 + $0x118] sm:$0xff] }
 0x24a   : > { %v1683_v12 = vmax.f32 %v1659_v47, 0.0  ;;  %v2136_v45 = vpop.f32.mrf.mxu2  ;;  %v2217_v48 = vpop.f32.mrf.mxu3  ;;  %2909 = vmatpush.bf16.msra.mxu1 %v8467_v63 }
 0x24b   : > { %v1682_v25 = vmax.f32 %v1658_v17, 0.0  ;;  %v9690_v31 = vadd.f32 %v2217_v48, %v2136_v45  ;;  %v1383_v57 = vpop.f32.mrf.mxu0  ;;  %v9692_v19 = vpop.f32.mrf.mxu1 }
 0x24c   : > { %1710 = vst.msk [vmem:[%s9623_s12 + $0x1d] sm:$0x7] %vm1706_vm4, %v1683_v12  ;;  %v1434_v21 = vadd.f32 %v1383_v57, %v9327_v2 }
 0x24d   : > { %1709 = vst.msk [vmem:[%s9623_s12 + $0x15] sm:$0xff] %vm1704_vm5, %v1682_v25 }
 0x24e   : > { %7001 = vmatmul.msk.bf16.gmra.mxu0 %vm295_vm0, %v9325_v40  ;;  %7104 = vmatmul.msk.bf16.gmra.mxu1 %vm295_vm0, %v9688_v16  ;;  %v1600_v47 = vrot.slane %v1434_v21, 2 }
 0x24f   : > { %7204 = vmatmul.msk.bf16.gmra.mxu2 %vm295_vm0, %v9695_v49  ;;  %7224 = vmatmul.msk.bf16.gmra.mxu3 %vm295_vm0, %v9688_v16 }
 0x252   : > { %v2139_v42 = vpop.f32.mrf.mxu2  ;;  %v2220_v28 = vpop.f32.mrf.mxu3 }
 0x253   : > { %v9710_v33 = vadd.f32 %v2220_v28, %v2139_v42  ;;  %v1385_v29 = vpop.f32.mrf.mxu0  ;;  %v9712_v7 = vpop.f32.mrf.mxu1 }
 0x254   : > { %v1435_v40 = vadd.f32 %v1385_v29, %v9347_v60  ;;  %v9725_v60 = vld [vmem:[%s8828_s26 + $0x48] sm:$0xff] }
 0x256   : > { %v1601_v17 = vrot.slane %v1435_v40, 2 }
 0x258   : > { %v1602_v2 = vsel %vm1589_vm2, %v1600_v47, %v1601_v17 }
 0x259   : > { %v1660_v57 = vadd.f32 %v1602_v2, %v9368_v62 }
 0x25a   : > { %v2141_v12 = vpop.f32.mrf.mxu2  ;;  %v2222_v45 = vpop.f32.mrf.mxu3 }
 0x25b   : > { %v1684_v48 = vmax.f32 %v1660_v57, 0.0  ;;  %v9720_v25 = vadd.f32 %v2222_v45, %v2141_v12  ;;  %v1388_v42 = vpop.f32.mrf.mxu0  ;;  %v9722_v28 = vpop.f32.mrf.mxu1 }
 0x25c   : > { %v1436_v29 = vadd.f32 %v1388_v42, %v9357_v32 }
 0x25d   : > { %1711 = vst.msk [vmem:[%s9623_s12 + $0x1d] sm:$0xf8] %vm1702_vm3, %v1684_v48 }
 0x25e   : > { %v1603_v21 = vrot.slane %v1436_v29, 2  ;;  %7237 = vmatmul.msk.bf16.vlgmr.msrb.gmra.mxu0 %vm295_vm0, %v9355_v1  ;;  %7261 = vmatmul.msk.bf16.vlgmr.msrb.gmra.mxu1 %vm295_vm0, %v9355_v1  ;;  %v9755_v29 = vld [vmem:[%s8828_s26 + $0x50] sm:$0xff] }
 0x25f   : > { %7281 = vmatmul.msk.bf16.vlgmr.msrb.gmra.mxu2 %vm295_vm0, %v9350_v30  ;;  %7379 = vmatmul.msk.bf16.vlgmr.msrb.gmra.mxu3 %vm295_vm0, %v9725_v60 }
 0x260   : > { %v1604_v62 = vsel %vm1589_vm2, %v1601_v17, %v1603_v21  ;;  %v1662_v32 = vadd.f32 %v1603_v21, %v9375_v10 }
 0x261   : > { %v1661_v40 = vadd.f32 %v1604_v62, %v9377_v34 }
 0x262   : > { %v1686_v63 = vmax.f32 %v1662_v32, 0.0  ;;  %v2144_v47 = vpop.f32.mrf.mxu2  ;;  %v2225_v2 = vpop.f32.mrf.mxu3 }
 0x263   : > { %v1685_v57 = vmax.f32 %v1661_v40, 0.0  ;;  %v9741_v12 = vadd.f32 %v2225_v2, %v2144_v47  ;;  %v1390_v1 = vpop.f32.mrf.mxu0  ;;  %v9743_v45 = vpop.f32.mrf.mxu1 }
 0x264   : > { %1713 = vst.msk [vmem:[%s9623_s12 + $0x2d] sm:$0x7] %vm1706_vm4, %v1686_v63  ;;  %v1437_v30 = vadd.f32 %v1390_v1, %v9372_v11 }
 0x265   : > { %1712 = vst.msk [vmem:[%s9623_s12 + $0x25] sm:$0xff] %vm1704_vm5, %v1685_v57 }
 0x266   : > { %v1605_v62 = vrot.slane %v1437_v30, 2 }
 0x26a   : > { %v2146_v17 = vpop.f32.mrf.mxu2  ;;  %v2227_v10 = vpop.f32.mrf.mxu3 }
 0x26b   : > { %v9750_v48 = vadd.f32 %v2227_v10, %v2146_v17  ;;  %v1393_v34 = vpop.f32.mrf.mxu0  ;;  %v9752_v42 = vpop.f32.mrf.mxu1 }
 0x26c   : > { %v1438_v21 = vadd.f32 %v1393_v34, %v9387_v39 }
 0x26e   : > { %v1606_v32 = vrot.slane %v1438_v21, 2  ;;  %7238 = vmatmul.msk.bf16.gmra.mxu0 %vm295_vm0, %v9385_v3  ;;  %7262 = vmatmul.msk.bf16.gmra.mxu1 %vm295_vm0, %v9385_v3 }
 0x26f   : > { %7282 = vmatmul.msk.bf16.gmra.mxu2 %vm295_vm0, %v9380_v50  ;;  %7380 = vmatmul.msk.bf16.gmra.mxu3 %vm295_vm0, %v9755_v29 }
 0x270   : > { %v1607_v11 = vsel %vm1589_vm2, %v1605_v62, %v1606_v32 }
 0x271   : > { %v1663_v40 = vadd.f32 %v1607_v11, %v9402_v9 }
 0x272   : > { %v2149_v39 = vpop.f32.mrf.mxu2  ;;  %v2230_v63 = vpop.f32.mrf.mxu3 }
 0x273   : > { %v1687_v47 = vmax.f32 %v1663_v40, 0.0  ;;  %v9768_v2 = vadd.f32 %v2230_v63, %v2149_v39  ;;  %v1395_v57 = vpop.f32.mrf.mxu0  ;;  %v9770_v1 = vpop.f32.mrf.mxu1  ;;  %v9783_v63 = vld [vmem:[%s8828_s26 + $0x58] sm:$0xff] }
 0x274   : > { %v1439_v50 = vadd.f32 %v1395_v57, %v9399_v46  ;;  %v12070_v46 = vld [vmem:[#allocation18_spill] sm:$0xff] }
 0x275   : > { %1714 = vst.msk [vmem:[%s9623_s12 + $0x2d] sm:$0xf8] %vm1702_vm3, %v1687_v47 }
 0x276   : > { %v1608_v3 = vrot.slane %v1439_v50, 2 }
 0x278   : > { %v1609_v30 = vsel %vm1589_vm2, %v1606_v32, %v1608_v3  ;;  %v1665_v9 = vadd.f32 %v1608_v3, %v9419_v54  ;;  %v12071_v54 = vld [vmem:[#allocation19_spill] sm:$0xff] }
 0x279   : > { %v1664_v17 = vadd.f32 %v1609_v30, %v9425_v5 }
 0x27a   : > { %v1689_v10 = vmax.f32 %v1665_v9, 0.0  ;;  %v2151_v34 = vpop.f32.mrf.mxu2  ;;  %v2232_v21 = vpop.f32.mrf.mxu3 }
 0x27b   : > { %v1688_v62 = vmax.f32 %v1664_v17, 0.0  ;;  %v9778_v11 = vadd.f32 %v2232_v21, %v2151_v34  ;;  %v1398_v40 = vpop.f32.mrf.mxu0  ;;  %v9780_v39 = vpop.f32.mrf.mxu1 }
 0x27c   : > { %1716 = vst.msk [vmem:[%s9623_s12 + $0x3d] sm:$0x7] %vm1706_vm4, %v1689_v10  ;;  %v1440_v5 = vadd.f32 %v1398_v40, %v12071_v54 }
 0x27d   : > { %1715 = vst.msk [vmem:[%s9623_s12 + $0x35] sm:$0xff] %vm1704_vm5, %v1688_v62 }
 0x27e   : > { %7239 = vmatmul.msk.bf16.gmra.mxu0 %vm295_vm0, %v9410_v43  ;;  %7263 = vmatmul.msk.bf16.gmra.mxu1 %vm295_vm0, %v9410_v43  ;;  %v1610_v43 = vrot.slane %v1440_v5, 2  ;;  %v12072_v5 = vld [vmem:[#allocation3_spill] sm:$0xff] }
 0x27f   : > { %7283 = vmatmul.msk.bf16.gmra.mxu2 %vm295_vm0, %v12070_v46  ;;  %7381 = vmatmul.msk.bf16.gmra.mxu3 %vm295_vm0, %v9783_v63 }
 0x282   : > { %v2154_v32 = vpop.f32.mrf.mxu2  ;;  %v2235_v47 = vpop.f32.mrf.mxu3 }
 0x283   : > { %v9798_v57 = vadd.f32 %v2235_v47, %v2154_v32  ;;  %v1400_v50 = vpop.f32.mrf.mxu0  ;;  %v9800_v3 = vpop.f32.mrf.mxu1  ;;  %v9810_v32 = vld [vmem:[%s8828_s26 + $0x60] sm:$0xff] }
 0x284   : > { %v1441_v30 = vadd.f32 %v1400_v50, %v9429_v4 }
 0x286   : > { %v1611_v9 = vrot.slane %v1441_v30, 2 }
 0x288   : > { %v1612_v17 = vsel %vm1589_vm2, %v1610_v43, %v1611_v9 }
 0x289   : > { %v1666_v10 = vadd.f32 %v1612_v17, %v9450_v55  ;;  %v12073_v55 = vld [vmem:[#allocation20_spill] sm:$0xff] }
 0x28a   : > { %v2156_v34 = vpop.f32.mrf.mxu2  ;;  %v2237_v21 = vpop.f32.mrf.mxu3 }
 0x28b   : > { %v1690_v62 = vmax.f32 %v1666_v10, 0.0  ;;  %v9805_v40 = vadd.f32 %v2237_v21, %v2156_v34  ;;  %v1403_v46 = vpop.f32.mrf.mxu0  ;;  %v9807_v54 = vpop.f32.mrf.mxu1 }
 0x28c   : > { %v1442_v47 = vadd.f32 %v1403_v46, %v9439_v23 }
 0x28d   : > { %1717 = vst.msk [vmem:[%s9623_s12 + $0x3d] sm:$0xf8] %vm1702_vm3, %v1690_v62 }
 0x28e   : > { %v1613_v4 = vrot.slane %v1442_v47, 2  ;;  %7240 = vmatmul.msk.bf16.gmra.mxu0 %vm295_vm0, %v12072_v5  ;;  %7264 = vmatmul.msk.bf16.gmra.mxu1 %vm295_vm0, %v12072_v5 }
 0x28f   : > { %7284 = vmatmul.msk.bf16.gmra.mxu2 %vm295_vm0, %v12073_v55  ;;  %7382 = vmatmul.msk.bf16.gmra.mxu3 %vm295_vm0, %v9810_v32  ;;  %v9840_v55 = vld [vmem:[%s8828_s26 + $0x68] sm:$0xff] }
 0x290   : > { %v1614_v50 = vsel %vm1589_vm2, %v1611_v9, %v1613_v4  ;;  %v1668_v23 = vadd.f32 %v1613_v4, %v9457_v56  ;;  %12078 = vst [vmem:[#allocation27_spill] sm:$0xff] %v9840_v55 }
 0x291   : > { %v1667_v30 = vadd.f32 %v1614_v50, %v9459_v22  ;;  %v12079_v50 = vld [vmem:[#allocation22_spill] sm:$0xff] }
 0x292   : > { %v1692_v43 = vmax.f32 %v1668_v23, 0.0  ;;  %v2159_v17 = vpop.f32.mrf.mxu2  ;;  %v2240_v10 = vpop.f32.mrf.mxu3 }
 0x293   : > { %v1691_v34 = vmax.f32 %v1667_v30, 0.0  ;;  %v9826_v21 = vadd.f32 %v2240_v10, %v2159_v17  ;;  %v1405_v62 = vpop.f32.mrf.mxu0  ;;  %v9828_v46 = vpop.f32.mrf.mxu1  ;;  %v12080_v10 = vld [vmem:[#allocation4_spill] sm:$0xff] }
 0x294   : > { %12075 = vst [vmem:[#allocation19_spill] sm:$0xff] %v9828_v46  ;;  %v1443_v9 = vadd.f32 %v1405_v62, %v9454_v0  ;;  %v12081_v0 = vld [vmem:[#allocation21_spill] sm:$0xff] }
 0x295   : > { %12074 = vst [vmem:[#allocation18_spill] sm:$0xff] %v9826_v21  ;;  %v9877_v46 = vld [vmem:[%s8828_s26 + $0x70] sm:$0xff] }
 0x296   : > { %1719 = vst.msk [vmem:[%s9623_s12 + $0x4d] sm:$0x7] %vm1706_vm4, %v1692_v43  ;;  %v1615_v30 = vrot.slane %v1443_v9, 2 }
 0x297   : > { %1718 = vst.msk [vmem:[%s9623_s12 + $0x45] sm:$0xff] %vm1704_vm5, %v1691_v34  ;;  %v12082_v34 = vld [vmem:[#allocation6_spill] sm:$0xff] }
 0x298   : > { %12088 = vst [vmem:[#allocation21_spill] sm:$0xff] %v9877_v46 }
 0x29a   : > { %v2161_v47 = vpop.f32.mrf.mxu2  ;;  %v2242_v56 = vpop.f32.mrf.mxu3 }
 0x29b   : > { %v9835_v4 = vadd.f32 %v2242_v56, %v2161_v47  ;;  %v1408_v22 = vpop.f32.mrf.mxu0  ;;  %v9837_v5 = vpop.f32.mrf.mxu1 }
 0x29c   : > { %12077 = vst [vmem:[#allocation20_spill] sm:$0xff] %v9837_v5  ;;  %v1444_v23 = vadd.f32 %v1408_v22, %v12079_v50 }
 0x29d   : > { %12076 = vst [vmem:[#allocation3_spill] sm:$0xff] %v9835_v4  ;;  %v12085_v4 = vld [vmem:[#allocation5_spill] sm:$0xff] }
 0x29e   : > { %v1616_v17 = vrot.slane %v1444_v23, 2  ;;  %7241 = vmatmul.msk.bf16.gmra.mxu0 %vm295_vm0, %v12080_v10  ;;  %7265 = vmatmul.msk.bf16.gmra.mxu1 %vm295_vm0, %v12080_v10 }
 0x29f   : > { %7285 = vmatmul.msk.bf16.gmra.mxu2 %vm295_vm0, %v12081_v0  ;;  %7383 = vmatmul.msk.bf16.gmra.mxu3 %vm295_vm0, %v9840_v55  ;;  %v8482_v0 = vld [vmem:[%s11940_s1 + $0x130] sm:$0xff] }
 0x2a0   : > { %v1617_v43 = vsel %vm1589_vm2, %v1615_v30, %v1616_v17  ;;  %v8498_v30 = vld [vmem:[%s11940_s1 + $0x150] sm:$0xff]  ;;  %3430 = vmatpush.bf16.msra.mxu2 %v8482_v0 }
 0x2a1   : > { %v1669_v62 = vadd.f32 %v1617_v43, %v12082_v34  ;;  %v8464_v43 = vld [vmem:[%s11940_s1 + $0x100] sm:$0xff]  ;;  %v12086_v34 = vld [vmem:[#allocation10_spill] sm:$0xff]  ;;  %3665 = vmatpush.bf16.msra.mxu3 %v8498_v30  ;;  %v12091_v0 = vld [vmem:[#allocation9_spill] sm:$0xff] }
 0x2a2   : > { %v2164_v47 = vpop.f32.mrf.mxu2  ;;  %v2245_v56 = vpop.f32.mrf.mxu3  ;;  %2800 = vmatpush.bf16.msra.mxu0 %v8464_v43 }
 0x2a3   : > { %v1693_v9 = vmax.f32 %v1669_v62, 0.0  ;;  %v9853_v22 = vadd.f32 %v2245_v56, %v2164_v47  ;;  %v1410_v50 = vpop.f32.mrf.mxu0  ;;  %v9855_v23 = vpop.f32.mrf.mxu1  ;;  %v12087_v47 = vld [vmem:[#allocation23_spill] sm:$0xff] }
 0x2a4   : > { %12084 = vst [vmem:[#allocation4_spill] sm:$0xff] %v9855_v23  ;;  %v1445_v10 = vadd.f32 %v1410_v50, %v12085_v4 }
 0x2a5   : > { %12083 = vst [vmem:[#allocation22_spill] sm:$0xff] %v9853_v22 }
 0x2a6   : > { %1720 = vst.msk [vmem:[%s9623_s12 + $0x4d] sm:$0xf8] %vm1702_vm3, %v1693_v9  ;;  %v1618_v55 = vrot.slane %v1445_v10, 2 }
 0x2a8   : > { %v1619_v4 = vsel %vm1589_vm2, %v1616_v17, %v1618_v55  ;;  %v1671_v62 = vadd.f32 %v1618_v55, %v12086_v34  ;;  %v12089_v55 = vld [vmem:[#allocation8_spill] sm:$0xff]  ;;  %v12090_v17 = vld [vmem:[#allocation7_spill] sm:$0xff] }
 0x2a9   : > { %v1670_v56 = vadd.f32 %v1619_v4, %v12087_v47 }
 0x2aa   : > { %v1695_v9 = vmax.f32 %v1671_v62, 0.0  ;;  %v2166_v50 = vpop.f32.mrf.mxu2  ;;  %v2247_v10 = vpop.f32.mrf.mxu3 }
 0x2ab   : > { %v1694_v22 = vmax.f32 %v1670_v56, 0.0  ;;  %v9872_v23 = vadd.f32 %v2247_v10, %v2166_v50  ;;  %v1413_v5 = vpop.f32.mrf.mxu0  ;;  %v9874_v21 = vpop.f32.mrf.mxu1  ;;  %v8466_v56 = vld [vmem:[%s11940_s1 + $0x110] sm:$0xff] }
 0x2ac   : > { %1722 = vst.msk [vmem:[%s9623_s12 + $0x5d] sm:$0x7] %vm1706_vm4, %v1695_v9  ;;  %v1446_v30 = vadd.f32 %v1413_v5, %v12091_v0  ;;  %2910 = vmatpush.bf16.msra.mxu1 %v8466_v56  ;;  %v12094_v10 = vld [vmem:[#allocation25_spill] sm:$0xff]  ;;  %v12097_v56 = vld [vmem:[#allocation24_spill] sm:$0xff] }
 0x2ad   : > { %1721 = vst.msk [vmem:[%s9623_s12 + $0x55] sm:$0xff] %vm1704_vm5, %v1694_v22 }
 0x2ae   : > { %7242 = vmatmul.msk.bf16.gmra.mxu0 %vm295_vm0, %v12089_v55  ;;  %7266 = vmatmul.msk.bf16.gmra.mxu1 %vm295_vm0, %v12089_v55  ;;  %v1620_v9 = vrot.slane %v1446_v30, 2 }
 0x2af   : > { %7286 = vmatmul.msk.bf16.gmra.mxu2 %vm295_vm0, %v12090_v17  ;;  %7384 = vmatmul.msk.bf16.gmra.mxu3 %vm295_vm0, %v9877_v46 }
 0x2b2   : > { %v2169_v43 = vpop.f32.mrf.mxu2  ;;  %v2250_v4 = vpop.f32.mrf.mxu3 }
 0x2b3   : > { %v9892_v34 = vadd.f32 %v2250_v4, %v2169_v43  ;;  %v1415_v22 = vpop.f32.mrf.mxu0  ;;  %v9894_v62 = vpop.f32.mrf.mxu1 }
 0x2b4   : > { %12093 = vst [vmem:[#allocation5_spill] sm:$0xff] %v9894_v62  ;;  %v1447_v47 = vadd.f32 %v1415_v22, %v9523_v24  ;;  %v9907_v24 = vld [vmem:[%s8828_s26 + $0x78] sm:$0xff]  ;;  %v12095_v22 = vld [vmem:[#allocation12_spill] sm:$0xff] }
 0x2b5   : > { %12092 = vst [vmem:[#allocation6_spill] sm:$0xff] %v9892_v34 }
 0x2b6   : > { %v1621_v50 = vrot.slane %v1447_v47, 2  ;;  %v12096_v47 = vld [vmem:[#allocation11_spill] sm:$0xff] }
 0x2b8   : > { %v1622_v5 = vsel %vm1589_vm2, %v1620_v9, %v1621_v50 }
 0x2b9   : > { %v1672_v55 = vadd.f32 %v1622_v5, %v12094_v10 }
 0x2ba   : > { %v2171_v17 = vpop.f32.mrf.mxu2  ;;  %v2252_v0 = vpop.f32.mrf.mxu3 }
 0x2bb   : > { %v1696_v43 = vmax.f32 %v1672_v55, 0.0  ;;  %v9902_v4 = vadd.f32 %v2252_v0, %v2171_v17  ;;  %v1418_v34 = vpop.f32.mrf.mxu0  ;;  %v9904_v62 = vpop.f32.mrf.mxu1 }
 0x2bc   : > { %v1448_v46 = vadd.f32 %v1418_v34, %v12095_v22 }
 0x2bd   : > { %1723 = vst.msk [vmem:[%s9623_s12 + $0x5d] sm:$0xf8] %vm1702_vm3, %v1696_v43 }
 0x2be   : > { %v1623_v30 = vrot.slane %v1448_v46, 2  ;;  %7243 = vmatmul.msk.bf16.gmra.mxu0 %vm295_vm0, %v12096_v47  ;;  %7267 = vmatmul.msk.bf16.gmra.mxu1 %vm295_vm0, %v12096_v47 }
 0x2bf   : > { %7287 = vmatmul.msk.bf16.gmra.mxu2 %vm295_vm0, %v12097_v56  ;;  %7385 = vmatmul.msk.bf16.gmra.mxu3 %vm295_vm0, %v9907_v24 }
 0x2c0   : > { %v1624_v9 = vsel %vm1589_vm2, %v1621_v50, %v1623_v30  ;;  %v1674_v34 = vadd.f32 %v1623_v30, %v9551_v36 }
 0x2c1   : > { %v1673_v5 = vadd.f32 %v1624_v9, %v9553_v26  ;;  %v9937_v9 = vld [vmem:[%s8828_s26 + $0x80] sm:$0xff] }
 0x2c2   : > { %v1698_v46 = vmax.f32 %v1674_v34, 0.0  ;;  %v2174_v10 = vpop.f32.mrf.mxu2  ;;  %v2255_v55 = vpop.f32.mrf.mxu3  ;;  %12098 = vst [vmem:[#allocation10_spill] sm:$0xff] %v9937_v9 }
 0x2c3   : > { %v1697_v17 = vmax.f32 %v1673_v5, 0.0  ;;  %v9923_v0 = vadd.f32 %v2255_v55, %v2174_v10  ;;  %v1420_v43 = vpop.f32.mrf.mxu0  ;;  %v9925_v22 = vpop.f32.mrf.mxu1  ;;  %v12099_v55 = vld [vmem:[#allocation14_spill] sm:$0xff] }
 0x2c4   : > { %1725 = vst.msk [vmem:[%s9623_s12 + $0x6d] sm:$0x7] %vm1706_vm4, %v1698_v46  ;;  %v1449_v50 = vadd.f32 %v1420_v43, %v9548_v35  ;;  %v12100_v35 = vld [vmem:[#allocation13_spill] sm:$0xff] }
 0x2c5   : > { %1724 = vst.msk [vmem:[%s9623_s12 + $0x65] sm:$0xff] %vm1704_vm5, %v1697_v17 }
 0x2c6   : > { %v1625_v5 = vrot.slane %v1449_v50, 2 }
 0x2ca   : > { %v2176_v47 = vpop.f32.mrf.mxu2  ;;  %v2257_v36 = vpop.f32.mrf.mxu3 }
 0x2cb   : > { %v9932_v30 = vadd.f32 %v2257_v36, %v2176_v47  ;;  %v1423_v26 = vpop.f32.mrf.mxu0  ;;  %v9934_v56 = vpop.f32.mrf.mxu1 }
 0x2cc   : > { %v1450_v34 = vadd.f32 %v1423_v26, %v9563_v53 }
 0x2ce   : > { %v1626_v10 = vrot.slane %v1450_v34, 2  ;;  %7244 = vmatmul.msk.bf16.gmra.mxu0 %vm295_vm0, %v12099_v55  ;;  %7268 = vmatmul.msk.bf16.gmra.mxu1 %vm295_vm0, %v12099_v55 }
 0x2cf   : > { %7288 = vmatmul.msk.bf16.gmra.mxu2 %vm295_vm0, %v12100_v35  ;;  %7386 = vmatmul.msk.bf16.gmra.mxu3 %vm295_vm0, %v9937_v9  ;;  %v9970_v9 = vld [vmem:[%s8828_s26 + $0x88] sm:$0xff] }
 0x2d0   : > { %v1627_v46 = vsel %vm1589_vm2, %v1625_v5, %v1626_v10  ;;  %v9960_v5 = vld [vmem:[%s11941_s2 + $0x1] ss:$0 sm:$0xff] }
 0x2d1   : > { %v1675_v17 = vadd.f32 %v1627_v46, %v9578_v58 }
 0x2d2   : > { %v2179_v53 = vpop.f32.mrf.mxu2  ;;  %v2260_v43 = vpop.f32.mrf.mxu3 }
 0x2d3   : > { %v1699_v50 = vmax.f32 %v1675_v17, 0.0  ;;  %v9950_v47 = vadd.f32 %v2260_v43, %v2179_v53  ;;  %v1425_v36 = vpop.f32.mrf.mxu0  ;;  %v9952_v26 = vpop.f32.mrf.mxu1  ;;  %v1949_v17 = vadd.f32 %v9960_v5, %v9585_v18  ;;  %v1950_v18 = vadd.f32 %v9960_v5, %v9606_v59 }
 0x2d4   : > { %12102 = vst [vmem:[#allocation8_spill] sm:$0xff] %v9952_v26  ;;  %v1451_v34 = vadd.f32 %v1425_v36, %v9575_v37 }
 0x2d5   : > { %12101 = vst [vmem:[#allocation23_spill] sm:$0xff] %v9950_v47 }
 0x2d6   : > { %1726 = vst.msk [vmem:[%s9623_s12 + $0x6d] sm:$0xf8] %vm1702_vm3, %v1699_v50  ;;  %v1628_v58 = vrot.slane %v1451_v34, 2  ;;  %v12103_v34 = vld [vmem:[#allocation15_spill] sm:$0xff] }
 0x2d8   : > { %v1629_v55 = vsel %vm1589_vm2, %v1626_v10, %v1628_v58  ;;  %v1677_v35 = vadd.f32 %v1628_v58, %v9595_v6 }
 0x2d9   : > { %v1676_v46 = vadd.f32 %v1629_v55, %v9601_v52 }
 0x2da   : > { %v1701_v37 = vmax.f32 %v1677_v35, 0.0  ;;  %v2181_v53 = vpop.f32.mrf.mxu2  ;;  %v2262_v43 = vpop.f32.mrf.mxu3 }
 0x2db   : > { %v1700_v50 = vmax.f32 %v1676_v46, 0.0  ;;  %v9967_v36 = vadd.f32 %v2262_v43, %v2181_v53  ;;  %v2291_v47 = vpop.f32.mrf.mxu0  ;;  %v2401_v26 = vpop.f32.mrf.mxu1  ;;  %v10003_v43 = vld [vmem:[%s8828_s26 + $0x90] sm:$0xff] }
 0x2dc   : > { %1728 = vst.msk [vmem:[%s9623_s12 + $0x7d] sm:$0x7] %vm1706_vm4, %v1701_v37  ;;  %v9974_v10 = vadd.f32 %v2291_v47, %v1949_v17 }
 0x2dd   : > { %1727 = vst.msk [vmem:[%s9623_s12 + $0x75] sm:$0xff] %vm1704_vm5, %v1700_v50 }
 0x2de   : > { %7245 = vmatmul.msk.bf16.gmra.mxu0 %vm295_vm0, %v9588_v51  ;;  %7269 = vmatmul.msk.bf16.gmra.mxu1 %vm295_vm0, %v9588_v51 }
 0x2df   : > { %7289 = vmatmul.msk.bf16.gmra.mxu2 %vm295_vm0, %v9581_v14  ;;  %7387 = vmatmul.msk.bf16.gmra.mxu3 %vm295_vm0, %v9970_v9  ;;  %v1951_v14 = vadd.f32 %v9960_v5, %v9617_v38  ;;  %v1952_v38 = vadd.f32 %v9960_v5, %v9640_v8 }
 0x2e2   : > { %v2482_v6 = vpop.f32.mrf.mxu2  ;;  %v2692_v52 = vpop.f32.mrf.mxu3 }
 0x2e3   : > { %v9988_v47 = vadd.f32 %v2482_v6, %v2401_v26  ;;  %v9991_v58 = vadd.f32 %v2692_v52, %v12103_v34  ;;  %v2293_v55 = vpop.f32.mrf.mxu0  ;;  %v2403_v35 = vpop.f32.mrf.mxu1 }
 0x2e4   : > { %v9993_v51 = vadd.f32 %v2293_v55, %v1950_v18 }
 0x2ea   : > { %v2484_v46 = vpop.f32.mrf.mxu2  ;;  %v2694_v17 = vpop.f32.mrf.mxu3 }
 0x2eb   : > { %v9997_v37 = vadd.f32 %v2484_v46, %v2403_v35  ;;  %v10000_v59 = vadd.f32 %v2694_v17, %v9615_v41  ;;  %v2296_v53 = vpop.f32.mrf.mxu0  ;;  %v2406_v26 = vpop.f32.mrf.mxu1 }
 0x2ec   : > { %v10005_v50 = vadd.f32 %v2296_v53, %v1951_v14 }
 0x2ee   : > { %7246 = vmatmul.msk.bf16.gmra.mxu0 %vm295_vm0, %v9620_v61  ;;  %7270 = vmatmul.msk.bf16.gmra.mxu1 %vm295_vm0, %v9620_v61 }
 0x2ef   : > { %7290 = vmatmul.msk.bf16.gmra.mxu2 %vm295_vm0, %v9613_v20  ;;  %7388 = vmatmul.msk.bf16.gmra.mxu3 %vm295_vm0, %v10003_v43  ;;  %v1953_v20 = vadd.f32 %v9960_v5, %v9652_v15  ;;  %v12104_v15 = vld [vmem:[#allocation16_spill] sm:$0xff] }
 0x2f2   : > { %v2487_v41 = vpop.f32.mrf.mxu2  ;;  %v2697_v18 = vpop.f32.mrf.mxu3 }
 0x2f3   : > { %v10017_v6 = vadd.f32 %v2487_v41, %v2406_v26  ;;  %v10020_v52 = vadd.f32 %v2697_v18, %v9638_v27  ;;  %v2298_v34 = vpop.f32.mrf.mxu0  ;;  %v2408_v55 = vpop.f32.mrf.mxu1  ;;  %v10032_v26 = vld [vmem:[%s8828_s26 + $0x98] sm:$0xff] }
 0x2f4   : > { %v10022_v61 = vadd.f32 %v2298_v34, %v1952_v38  ;;  %v12105_v38 = vld [vmem:[#allocation26_spill] sm:$0xff] }
 0x2f5   : > { %v1954_v41 = vadd.f32 %v9960_v5, %v12105_v38 }
 0x2fa   : > { %v2489_v35 = vpop.f32.mrf.mxu2  ;;  %v2699_v14 = vpop.f32.mrf.mxu3 }
 0x2fb   : > { %v10026_v46 = vadd.f32 %v2489_v35, %v2408_v55  ;;  %v10029_v8 = vadd.f32 %v2699_v14, %v9650_v13  ;;  %v2301_v17 = vpop.f32.mrf.mxu0  ;;  %v2411_v53 = vpop.f32.mrf.mxu1  ;;  %v8503_v13 = vld [vmem:[%s11940_s1 + $0x178] sm:$0xff] }
 0x2fc   : > { %v10034_v27 = vadd.f32 %v2301_v17, %v1953_v20  ;;  %3941 = vmatpush.bf16.msrb.mxu2 %v8503_v13  ;;  %v12106_v20 = vld [vmem:[#allocation17_spill] sm:$0xff]  ;;  %v8481_v13 = vld [vmem:[%s11940_s1 + $0x128] sm:$0xff] }
 0x2fd   : > { %3745 = vmatpush.bf16.msrb.mxu0 %v8481_v13 }
 0x2fe   : > { %7247 = vmatmul.msk.bf16.gmra.mxu0 %vm295_vm0, %v9655_v44  ;;  %7271 = vmatmul.msk.bf16.gmra.mxu1 %vm295_vm0, %v9655_v44 }
 0x2ff   : > { %7291 = vmatmul.msk.bf16.gmra.mxu2 %vm295_vm0, %v12104_v15  ;;  %7389 = vmatmul.msk.bf16.gmra.mxu3 %vm295_vm0, %v10032_v26  ;;  %v8485_v15 = vld [vmem:[%s11940_s1 + $0x148] sm:$0xff] }
 0x300   : > { %4022 = vmatpush.bf16.msrb.mxu3 %v8485_v15 }
 0x302   : > { %v2492_v18 = vpop.f32.mrf.mxu2  ;;  %v2702_v34 = vpop.f32.mrf.mxu3 }
 0x303   : > { %v10049_v55 = vadd.f32 %v2492_v18, %v2411_v53  ;;  %v10052_v44 = vadd.f32 %v2702_v34, %v12106_v20  ;;  %v2303_v35 = vpop.f32.mrf.mxu0  ;;  %v2413_v14 = vpop.f32.mrf.mxu1  ;;  %v1955_v53 = vadd.f32 %v9960_v5, %v9692_v19  ;;  %v8501_v19 = vld [vmem:[%s11940_s1 + $0x168] sm:$0xff] }
 0x304   : > { %v10054_v17 = vadd.f32 %v2303_v35, %v1954_v41  ;;  %3831 = vmatpush.bf16.msrb.mxu1 %v8501_v19 }
 0x305   : > { %12107 = vst [vmem:[#allocation7_spill] sm:$0xff] %v10052_v44  ;;  %v10070_v44 = vld [vmem:[%s8828_s26 + $0xa0] sm:$0xff] }
 0x306   : > { %12108 = vst [vmem:[#allocation9_spill] sm:$0xff] %v10054_v17 }
 0x307   : > { %12109 = vst [vmem:[#allocation25_spill] sm:$0xff] %v10070_v44 }
 0x30a   : > { %v2494_v38 = vpop.f32.mrf.mxu2  ;;  %v2704_v18 = vpop.f32.mrf.mxu3 }
 0x30b   : > { %v10064_v34 = vadd.f32 %v2494_v38, %v2413_v14  ;;  %v10067_v41 = vadd.f32 %v2704_v18, %v9690_v31  ;;  %v2306_v20 = vpop.f32.mrf.mxu0  ;;  %v2416_v35 = vpop.f32.mrf.mxu1  ;;  %v1956_v31 = vadd.f32 %v9960_v5, %v9712_v7  ;;  %v1957_v18 = vadd.f32 %v9960_v5, %v9722_v28 }
 0x30c   : > { %v10072_v17 = vadd.f32 %v2306_v20, %v1955_v53 }
 0x30e   : > { %12110 = vst [vmem:[#allocation12_spill] sm:$0xff] %v10072_v17  ;;  %7248 = vmatmul.msk.bf16.gmra.mxu0 %vm295_vm0, %v9695_v49  ;;  %7272 = vmatmul.msk.bf16.gmra.mxu1 %vm295_vm0, %v9695_v49 }
 0x30f   : > { %7292 = vmatmul.msk.bf16.gmra.mxu2 %vm295_vm0, %v9688_v16  ;;  %7390 = vmatmul.msk.bf16.gmra.mxu3 %vm295_vm0, %v10070_v44 }
 0x312   : > { %v2497_v14 = vpop.f32.mrf.mxu2  ;;  %v2707_v15 = vpop.f32.mrf.mxu3 }
 0x313   : > { %v10087_v13 = vadd.f32 %v2497_v14, %v2416_v35  ;;  %v10090_v49 = vadd.f32 %v2707_v15, %v9710_v33  ;;  %v2308_v16 = vpop.f32.mrf.mxu0  ;;  %v2418_v53 = vpop.f32.mrf.mxu1  ;;  %v10102_v14 = vld [vmem:[%s8828_s26 + $0xc] sm:$0xff] }
 0x314   : > { %v10092_v38 = vadd.f32 %v2308_v16, %v1956_v31  ;;  %12112 = vst [vmem:[#allocation24_spill] sm:$0xff] %v10102_v14  ;;  %v10105_v33 = vld [vmem:[%s8828_s26 + $0x30] sm:$0xff] }
 0x315   : > { %12113 = vst [vmem:[#allocation14_spill] sm:$0xff] %v10105_v33 }
 0x31a   : > { %v2499_v20 = vpop.f32.mrf.mxu2  ;;  %v2709_v19 = vpop.f32.mrf.mxu3 }
 0x31b   : > { %v10096_v17 = vadd.f32 %v2499_v20, %v2418_v53  ;;  %v10099_v7 = vadd.f32 %v2709_v19, %v9720_v25  ;;  %v2311_v44 = vpop.f32.mrf.mxu0  ;;  %v2421_v35 = vpop.f32.mrf.mxu1  ;;  %v1958_v25 = vadd.f32 %v9960_v5, %v9743_v45  ;;  %v1959_v20 = vadd.f32 %v9960_v5, %v9752_v42 }
 0x31c   : > { %v10107_v15 = vadd.f32 %v2311_v44, %v1957_v18 }
 0x31d   : > { %12111 = vst [vmem:[#allocation11_spill] sm:$0xff] %v10099_v7 }
 0x31e   : > { %7403 = vmatmul.msk.bf16.vlgmr.msra.gmra.mxu0 %vm295_vm0, %v9725_v60  ;;  %7427 = vmatmul.msk.bf16.vlgmr.msra.gmra.mxu1 %vm295_vm0, %v9725_v60 }
 0x31f   : > { %7554 = vmatmul.msk.bf16.vlgmr.msra.gmra.mxu2 %vm295_vm0, %v10102_v14  ;;  %7654 = vmatmul.msk.bf16.vlgmr.msra.gmra.mxu3 %vm295_vm0, %v10105_v33 }
 0x322   : > { %v2502_v28 = vpop.f32.mrf.mxu2  ;;  %v2712_v44 = vpop.f32.mrf.mxu3 }
 0x323   : > { %v10119_v31 = vadd.f32 %v2502_v28, %v2421_v35  ;;  %v10122_v16 = vadd.f32 %v2712_v44, %v9741_v12  ;;  %v2313_v53 = vpop.f32.mrf.mxu0  ;;  %v2423_v60 = vpop.f32.mrf.mxu1  ;;  %v10134_v28 = vld [vmem:[%s8828_s26 + $0x14] sm:$0xff] }
 0x324   : > { %v10124_v18 = vadd.f32 %v2313_v53, %v1958_v25  ;;  %12115 = vst [vmem:[#allocation15_spill] sm:$0xff] %v10134_v28  ;;  %v10137_v12 = vld [vmem:[%s8828_s26 + $0x38] sm:$0xff] }
 0x325   : > { %12116 = vst [vmem:[#allocation16_spill] sm:$0xff] %v10137_v12 }
 0x32a   : > { %v2504_v19 = vpop.f32.mrf.mxu2  ;;  %v2714_v7 = vpop.f32.mrf.mxu3 }
 0x32b   : > { %v10128_v33 = vadd.f32 %v2504_v19, %v2423_v60  ;;  %v10131_v45 = vadd.f32 %v2714_v7, %v9750_v48  ;;  %v2316_v14 = vpop.f32.mrf.mxu0  ;;  %v2426_v35 = vpop.f32.mrf.mxu1  ;;  %v1960_v48 = vadd.f32 %v9960_v5, %v9770_v1 }
 0x32c   : > { %v10139_v44 = vadd.f32 %v2316_v14, %v1959_v20  ;;  %v1961_v20 = vadd.f32 %v9960_v5, %v9780_v39 }
 0x32d   : > { %12114 = vst [vmem:[#allocation13_spill] sm:$0xff] %v10131_v45 }
 0x32e   : > { %7404 = vmatmul.msk.bf16.gmra.mxu0 %vm295_vm0, %v9755_v29  ;;  %7428 = vmatmul.msk.bf16.gmra.mxu1 %vm295_vm0, %v9755_v29 }
 0x32f   : > { %7555 = vmatmul.msk.bf16.gmra.mxu2 %vm295_vm0, %v10134_v28  ;;  %7655 = vmatmul.msk.bf16.gmra.mxu3 %vm295_vm0, %v10137_v12 }
 0x332   : > { %v2507_v42 = vpop.f32.mrf.mxu2  ;;  %v2717_v7 = vpop.f32.mrf.mxu3 }
 0x333   : > { %v10151_v14 = vadd.f32 %v2507_v42, %v2426_v35  ;;  %v10154_v25 = vadd.f32 %v2717_v7, %v9768_v2  ;;  %v2318_v53 = vpop.f32.mrf.mxu0  ;;  %v2428_v29 = vpop.f32.mrf.mxu1  ;;  %v10166_v42 = vld [vmem:[%s8828_s26 + $0x1c] sm:$0xff] }
 0x334   : > { %v10156_v60 = vadd.f32 %v2318_v53, %v1960_v48  ;;  %12117 = vst [vmem:[#allocation26_spill] sm:$0xff] %v10166_v42  ;;  %v10169_v2 = vld [vmem:[%s8828_s26 + $0x40] sm:$0xff] }
 0x335   : > { %12118 = vst [vmem:[#allocation17_spill] sm:$0xff] %v10169_v2 }
 0x33a   : > { %v2509_v19 = vpop.f32.mrf.mxu2  ;;  %v2719_v45 = vpop.f32.mrf.mxu3 }
 0x33b   : > { %v10160_v12 = vadd.f32 %v2509_v19, %v2428_v29  ;;  %v10163_v1 = vadd.f32 %v2719_v45, %v9778_v11  ;;  %v2321_v28 = vpop.f32.mrf.mxu0  ;;  %v2431_v35 = vpop.f32.mrf.mxu1  ;;  %v1962_v11 = vadd.f32 %v9960_v5, %v9800_v3 }
 0x33c   : > { %v10171_v7 = vadd.f32 %v2321_v28, %v1961_v20  ;;  %v1963_v20 = vadd.f32 %v9960_v5, %v9807_v54 }
 0x33e   : > { %12119 = vst [vmem:[#allocation28_spill] sm:$0xff] %v10171_v7  ;;  %7405 = vmatmul.msk.bf16.gmra.mxu0 %vm295_vm0, %v9783_v63  ;;  %7429 = vmatmul.msk.bf16.gmra.mxu1 %vm295_vm0, %v9783_v63 }
 0x33f   : > { %7556 = vmatmul.msk.bf16.gmra.mxu2 %vm295_vm0, %v10166_v42  ;;  %7656 = vmatmul.msk.bf16.gmra.mxu3 %vm295_vm0, %v10169_v2 }
 0x342   : > { %v2512_v39 = vpop.f32.mrf.mxu2  ;;  %v2722_v45 = vpop.f32.mrf.mxu3 }
 0x343   : > { %v10183_v28 = vadd.f32 %v2512_v39, %v2431_v35  ;;  %v10186_v48 = vadd.f32 %v2722_v45, %v9798_v57  ;;  %v2323_v53 = vpop.f32.mrf.mxu0  ;;  %v2433_v63 = vpop.f32.mrf.mxu1  ;;  %v10198_v39 = vld [vmem:[%s8828_s26 + $0x24] sm:$0xff] }
 0x344   : > { %v10188_v29 = vadd.f32 %v2323_v53, %v1962_v11  ;;  %12124 = vst [vmem:[#allocation33_spill] sm:$0xff] %v10198_v39  ;;  %v10201_v57 = vld [vmem:[%s8828_s26 + $0x48] sm:$0xff]  ;;  %v12128_v53 = vld [vmem:[#allocation18_spill] sm:$0xff] }
 0x345   : > { %12120 = vst [vmem:[#allocation29_spill] sm:$0xff] %v10186_v48 }
 0x346   : > { %12121 = vst [vmem:[#allocation30_spill] sm:$0xff] %v10188_v29 }
 0x347   : > { %12125 = vst [vmem:[#allocation34_spill] sm:$0xff] %v10201_v57 }
 0x34a   : > { %v2514_v19 = vpop.f32.mrf.mxu2  ;;  %v2724_v7 = vpop.f32.mrf.mxu3 }
 0x34b   : > { %v10192_v2 = vadd.f32 %v2514_v19, %v2433_v63  ;;  %v10195_v3 = vadd.f32 %v2724_v7, %v9805_v40  ;;  %v2326_v42 = vpop.f32.mrf.mxu0  ;;  %v2436_v35 = vpop.f32.mrf.mxu1  ;;  %v12127_v40 = vld [vmem:[#allocation19_spill] sm:$0xff] }
 0x34c   : > { %v10203_v45 = vadd.f32 %v2326_v42, %v1963_v20  ;;  %v1964_v54 = vadd.f32 %v9960_v5, %v12127_v40  ;;  %v12130_v40 = vld [vmem:[#allocation3_spill] sm:$0xff] }
 0x34d   : > { %12122 = vst [vmem:[#allocation31_spill] sm:$0xff] %v10192_v2 }
 0x34e   : > { %12123 = vst [vmem:[#allocation32_spill] sm:$0xff] %v10195_v3  ;;  %7406 = vmatmul.msk.bf16.gmra.mxu0 %vm295_vm0, %v9810_v32  ;;  %7430 = vmatmul.msk.bf16.gmra.mxu1 %vm295_vm0, %v9810_v32  ;;  %v12129_v3 = vld [vmem:[#allocation20_spill] sm:$0xff] }
 0x34f   : > { %12126 = vst [vmem:[#allocation35_spill] sm:$0xff] %v10203_v45  ;;  %7557 = vmatmul.msk.bf16.gmra.mxu2 %vm295_vm0, %v10198_v39  ;;  %7657 = vmatmul.msk.bf16.gmra.mxu3 %vm295_vm0, %v10201_v57  ;;  %v1965_v39 = vadd.f32 %v9960_v5, %v12129_v3  ;;  %v8502_v3 = vld [vmem:[%s11940_s1 + $0x170] sm:$0xff] }
 0x350   : > { %3942 = vmatpush.bf16.msrb.mxu2 %v8502_v3  ;;  %v8484_v3 = vld [vmem:[%s11940_s1 + $0x140] sm:$0xff] }
 0x351   : > { %4023 = vmatpush.bf16.msrb.mxu3 %v8484_v3  ;;  %v12146_v3 = vld [vmem:[#allocation21_spill] sm:$0xff] }
 0x352   : > { %v2517_v7 = vpop.f32.mrf.mxu2  ;;  %v2727_v42 = vpop.f32.mrf.mxu3 }
 0x353   : > { %v10215_v11 = vadd.f32 %v2517_v7, %v2436_v35  ;;  %v10218_v63 = vadd.f32 %v2727_v42, %v12128_v53  ;;  %v2328_v20 = vpop.f32.mrf.mxu0  ;;  %v2438_v32 = vpop.f32.mrf.mxu1  ;;  %v10230_v7 = vld [vmem:[%s8828_s26 + $0x2c] sm:$0xff] }
 0x354   : > { %v10220_v19 = vadd.f32 %v2328_v20, %v1964_v54  ;;  %12132 = vst [vmem:[#allocation18_spill] sm:$0xff] %v10230_v7  ;;  %v10233_v42 = vld [vmem:[%s8828_s26 + $0x50] sm:$0xff]  ;;  %v12135_v54 = vld [vmem:[#allocation27_spill] sm:$0xff] }
 0x355   : > { %12133 = vst [vmem:[#allocation20_spill] sm:$0xff] %v10233_v42 }
 0x35a   : > { %v2519_v57 = vpop.f32.mrf.mxu2  ;;  %v2729_v45 = vpop.f32.mrf.mxu3 }
 0x35b   : > { %v10224_v48 = vadd.f32 %v2519_v57, %v2438_v32  ;;  %v10227_v2 = vadd.f32 %v2729_v45, %v12130_v40  ;;  %v2331_v29 = vpop.f32.mrf.mxu0  ;;  %v2441_v35 = vpop.f32.mrf.mxu1  ;;  %v12136_v57 = vld [vmem:[#allocation4_spill] sm:$0xff]  ;;  %v12138_v32 = vld [vmem:[#allocation22_spill] sm:$0xff] }
 0x35c   : > { %v10235_v53 = vadd.f32 %v2331_v29, %v1965_v39  ;;  %v1966_v29 = vadd.f32 %v9960_v5, %v12136_v57  ;;  %v8480_v57 = vld [vmem:[%s11940_s1 + $0x120] sm:$0xff] }
 0x35d   : > { %12131 = vst [vmem:[#allocation19_spill] sm:$0xff] %v10227_v2  ;;  %3746 = vmatpush.bf16.msrb.mxu0 %v8480_v57 }
 0x35e   : > { %12134 = vst [vmem:[#allocation3_spill] sm:$0xff] %v10235_v53  ;;  %7407 = vmatmul.msk.bf16.gmra.mxu0 %vm295_vm0, %v12135_v54  ;;  %7431 = vmatmul.msk.bf16.gmra.mxu1 %vm295_vm0, %v12135_v54 }
 0x35f   : > { %7558 = vmatmul.msk.bf16.gmra.mxu2 %vm295_vm0, %v10230_v7  ;;  %7658 = vmatmul.msk.bf16.gmra.mxu3 %vm295_vm0, %v10233_v42  ;;  %v10274_v7 = vld [vmem:[%s8828_s26 + $0x58] sm:$0xff] }
 0x360   : > { %12144 = vst [vmem:[#allocation39_spill] sm:$0xff] %v10274_v7 }
 0x362   : > { %v2522_v39 = vpop.f32.mrf.mxu2  ;;  %v2732_v45 = vpop.f32.mrf.mxu3 }
 0x363   : > { %v10250_v20 = vadd.f32 %v2522_v39, %v2441_v35  ;;  %v10253_v40 = vadd.f32 %v2732_v45, %v12138_v32  ;;  %v2333_v54 = vpop.f32.mrf.mxu0  ;;  %v2443_v2 = vpop.f32.mrf.mxu1  ;;  %v1967_v35 = vadd.f32 %v9960_v5, %v9874_v21  ;;  %v8500_v21 = vld [vmem:[%s11940_s1 + $0x160] sm:$0xff] }
 0x364   : > { %v10255_v42 = vadd.f32 %v2333_v54, %v1966_v29  ;;  %3832 = vmatpush.bf16.msrb.mxu1 %v8500_v21 }
 0x365   : > { %12137 = vst [vmem:[#allocation27_spill] sm:$0xff] %v10250_v20 }
 0x366   : > { %12139 = vst [vmem:[#allocation4_spill] sm:$0xff] %v10253_v40 }
 0x367   : > { %12140 = vst [vmem:[#allocation22_spill] sm:$0xff] %v10255_v42  ;;  %v10271_v42 = vld [vmem:[%s8828_s26 + $0x34] sm:$0xff] }
 0x368   : > { %12143 = vst [vmem:[#allocation38_spill] sm:$0xff] %v10271_v42 }
 0x36a   : > { %v2524_v39 = vpop.f32.mrf.mxu2  ;;  %v2734_v45 = vpop.f32.mrf.mxu3 }
 0x36b   : > { %v10265_v32 = vadd.f32 %v2524_v39, %v2443_v2  ;;  %v10268_v29 = vadd.f32 %v2734_v45, %v9872_v23  ;;  %v2336_v54 = vpop.f32.mrf.mxu0  ;;  %v2446_v40 = vpop.f32.mrf.mxu1  ;;  %v12147_v23 = vld [vmem:[#allocation5_spill] sm:$0xff]  ;;  %v12148_v45 = vld [vmem:[#allocation6_spill] sm:$0xff] }
 0x36c   : > { %v10276_v20 = vadd.f32 %v2336_v54, %v1967_v35  ;;  %v1968_v2 = vadd.f32 %v9960_v5, %v12147_v23 }
 0x36d   : > { %12141 = vst [vmem:[#allocation36_spill] sm:$0xff] %v10265_v32 }
 0x36e   : > { %12142 = vst [vmem:[#allocation37_spill] sm:$0xff] %v10268_v29  ;;  %7408 = vmatmul.msk.bf16.gmra.mxu0 %vm295_vm0, %v12146_v3  ;;  %7432 = vmatmul.msk.bf16.gmra.mxu1 %vm295_vm0, %v12146_v3 }
 0x36f   : > { %12145 = vst [vmem:[#allocation40_spill] sm:$0xff] %v10276_v20  ;;  %7559 = vmatmul.msk.bf16.gmra.mxu2 %vm295_vm0, %v10271_v42  ;;  %7659 = vmatmul.msk.bf16.gmra.mxu3 %vm295_vm0, %v10274_v7  ;;  %v1969_v42 = vadd.f32 %v9960_v5, %v9904_v62  ;;  %v1970_v62 = vadd.f32 %v9960_v5, %v9925_v22 }
 0x372   : > { %v2527_v57 = vpop.f32.mrf.mxu2  ;;  %v2737_v35 = vpop.f32.mrf.mxu3 }
 0x373   : > { %v10291_v39 = vadd.f32 %v2527_v57, %v2446_v40  ;;  %v10294_v54 = vadd.f32 %v2737_v35, %v12148_v45  ;;  %v2338_v3 = vpop.f32.mrf.mxu0  ;;  %v2448_v20 = vpop.f32.mrf.mxu1  ;;  %v10306_v57 = vld [vmem:[%s8828_s26 + $0x3c] sm:$0xff] }
 0x374   : > { %v10296_v7 = vadd.f32 %v2338_v3, %v1968_v2  ;;  %12150 = vst [vmem:[#allocation5_spill] sm:$0xff] %v10306_v57  ;;  %v10309_v35 = vld [vmem:[%s8828_s26 + $0x60] sm:$0xff]  ;;  %v1971_v3 = vadd.f32 %v9960_v5, %v9934_v56 }
 0x375   : > { %12151 = vst [vmem:[#allocation6_spill] sm:$0xff] %v10309_v35 }
 0x37a   : > { %v2529_v21 = vpop.f32.mrf.mxu2  ;;  %v2739_v29 = vpop.f32.mrf.mxu3 }
 0x37b   : > { %v10300_v32 = vadd.f32 %v2529_v21, %v2448_v20  ;;  %v10303_v23 = vadd.f32 %v2739_v29, %v9902_v4  ;;  %v2341_v53 = vpop.f32.mrf.mxu0  ;;  %v2451_v40 = vpop.f32.mrf.mxu1 }
 0x37c   : > { %v10311_v45 = vadd.f32 %v2341_v53, %v1969_v42 }
 0x37d   : > { %12149 = vst [vmem:[#allocation21_spill] sm:$0xff] %v10303_v23 }
 0x37e   : > { %7409 = vmatmul.msk.bf16.gmra.mxu0 %vm295_vm0, %v9907_v24  ;;  %7433 = vmatmul.msk.bf16.gmra.mxu1 %vm295_vm0, %v9907_v24 }
 0x37f   : > { %7560 = vmatmul.msk.bf16.gmra.mxu2 %vm295_vm0, %v10306_v57  ;;  %7660 = vmatmul.msk.bf16.gmra.mxu3 %vm295_vm0, %v10309_v35 }
 0x382   : > { %v2532_v4 = vpop.f32.mrf.mxu2  ;;  %v2742_v42 = vpop.f32.mrf.mxu3 }
 0x383   : > { %v10323_v53 = vadd.f32 %v2532_v4, %v2451_v40  ;;  %v10326_v20 = vadd.f32 %v2742_v42, %v9923_v0  ;;  %v2343_v29 = vpop.f32.mrf.mxu0  ;;  %v2453_v24 = vpop.f32.mrf.mxu1  ;;  %v10338_v4 = vld [vmem:[%s8828_s26 + $0x44] sm:$0xff] }
 0x384   : > { %v10328_v2 = vadd.f32 %v2343_v29, %v1970_v62  ;;  %12155 = vst [vmem:[#allocation44_spill] sm:$0xff] %v10338_v4  ;;  %v10341_v0 = vld [vmem:[%s8828_s26 + $0x68] sm:$0xff]  ;;  %v12158_v62 = vld [vmem:[#allocation10_spill] sm:$0xff] }
 0x385   : > { %12156 = vst [vmem:[#allocation45_spill] sm:$0xff] %v10341_v0 }
 0x386   : > { %12152 = vst [vmem:[#allocation41_spill] sm:$0xff] %v10328_v2 }
 0x38a   : > { %v2534_v21 = vpop.f32.mrf.mxu2  ;;  %v2744_v23 = vpop.f32.mrf.mxu3 }
 0x38b   : > { %v10332_v35 = vadd.f32 %v2534_v21, %v2453_v24  ;;  %v10335_v22 = vadd.f32 %v2744_v23, %v9932_v30  ;;  %v2346_v57 = vpop.f32.mrf.mxu0  ;;  %v2456_v40 = vpop.f32.mrf.mxu1  ;;  %v12159_v30 = vld [vmem:[#allocation8_spill] sm:$0xff]  ;;  %v12160_v24 = vld [vmem:[#allocation23_spill] sm:$0xff] }
 0x38c   : > { %v10343_v42 = vadd.f32 %v2346_v57, %v1971_v3  ;;  %v1972_v56 = vadd.f32 %v9960_v5, %v12159_v30  ;;  %v10368_v30 = vld [vmem:[%s8828_s26 + $0x4c] sm:$0xff] }
 0x38d   : > { %12153 = vst [vmem:[#allocation42_spill] sm:$0xff] %v10332_v35 }
 0x38e   : > { %12154 = vst [vmem:[#allocation43_spill] sm:$0xff] %v10335_v22  ;;  %7410 = vmatmul.msk.bf16.gmra.mxu0 %vm295_vm0, %v12158_v62  ;;  %7434 = vmatmul.msk.bf16.gmra.mxu1 %vm295_vm0, %v12158_v62 }
 0x38f   : > { %12157 = vst [vmem:[#allocation46_spill] sm:$0xff] %v10343_v42  ;;  %7561 = vmatmul.msk.bf16.gmra.mxu2 %vm295_vm0, %v10338_v4  ;;  %7661 = vmatmul.msk.bf16.gmra.mxu3 %vm295_vm0, %v10341_v0 }
 0x390   : > { %12161 = vst [vmem:[#allocation10_spill] sm:$0xff] %v10368_v30 }
 0x392   : > { %v2537_v23 = vpop.f32.mrf.mxu2  ;;  %v2747_v57 = vpop.f32.mrf.mxu3 }
 0x393   : > { %v10355_v29 = vadd.f32 %v2537_v23, %v2456_v40  ;;  %v10358_v3 = vadd.f32 %v2747_v57, %v12160_v24  ;;  %v2348_v21 = vpop.f32.mrf.mxu0  ;;  %v2458_v62 = vpop.f32.mrf.mxu1  ;;  %v10371_v40 = vld [vmem:[%s8828_s26 + $0x70] sm:$0xff] }
 0x394   : > { %v10360_v22 = vadd.f32 %v2348_v21, %v1972_v56  ;;  %12162 = vst [vmem:[#allocation8_spill] sm:$0xff] %v10371_v40 }
 0x39a   : > { %v2539_v4 = vpop.f32.mrf.mxu2  ;;  %v2749_v42 = vpop.f32.mrf.mxu3 }
 0x39b   : > { %v10362_v35 = vadd.f32 %v2539_v4, %v2458_v62  ;;  %v10365_v0 = vadd.f32 %v2749_v42, %v9967_v36  ;;  %v2802_v2 = vpop.f32.mrf.mxu0  ;;  %v2912_v5 = vpop.f32.mrf.mxu1 }
 0x39c   : > { %v2862_v36 = vadd.f32 %v2802_v2, %v9974_v10  ;;  %v2972_v4 = vadd.f32 %v2912_v5, %v9988_v47 }
 0x39e   : > { %7411 = vmatmul.msk.bf16.gmra.mxu0 %vm295_vm0, %v9970_v9  ;;  %7435 = vmatmul.msk.bf16.gmra.mxu1 %vm295_vm0, %v9970_v9  ;;  %v3020_v21 = vrot.slane %v2862_v36, 2  ;;  %v3133_v62 = vrot.slane %v2972_v4, 4  ;;  %v10400_v36 = vld [vmem:[%s8828_s26 + $0x78] sm:$0xff] }
 0x39f   : > { %7562 = vmatmul.msk.bf16.gmra.mxu2 %vm295_vm0, %v10368_v30  ;;  %7662 = vmatmul.msk.bf16.gmra.mxu3 %vm295_vm0, %v10371_v40 }
 0x3a2   : > { %v10383_v42 = vpop.f32.mrf.mxu2  ;;  %v10385_v56 = vpop.f32.mrf.mxu3 }
 0x3a3   : > { %12163 = vst [vmem:[#allocation23_spill] sm:$0xff] %v10383_v42  ;;  %v2804_v23 = vpop.f32.mrf.mxu0  ;;  %v2914_v57 = vpop.f32.mrf.mxu1 }
 0x3a4   : > { %12164 = vst [vmem:[#allocation47_spill] sm:$0xff] %v10385_v56  ;;  %v2863_v24 = vadd.f32 %v2804_v23, %v9993_v51  ;;  %v2973_v9 = vadd.f32 %v2914_v57, %v9997_v37  ;;  %v10397_v37 = vld [vmem:[%s8828_s26 + $0x54] sm:$0xff] }
 0x3a6   : > { %v3021_v40 = vrot.slane %v2863_v24, 2  ;;  %v3134_v30 = vrot.slane %v2973_v9, 4 }
 0x3a8   : > { %v3022_v10 = vsel %vm1589_vm2, %v3020_v21, %v3021_v40  ;;  %v3135_v47 = vsel %vm3132_vm6, %v3133_v62, %v3134_v30 }
 0x3a9   : > { %v3084_v2 = vadd.f32 %v3022_v10, %v9991_v58 }
 0x3aa   : > { %v10392_v5 = vpop.f32.mrf.mxu2  ;;  %v10394_v56 = vpop.f32.mrf.mxu3 }
 0x3ab   : > { %v3197_v51 = vadd.f32 %v3135_v47, %v3084_v2  ;;  %v2807_v23 = vpop.f32.mrf.mxu0  ;;  %v2917_v42 = vpop.f32.mrf.mxu1 }
 0x3ac   : > { %v2864_v4 = vadd.f32 %v2807_v23, %v10005_v50  ;;  %v2974_v57 = vadd.f32 %v2917_v42, %v10017_v6 }
 0x3ad   : > { %v3221_v24 = vmax.f32 %v3197_v51, 0.0 }
 0x3ae   : > { %v3023_v9 = vrot.slane %v2864_v4, 2  ;;  %v3136_v58 = vrot.slane %v2974_v57, 4  ;;  %7412 = vmatmul.msk.bf16.gmra.mxu0 %vm295_vm0, %v10003_v43  ;;  %7436 = vmatmul.msk.bf16.gmra.mxu1 %vm295_vm0, %v10003_v43 }
 0x3af   : > { %7439 = vst.msk [vmem:[%s9623_s12 + $0x7e] sm:$0xfc] %vm3246_vm7, %v3221_v24  ;;  %7563 = vmatmul.msk.bf16.gmra.mxu2 %vm295_vm0, %v10397_v37  ;;  %7663 = vmatmul.msk.bf16.gmra.mxu3 %vm295_vm0, %v10400_v36 }
 0x3b0   : > { %v3024_v50 = vsel %vm1589_vm2, %v3021_v40, %v3023_v9  ;;  %v3086_v6 = vadd.f32 %v3023_v9, %v10020_v52  ;;  %v3137_v42 = vsel %vm3132_vm6, %v3134_v30, %v3136_v58  ;;  %v10433_v9 = vld [vmem:[%s8828_s26 + $0x5c] sm:$0xff] }
 0x3b1   : > { %v3085_v21 = vadd.f32 %v3024_v50, %v10000_v59 }
 0x3b2   : > { %v3199_v62 = vadd.f32 %v3136_v58, %v3086_v6  ;;  %v10418_v43 = vpop.f32.mrf.mxu2  ;;  %v10420_v10 = vpop.f32.mrf.mxu3  ;;  %v10436_v58 = vld [vmem:[%s8828_s26 + $0x80] sm:$0xff] }
 0x3b3   : > { %v3198_v47 = vadd.f32 %v3137_v42, %v3085_v21  ;;  %v2809_v2 = vpop.f32.mrf.mxu0  ;;  %v2919_v51 = vpop.f32.mrf.mxu1 }
 0x3b4   : > { %v3223_v23 = vmax.f32 %v3199_v62, 0.0  ;;  %v2865_v52 = vadd.f32 %v2809_v2, %v10022_v61  ;;  %v2975_v59 = vadd.f32 %v2919_v51, %v10026_v46 }
 0x3b5   : > { %v3222_v4 = vmax.f32 %v3198_v47, 0.0 }
 0x3b6   : > { %7441 = vst.msk [vmem:[%s9623_s12 + $0x8e] sm:$0x3] %vm3249_vm8, %v3223_v23  ;;  %v3025_v42 = vrot.slane %v2865_v52, 2  ;;  %v3138_v21 = vrot.slane %v2975_v59, 4 }
 0x3b7   : > { %7440 = vst.msk [vmem:[%s9623_s12 + $0x86] sm:$0xff] %vm1704_vm5, %v3222_v4  ;;  %v12165_v4 = vld [vmem:[#allocation9_spill] sm:$0xff] }
 0x3ba   : > { %v10428_v30 = vpop.f32.mrf.mxu2  ;;  %v10430_v40 = vpop.f32.mrf.mxu3 }
 0x3bb   : > { %v2812_v57 = vpop.f32.mrf.mxu0  ;;  %v2922_v24 = vpop.f32.mrf.mxu1 }
 0x3bc   : > { %v2866_v50 = vadd.f32 %v2812_v57, %v10034_v27  ;;  %v2976_v6 = vadd.f32 %v2922_v24, %v10049_v55 }
 0x3be   : > { %v3026_v62 = vrot.slane %v2866_v50, 2  ;;  %v3139_v61 = vrot.slane %v2976_v6, 4  ;;  %7413 = vmatmul.msk.bf16.gmra.mxu0 %vm295_vm0, %v10032_v26  ;;  %7437 = vmatmul.msk.bf16.gmra.mxu1 %vm295_vm0, %v10032_v26  ;;  %v8538_v6 = vld [vmem:[%s11940_s1 + $0x1c8] sm:$0xff] }
 0x3bf   : > { %7564 = vmatmul.msk.bf16.gmra.mxu2 %vm295_vm0, %v10433_v9  ;;  %7664 = vmatmul.msk.bf16.gmra.mxu3 %vm295_vm0, %v10436_v58 }
 0x3c0   : > { %v3027_v46 = vsel %vm1589_vm2, %v3025_v42, %v3026_v62  ;;  %v3140_v27 = vsel %vm3132_vm6, %v3138_v21, %v3139_v61  ;;  %v8517_v42 = vld [vmem:[%s11940_s1 + $0x188] sm:$0xff]  ;;  %4972 = vmatpush.bf16.msra.mxu3 %v8538_v6 }
 0x3c1   : > { %v3087_v55 = vadd.f32 %v3027_v46, %v10029_v8  ;;  %v8521_v8 = vld [vmem:[%s11940_s1 + $0x1a8] sm:$0xff]  ;;  %4232 = vmatpush.bf16.msra.mxu0 %v8517_v42 }
 0x3c2   : > { %v10451_v47 = vpop.f32.mrf.mxu2  ;;  %v10453_v2 = vpop.f32.mrf.mxu3  ;;  %4452 = vmatpush.bf16.msra.mxu2 %v8521_v8 }
 0x3c3   : > { %v3200_v51 = vadd.f32 %v3140_v27, %v3087_v55  ;;  %v2814_v23 = vpop.f32.mrf.mxu0  ;;  %v2924_v26 = vpop.f32.mrf.mxu1  ;;  %v12166_v27 = vld [vmem:[#allocation7_spill] sm:$0xff] }
 0x3c4   : > { %v2867_v52 = vadd.f32 %v2814_v23, %v12165_v4  ;;  %v2977_v59 = vadd.f32 %v2924_v26, %v10064_v34 }
 0x3c5   : > { %v3224_v57 = vmax.f32 %v3200_v51, 0.0 }
 0x3c6   : > { %v3028_v24 = vrot.slane %v2867_v52, 2  ;;  %v3141_v50 = vrot.slane %v2977_v59, 4 }
 0x3c7   : > { %7442 = vst.msk [vmem:[%s9623_s12 + $0x8e] sm:$0xfc] %vm3246_vm7, %v3224_v57 }
 0x3c8   : > { %v3029_v34 = vsel %vm1589_vm2, %v3026_v62, %v3028_v24  ;;  %v3089_v21 = vadd.f32 %v3028_v24, %v10067_v41  ;;  %v3142_v46 = vsel %vm3132_vm6, %v3139_v61, %v3141_v50  ;;  %v10477_v62 = vld [vmem:[%s8828_s26 + $0x64] sm:$0xff]  ;;  %v12167_v24 = vld [vmem:[#allocation25_spill] sm:$0xff] }
 0x3c9   : > { %v3088_v55 = vadd.f32 %v3029_v34, %v12166_v27  ;;  %v10480_v41 = vld [vmem:[%s8828_s26 + $0x88] sm:$0xff] }
 0x3ca   : > { %v3202_v51 = vadd.f32 %v3141_v50, %v3089_v21  ;;  %v10472_v23 = vpop.f32.mrf.mxu2  ;;  %v10474_v26 = vpop.f32.mrf.mxu3  ;;  %v12168_v50 = vld [vmem:[#allocation12_spill] sm:$0xff] }
 0x3cb   : > { %v3201_v4 = vadd.f32 %v3142_v46, %v3088_v55  ;;  %v2817_v52 = vpop.f32.mrf.mxu0  ;;  %v2927_v59 = vpop.f32.mrf.mxu1 }
 0x3cc   : > { %v3226_v57 = vmax.f32 %v3202_v51, 0.0  ;;  %v2868_v8 = vadd.f32 %v2817_v52, %v12168_v50  ;;  %v2978_v6 = vadd.f32 %v2927_v59, %v10087_v13  ;;  %v8519_v52 = vld [vmem:[%s11940_s1 + $0x198] sm:$0xff] }
 0x3cd   : > { %v3225_v61 = vmax.f32 %v3201_v4, 0.0  ;;  %4342 = vmatpush.bf16.msra.mxu1 %v8519_v52  ;;  %v12172_v52 = vld [vmem:[#allocation11_spill] sm:$0xff] }
 0x3ce   : > { %7444 = vst.msk [vmem:[%s9623_s12 + $0x9e] sm:$0x3] %vm3249_vm8, %v3226_v57  ;;  %7414 = vmatmul.msk.bf16.gmra.mxu0 %vm295_vm0, %v12167_v24  ;;  %7438 = vmatmul.msk.bf16.gmra.mxu1 %vm295_vm0, %v12167_v24  ;;  %v3030_v51 = vrot.slane %v2868_v8, 2  ;;  %v3143_v4 = vrot.slane %v2978_v6, 4 }
 0x3cf   : > { %7443 = vst.msk [vmem:[%s9623_s12 + $0x96] sm:$0xff] %vm1704_vm5, %v3225_v61  ;;  %7565 = vmatmul.msk.bf16.gmra.mxu2 %vm295_vm0, %v10477_v62  ;;  %7665 = vmatmul.msk.bf16.gmra.mxu3 %vm295_vm0, %v10480_v41 }
 0x3d2   : > { %v10496_v42 = vpop.f32.mrf.mxu2  ;;  %v10498_v34 = vpop.f32.mrf.mxu3 }
 0x3d3   : > { %12169 = vst [vmem:[#allocation9_spill] sm:$0xff] %v10498_v34  ;;  %v2819_v21 = vpop.f32.mrf.mxu0  ;;  %v2929_v46 = vpop.f32.mrf.mxu1  ;;  %v12170_v34 = vld [vmem:[#allocation24_spill] sm:$0xff] }
 0x3d4   : > { %v2869_v27 = vadd.f32 %v2819_v21, %v10092_v38  ;;  %v2979_v55 = vadd.f32 %v2929_v46, %v10096_v17 }
 0x3d6   : > { %v3031_v57 = vrot.slane %v2869_v27, 2  ;;  %v3144_v61 = vrot.slane %v2979_v55, 4 }
 0x3d8   : > { %v3032_v13 = vsel %vm1589_vm2, %v3030_v51, %v3031_v57  ;;  %v3145_v59 = vsel %vm3132_vm6, %v3143_v4, %v3144_v61  ;;  %v12171_v4 = vld [vmem:[#allocation14_spill] sm:$0xff] }
 0x3d9   : > { %v3090_v24 = vadd.f32 %v3032_v13, %v10090_v49 }
 0x3da   : > { %v10508_v50 = vpop.f32.mrf.mxu2  ;;  %v10510_v38 = vpop.f32.mrf.mxu3 }
 0x3db   : > { %v3203_v17 = vadd.f32 %v3145_v59, %v3090_v24  ;;  %v2822_v8 = vpop.f32.mrf.mxu0  ;;  %v2932_v6 = vpop.f32.mrf.mxu1 }
 0x3dc   : > { %v2870_v21 = vadd.f32 %v2822_v8, %v10107_v15  ;;  %v2980_v46 = vadd.f32 %v2932_v6, %v10119_v31 }
 0x3dd   : > { %v3227_v27 = vmax.f32 %v3203_v17, 0.0 }
 0x3de   : > { %v3033_v55 = vrot.slane %v2870_v21, 2  ;;  %v3146_v51 = vrot.slane %v2980_v46, 4  ;;  %7674 = vmatmul.msk.bf16.vlgmr.msrb.gmra.mxu0 %vm295_vm0, %v12170_v34  ;;  %7698 = vmatmul.msk.bf16.vlgmr.msrb.gmra.mxu1 %vm295_vm0, %v12171_v4 }
 0x3df   : > { %7445 = vst.msk [vmem:[%s9623_s12 + $0x9e] sm:$0xfc] %vm3246_vm7, %v3227_v27  ;;  %7722 = vmatmul.msk.bf16.vlgmr.msrb.gmra.mxu2 %vm295_vm0, %v12171_v4  ;;  %7742 = vmatmul.msk.bf16.vlgmr.msrb.gmra.mxu3 %vm295_vm0, %v12170_v34 }
 0x3e0   : > { %v3034_v49 = vsel %vm1589_vm2, %v3031_v57, %v3033_v55  ;;  %v3092_v15 = vadd.f32 %v3033_v55, %v10122_v16  ;;  %v3147_v31 = vsel %vm3132_vm6, %v3144_v61, %v3146_v51 }
 0x3e1   : > { %v3091_v13 = vadd.f32 %v3034_v49, %v12172_v52 }
 0x3e2   : > { %v3205_v59 = vadd.f32 %v3146_v51, %v3092_v15  ;;  %v10528_v24 = vpop.f32.mrf.mxu2  ;;  %v10530_v17 = vpop.f32.mrf.mxu3 }
 0x3e3   : > { %v3204_v8 = vadd.f32 %v3147_v31, %v3091_v13  ;;  %v2824_v6 = vpop.f32.mrf.mxu0  ;;  %v2934_v21 = vpop.f32.mrf.mxu1 }
 0x3e4   : > { %v3229_v46 = vmax.f32 %v3205_v59, 0.0  ;;  %v2871_v16 = vadd.f32 %v2824_v6, %v10124_v18  ;;  %v2981_v34 = vadd.f32 %v2934_v21, %v10128_v33  ;;  %v12174_v59 = vld [vmem:[#allocation15_spill] sm:$0xff]  ;;  %v12175_v18 = vld [vmem:[#allocation16_spill] sm:$0xff] }
 0x3e5   : > { %v3228_v27 = vmax.f32 %v3204_v8, 0.0 }
 0x3e6   : > { %7447 = vst.msk [vmem:[%s9623_s12 + $0xae] sm:$0x3] %vm3249_vm8, %v3229_v46  ;;  %v3035_v15 = vrot.slane %v2871_v16, 2  ;;  %v3148_v31 = vrot.slane %v2981_v34, 4 }
 0x3e7   : > { %7446 = vst.msk [vmem:[%s9623_s12 + $0xa6] sm:$0xff] %vm1704_vm5, %v3228_v27 }
 0x3ea   : > { %v10538_v57 = vpop.f32.mrf.mxu2  ;;  %v10540_v61 = vpop.f32.mrf.mxu3 }
 0x3eb   : > { %12173 = vst [vmem:[#allocation7_spill] sm:$0xff] %v10540_v61  ;;  %v2827_v55 = vpop.f32.mrf.mxu0  ;;  %v2937_v51 = vpop.f32.mrf.mxu1  ;;  %v10903_v61 = vld [vmem:[%s8828_s26 + $0x8] sm:$0xff] }
 0x3ec   : > { %v2872_v4 = vadd.f32 %v2827_v55, %v10139_v44  ;;  %v2982_v49 = vadd.f32 %v2937_v51, %v10151_v14  ;;  %v12176_v14 = vld [vmem:[#allocation13_spill] sm:$0xff] }
 0x3ee   : > { %v3036_v52 = vrot.slane %v2872_v4, 2  ;;  %v3149_v13 = vrot.slane %v2982_v49, 4  ;;  %7675 = vmatmul.msk.bf16.gmra.mxu0 %vm295_vm0, %v12174_v59  ;;  %7699 = vmatmul.msk.bf16.gmra.mxu1 %vm295_vm0, %v12175_v18 }
 0x3ef   : > { %7723 = vmatmul.msk.bf16.gmra.mxu2 %vm295_vm0, %v12175_v18  ;;  %7743 = vmatmul.msk.bf16.gmra.mxu3 %vm295_vm0, %v12174_v59 }
 0x3f0   : > { %v3037_v33 = vsel %vm1589_vm2, %v3035_v15, %v3036_v52  ;;  %v3150_v44 = vsel %vm3132_vm6, %v3148_v31, %v3149_v13 }
 0x3f1   : > { %v3093_v8 = vadd.f32 %v3037_v33, %v12176_v14 }
 0x3f2   : > { %v10555_v6 = vpop.f32.mrf.mxu2  ;;  %v10557_v21 = vpop.f32.mrf.mxu3 }
 0x3f3   : > { %12177 = vst [vmem:[#allocation25_spill] sm:$0xff] %v10557_v21  ;;  %v3206_v46 = vadd.f32 %v3150_v44, %v3093_v8  ;;  %v2829_v27 = vpop.f32.mrf.mxu0  ;;  %v2939_v16 = vpop.f32.mrf.mxu1 }
 0x3f4   : > { %v2873_v34 = vadd.f32 %v2829_v27, %v10156_v60  ;;  %v2983_v55 = vadd.f32 %v2939_v16, %v10160_v12  ;;  %v12179_v16 = vld [vmem:[#allocation26_spill] sm:$0xff] }
 0x3f5   : > { %v3230_v51 = vmax.f32 %v3206_v46, 0.0 }
 0x3f6   : > { %v3038_v4 = vrot.slane %v2873_v34, 2  ;;  %v3151_v49 = vrot.slane %v2983_v55, 4 }
 0x3f7   : > { %7448 = vst.msk [vmem:[%s9623_s12 + $0xae] sm:$0xfc] %vm3246_vm7, %v3230_v51 }
 0x3f8   : > { %v3039_v15 = vsel %vm1589_vm2, %v3036_v52, %v3038_v4  ;;  %v3095_v31 = vadd.f32 %v3038_v4, %v10163_v1  ;;  %v3152_v59 = vsel %vm3132_vm6, %v3149_v13, %v3151_v49  ;;  %v12180_v1 = vld [vmem:[#allocation17_spill] sm:$0xff] }
 0x3f9   : > { %v3094_v18 = vadd.f32 %v3039_v15, %v10154_v25  ;;  %v12181_v25 = vld [vmem:[#allocation28_spill] sm:$0xff] }
 0x3fa   : > { %v3208_v33 = vadd.f32 %v3151_v49, %v3095_v31  ;;  %v10567_v44 = vpop.f32.mrf.mxu2  ;;  %v10569_v60 = vpop.f32.mrf.mxu3  ;;  %v12183_v49 = vld [vmem:[#allocation30_spill] sm:$0xff]  ;;  %v12184_v31 = vld [vmem:[#allocation31_spill] sm:$0xff] }
 0x3fb   : > { %12178 = vst [vmem:[#allocation12_spill] sm:$0xff] %v10569_v60  ;;  %v3207_v12 = vadd.f32 %v3152_v59, %v3094_v18  ;;  %v2832_v14 = vpop.f32.mrf.mxu0  ;;  %v2942_v8 = vpop.f32.mrf.mxu1 }
 0x3fc   : > { %v3232_v46 = vmax.f32 %v3208_v33, 0.0  ;;  %v2874_v52 = vadd.f32 %v2832_v14, %v12181_v25  ;;  %v2984_v13 = vadd.f32 %v2942_v8, %v10183_v28  ;;  %v12185_v28 = vld [vmem:[#allocation29_spill] sm:$0xff] }
 0x3fd   : > { %v3231_v27 = vmax.f32 %v3207_v12, 0.0 }
 0x3fe   : > { %7450 = vst.msk [vmem:[%s9623_s12 + $0xbe] sm:$0x3] %vm3249_vm8, %v3232_v46  ;;  %7676 = vmatmul.msk.bf16.gmra.mxu0 %vm295_vm0, %v12179_v16  ;;  %7700 = vmatmul.msk.bf16.gmra.mxu1 %vm295_vm0, %v12180_v1  ;;  %v3040_v18 = vrot.slane %v2874_v52, 2  ;;  %v3153_v33 = vrot.slane %v2984_v13, 4 }
 0x3ff   : > { %7449 = vst.msk [vmem:[%s9623_s12 + $0xb6] sm:$0xff] %vm1704_vm5, %v3231_v27  ;;  %7724 = vmatmul.msk.bf16.gmra.mxu2 %vm295_vm0, %v12180_v1  ;;  %7744 = vmatmul.msk.bf16.gmra.mxu3 %vm295_vm0, %v12179_v16 }
 0x402   : > { %v10585_v34 = vpop.f32.mrf.mxu2  ;;  %v10587_v55 = vpop.f32.mrf.mxu3 }
 0x403   : > { %12182 = vst [vmem:[#allocation24_spill] sm:$0xff] %v10587_v55  ;;  %v2834_v51 = vpop.f32.mrf.mxu0  ;;  %v2944_v4 = vpop.f32.mrf.mxu1 }
 0x404   : > { %v2875_v15 = vadd.f32 %v2834_v51, %v12183_v49  ;;  %v2985_v59 = vadd.f32 %v2944_v4, %v12184_v31  ;;  %v12187_v49 = vld [vmem:[#allocation35_spill] sm:$0xff] }
 0x406   : > { %v3041_v12 = vrot.slane %v2875_v15, 2  ;;  %v3154_v46 = vrot.slane %v2985_v59, 4  ;;  %v12188_v59 = vld [vmem:[#allocation33_spill] sm:$0xff] }
 0x408   : > { %v3042_v27 = vsel %vm1589_vm2, %v3040_v18, %v3041_v12  ;;  %v3155_v14 = vsel %vm3132_vm6, %v3153_v33, %v3154_v46  ;;  %v12189_v18 = vld [vmem:[#allocation34_spill] sm:$0xff] }
 0x409   : > { %v3096_v8 = vadd.f32 %v3042_v27, %v12185_v28  ;;  %v12190_v27 = vld [vmem:[#allocation32_spill] sm:$0xff] }
 0x40a   : > { %v10594_v16 = vpop.f32.mrf.mxu2  ;;  %v10596_v1 = vpop.f32.mrf.mxu3  ;;  %12228 = vst [vmem:[#allocation32_spill] sm:$0xff] %v10903_v61 }
 0x40b   : > { %12186 = vst [vmem:[#allocation14_spill] sm:$0xff] %v10596_v1  ;;  %v3209_v25 = vadd.f32 %v3155_v14, %v3096_v8  ;;  %v2837_v55 = vpop.f32.mrf.mxu0  ;;  %v2947_v51 = vpop.f32.mrf.mxu1 }
 0x40c   : > { %v2876_v4 = vadd.f32 %v2837_v55, %v12187_v49  ;;  %v2986_v52 = vadd.f32 %v2947_v51, %v10215_v11 }
 0x40d   : > { %v3233_v13 = vmax.f32 %v3209_v25, 0.0 }
 0x40e   : > { %v3043_v15 = vrot.slane %v2876_v4, 2  ;;  %v3156_v31 = vrot.slane %v2986_v52, 4  ;;  %7677 = vmatmul.msk.bf16.gmra.mxu0 %vm295_vm0, %v12188_v59  ;;  %7701 = vmatmul.msk.bf16.gmra.mxu1 %vm295_vm0, %v12189_v18 }
 0x40f   : > { %7451 = vst.msk [vmem:[%s9623_s12 + $0xbe] sm:$0xfc] %vm3246_vm7, %v3233_v13  ;;  %7725 = vmatmul.msk.bf16.gmra.mxu2 %vm295_vm0, %v12189_v18  ;;  %7745 = vmatmul.msk.bf16.gmra.mxu3 %vm295_vm0, %v12188_v59  ;;  %v12193_v18 = vld [vmem:[#allocation3_spill] sm:$0xff] }
 0x410   : > { %v3044_v11 = vsel %vm1589_vm2, %v3041_v12, %v3043_v15  ;;  %v3098_v55 = vadd.f32 %v3043_v15, %v10218_v63  ;;  %v3157_v33 = vsel %vm3132_vm6, %v3154_v46, %v3156_v31 }
 0x411   : > { %v3097_v14 = vadd.f32 %v3044_v11, %v12190_v27 }
 0x412   : > { %v3211_v28 = vadd.f32 %v3156_v31, %v3098_v55  ;;  %v10614_v8 = vpop.f32.mrf.mxu2  ;;  %v10616_v25 = vpop.f32.mrf.mxu3  ;;  %v12194_v55 = vld [vmem:[#allocation27_spill] sm:$0xff] }
 0x413   : > { %12191 = vst [vmem:[#allocation11_spill] sm:$0xff] %v10616_v25  ;;  %v3210_v51 = vadd.f32 %v3157_v33, %v3097_v14  ;;  %v2839_v49 = vpop.f32.mrf.mxu0  ;;  %v2949_v4 = vpop.f32.mrf.mxu1 }
 0x414   : > { %v3235_v52 = vmax.f32 %v3211_v28, 0.0  ;;  %v2877_v63 = vadd.f32 %v2839_v49, %v10220_v19  ;;  %v2987_v12 = vadd.f32 %v2949_v4, %v10224_v48  ;;  %v12196_v19 = vld [vmem:[#allocation20_spill] sm:$0xff]  ;;  %v12197_v4 = vld [vmem:[#allocation19_spill] sm:$0xff] }
 0x415   : > { %v3234_v13 = vmax.f32 %v3210_v51, 0.0 }
 0x416   : > { %7453 = vst.msk [vmem:[%s9623_s12 + $0xce] sm:$0x3] %vm3249_vm8, %v3235_v52  ;;  %v3045_v27 = vrot.slane %v2877_v63, 2  ;;  %v3158_v14 = vrot.slane %v2987_v12, 4  ;;  %v12195_v52 = vld [vmem:[#allocation18_spill] sm:$0xff] }
 0x417   : > { %7452 = vst.msk [vmem:[%s9623_s12 + $0xc6] sm:$0xff] %vm1704_vm5, %v3234_v13 }
 0x41a   : > { %v10624_v46 = vpop.f32.mrf.mxu2  ;;  %v10626_v15 = vpop.f32.mrf.mxu3 }
 0x41b   : > { %12192 = vst [vmem:[#allocation15_spill] sm:$0xff] %v10626_v15  ;;  %v2842_v31 = vpop.f32.mrf.mxu0  ;;  %v2952_v59 = vpop.f32.mrf.mxu1 }
 0x41c   : > { %v2878_v11 = vadd.f32 %v2842_v31, %v12193_v18  ;;  %v2988_v33 = vadd.f32 %v2952_v59, %v12194_v55 }
 0x41e   : > { %v3046_v28 = vrot.slane %v2878_v11, 2  ;;  %v3159_v51 = vrot.slane %v2988_v33, 4  ;;  %7678 = vmatmul.msk.bf16.gmra.mxu0 %vm295_vm0, %v12195_v52  ;;  %7702 = vmatmul.msk.bf16.gmra.mxu1 %vm295_vm0, %v12196_v19  ;;  %v12199_v11 = vld [vmem:[#allocation22_spill] sm:$0xff]  ;;  %v12200_v33 = vld [vmem:[#allocation36_spill] sm:$0xff] }
 0x41f   : > { %7726 = vmatmul.msk.bf16.gmra.mxu2 %vm295_vm0, %v12196_v19  ;;  %7746 = vmatmul.msk.bf16.gmra.mxu3 %vm295_vm0, %v12195_v52 }
 0x420   : > { %v3047_v48 = vsel %vm1589_vm2, %v3045_v27, %v3046_v28  ;;  %v3160_v49 = vsel %vm3132_vm6, %v3158_v14, %v3159_v51  ;;  %v8520_v27 = vld [vmem:[%s11940_s1 + $0x1a0] sm:$0xff] }
 0x421   : > { %v3099_v13 = vadd.f32 %v3047_v48, %v12197_v4  ;;  %v8537_v14 = vld [vmem:[%s11940_s1 + $0x1c0] sm:$0xff]  ;;  %v12201_v4 = vld [vmem:[#allocation37_spill] sm:$0xff]  ;;  %4453 = vmatpush.bf16.msra.mxu2 %v8520_v27 }
 0x422   : > { %v10641_v63 = vpop.f32.mrf.mxu2  ;;  %v10643_v12 = vpop.f32.mrf.mxu3  ;;  %v8516_v48 = vld [vmem:[%s11940_s1 + $0x180] sm:$0xff]  ;;  %4973 = vmatpush.bf16.msra.mxu3 %v8537_v14 }
 0x423   : > { %12198 = vst [vmem:[#allocation16_spill] sm:$0xff] %v10643_v12  ;;  %v3212_v31 = vadd.f32 %v3160_v49, %v3099_v13  ;;  %v2844_v59 = vpop.f32.mrf.mxu0  ;;  %v2954_v18 = vpop.f32.mrf.mxu1  ;;  %4233 = vmatpush.bf16.msra.mxu0 %v8516_v48 }
 0x424   : > { %v2879_v55 = vadd.f32 %v2844_v59, %v12199_v11  ;;  %v2989_v19 = vadd.f32 %v2954_v18, %v12200_v33 }
 0x425   : > { %v3236_v15 = vmax.f32 %v3212_v31, 0.0 }
 0x426   : > { %v3048_v1 = vrot.slane %v2879_v55, 2  ;;  %v3161_v52 = vrot.slane %v2989_v19, 4 }
 0x427   : > { %7454 = vst.msk [vmem:[%s9623_s12 + $0xce] sm:$0xfc] %vm3246_vm7, %v3236_v15  ;;  %v12202_v15 = vld [vmem:[#allocation4_spill] sm:$0xff] }
 0x428   : > { %v3049_v49 = vsel %vm1589_vm2, %v3046_v28, %v3048_v1  ;;  %v3101_v13 = vadd.f32 %v3048_v1, %v12201_v4  ;;  %v3162_v31 = vsel %vm3132_vm6, %v3159_v51, %v3161_v52  ;;  %v12204_v1 = vld [vmem:[#allocation38_spill] sm:$0xff]  ;;  %v12205_v51 = vld [vmem:[#allocation39_spill] sm:$0xff] }
 0x429   : > { %v3100_v59 = vadd.f32 %v3049_v49, %v12202_v15 }
 0x42a   : > { %v3214_v18 = vadd.f32 %v3161_v52, %v3101_v13  ;;  %v10662_v11 = vpop.f32.mrf.mxu2  ;;  %v10664_v55 = vpop.f32.mrf.mxu3  ;;  %v12206_v52 = vld [vmem:[#allocation40_spill] sm:$0xff] }
 0x42b   : > { %12203 = vst [vmem:[#allocation13_spill] sm:$0xff] %v10664_v55  ;;  %v3213_v33 = vadd.f32 %v3162_v31, %v3100_v59  ;;  %v2847_v19 = vpop.f32.mrf.mxu0  ;;  %v2957_v12 = vpop.f32.mrf.mxu1  ;;  %v8505_v55 = vld [vmem:[%s8828_s26 + $0x5c] sm:$0xff] }
 0x42c   : > { %v3238_v25 = vmax.f32 %v3214_v18, 0.0  ;;  %v2880_v27 = vadd.f32 %v2847_v19, %v12206_v52  ;;  %v2990_v14 = vadd.f32 %v2957_v12, %v10291_v39  ;;  %v8518_v19 = vld [vmem:[%s11940_s1 + $0x190] sm:$0xff] }
 0x42d   : > { %v3237_v28 = vmax.f32 %v3213_v33, 0.0  ;;  %4343 = vmatpush.bf16.msra.mxu1 %v8518_v19 }
 0x42e   : > { %7456 = vst.msk [vmem:[%s9623_s12 + $0xde] sm:$0x3] %vm3249_vm8, %v3238_v25  ;;  %7679 = vmatmul.msk.bf16.gmra.mxu0 %vm295_vm0, %v12204_v1  ;;  %7703 = vmatmul.msk.bf16.gmra.mxu1 %vm295_vm0, %v12205_v51  ;;  %v3050_v15 = vrot.slane %v2880_v27, 2  ;;  %v3163_v59 = vrot.slane %v2990_v14, 4 }
 0x42f   : > { %7455 = vst.msk [vmem:[%s9623_s12 + $0xd6] sm:$0xff] %vm1704_vm5, %v3237_v28  ;;  %7727 = vmatmul.msk.bf16.gmra.mxu2 %vm295_vm0, %v12205_v51  ;;  %7747 = vmatmul.msk.bf16.gmra.mxu3 %vm295_vm0, %v12204_v1 }
 0x432   : > { %v10680_v48 = vpop.f32.mrf.mxu2  ;;  %v10682_v25 = vpop.f32.mrf.mxu3 }
 0x433   : > { %12207 = vst [vmem:[#allocation26_spill] sm:$0xff] %v10682_v25  ;;  %v2849_v49 = vpop.f32.mrf.mxu0  ;;  %v2959_v4 = vpop.f32.mrf.mxu1 }
 0x434   : > { %v2881_v13 = vadd.f32 %v2849_v49, %v10296_v7  ;;  %v2991_v31 = vadd.f32 %v2959_v4, %v10300_v32 }
 0x436   : > { %v3051_v18 = vrot.slane %v2881_v13, 2  ;;  %v3164_v33 = vrot.slane %v2991_v31, 4  ;;  %v12209_v31 = vld [vmem:[#allocation5_spill] sm:$0xff] }
 0x438   : > { %v3052_v39 = vsel %vm1589_vm2, %v3050_v15, %v3051_v18  ;;  %v3165_v12 = vsel %vm3132_vm6, %v3163_v59, %v3164_v33  ;;  %v12210_v15 = vld [vmem:[#allocation6_spill] sm:$0xff]  ;;  %v12211_v59 = vld [vmem:[#allocation21_spill] sm:$0xff] }
 0x439   : > { %v3102_v28 = vadd.f32 %v3052_v39, %v10294_v54 }
 0x43a   : > { %v10692_v1 = vpop.f32.mrf.mxu2  ;;  %v10694_v7 = vpop.f32.mrf.mxu3 }
 0x43b   : > { %12208 = vst [vmem:[#allocation17_spill] sm:$0xff] %v10694_v7  ;;  %v3215_v32 = vadd.f32 %v3165_v12, %v3102_v28  ;;  %v2852_v51 = vpop.f32.mrf.mxu0  ;;  %v2962_v52 = vpop.f32.mrf.mxu1 }
 0x43c   : > { %v2882_v27 = vadd.f32 %v2852_v51, %v10311_v45  ;;  %v2992_v14 = vadd.f32 %v2962_v52, %v10323_v53 }
 0x43d   : > { %v3239_v49 = vmax.f32 %v3215_v32, 0.0 }
 0x43e   : > { %v3053_v4 = vrot.slane %v2882_v27, 2  ;;  %v3166_v13 = vrot.slane %v2992_v14, 4  ;;  %7680 = vmatmul.msk.bf16.gmra.mxu0 %vm295_vm0, %v12209_v31  ;;  %7704 = vmatmul.msk.bf16.gmra.mxu1 %vm295_vm0, %v12210_v15 }
 0x43f   : > { %7457 = vst.msk [vmem:[%s9623_s12 + $0xde] sm:$0xfc] %vm3246_vm7, %v3239_v49  ;;  %7728 = vmatmul.msk.bf16.gmra.mxu2 %vm295_vm0, %v12210_v15  ;;  %7748 = vmatmul.msk.bf16.gmra.mxu3 %vm295_vm0, %v12209_v31  ;;  %v12214_v49 = vld [vmem:[#allocation42_spill] sm:$0xff] }
 0x440   : > { %v3054_v54 = vsel %vm1589_vm2, %v3051_v18, %v3053_v4  ;;  %v3104_v45 = vadd.f32 %v3053_v4, %v10326_v20  ;;  %v3167_v53 = vsel %vm3132_vm6, %v3164_v33, %v3166_v13  ;;  %v12213_v18 = vld [vmem:[#allocation41_spill] sm:$0xff] }
 0x441   : > { %v3103_v19 = vadd.f32 %v3054_v54, %v12211_v59  ;;  %v12216_v54 = vld [vmem:[#allocation46_spill] sm:$0xff] }
 0x442   : > { %v3217_v39 = vadd.f32 %v3166_v13, %v3104_v45  ;;  %v10712_v12 = vpop.f32.mrf.mxu2  ;;  %v10714_v28 = vpop.f32.mrf.mxu3 }
 0x443   : > { %12212 = vst [vmem:[#allocation28_spill] sm:$0xff] %v10714_v28  ;;  %v3216_v32 = vadd.f32 %v3167_v53, %v3103_v19  ;;  %v2854_v51 = vpop.f32.mrf.mxu0  ;;  %v2964_v52 = vpop.f32.mrf.mxu1  ;;  %v10878_v28 = vld [vmem:[%s8828_s26] sm:$0xff] }
 0x444   : > { %v3241_v27 = vmax.f32 %v3217_v39, 0.0  ;;  %v2883_v20 = vadd.f32 %v2854_v51, %v12213_v18  ;;  %v2993_v33 = vadd.f32 %v2964_v52, %v12214_v49  ;;  %v12218_v51 = vld [vmem:[#allocation45_spill] sm:$0xff] }
 0x445   : > { %v3240_v14 = vmax.f32 %v3216_v32, 0.0 }
 0x446   : > { %7459 = vst.msk [vmem:[%s9623_s12 + $0xee] sm:$0x3] %vm3249_vm8, %v3241_v27  ;;  %v3055_v59 = vrot.slane %v2883_v20, 2  ;;  %v3168_v19 = vrot.slane %v2993_v33, 4  ;;  %v12217_v27 = vld [vmem:[#allocation44_spill] sm:$0xff] }
 0x447   : > { %7458 = vst.msk [vmem:[%s9623_s12 + $0xe6] sm:$0xff] %vm1704_vm5, %v3240_v14  ;;  %v12219_v14 = vld [vmem:[#allocation43_spill] sm:$0xff] }
 0x44a   : > { %v10722_v4 = vpop.f32.mrf.mxu2  ;;  %v10724_v13 = vpop.f32.mrf.mxu3 }
 0x44b   : > { %12215 = vst [vmem:[#allocation30_spill] sm:$0xff] %v10724_v13  ;;  %v2857_v31 = vpop.f32.mrf.mxu0  ;;  %v2967_v15 = vpop.f32.mrf.mxu1  ;;  %v8504_v13 = vld [vmem:[%s8828_s26 + $0x54] sm:$0xff] }
 0x44c   : > { %v2884_v45 = vadd.f32 %v2857_v31, %v12216_v54  ;;  %v2994_v53 = vadd.f32 %v2967_v15, %v10355_v29 }
 0x44e   : > { %v3056_v39 = vrot.slane %v2884_v45, 2  ;;  %v3169_v32 = vrot.slane %v2994_v53, 4  ;;  %7681 = vmatmul.msk.bf16.gmra.mxu0 %vm295_vm0, %v12217_v27  ;;  %7705 = vmatmul.msk.bf16.gmra.mxu1 %vm295_vm0, %v12218_v51 }
 0x44f   : > { %7729 = vmatmul.msk.bf16.gmra.mxu2 %vm295_vm0, %v12218_v51  ;;  %7749 = vmatmul.msk.bf16.gmra.mxu3 %vm295_vm0, %v12217_v27 }
 0x450   : > { %v3057_v52 = vsel %vm1589_vm2, %v3055_v59, %v3056_v39  ;;  %v3170_v29 = vsel %vm3132_vm6, %v3168_v19, %v3169_v32  ;;  %v10748_v59 = vld [vmem:[%s11941_s2 + $0x2] ss:$0 sm:$0xff] }
 0x451   : > { %v3105_v18 = vadd.f32 %v3057_v52, %v12219_v14 }
 0x452   : > { %v10739_v20 = vpop.f32.mrf.mxu2  ;;  %v10741_v49 = vpop.f32.mrf.mxu3 }
 0x453   : > { %12220 = vst [vmem:[#allocation31_spill] sm:$0xff] %v10741_v49  ;;  %v3218_v33 = vadd.f32 %v3170_v29, %v3105_v18  ;;  %v2859_v31 = vpop.f32.mrf.mxu0  ;;  %v2969_v15 = vpop.f32.mrf.mxu1  ;;  %v12221_v29 = vld [vmem:[#allocation23_spill] sm:$0xff] }
 0x454   : > { %v2885_v54 = vadd.f32 %v2859_v31, %v10360_v22  ;;  %v2995_v45 = vadd.f32 %v2969_v15, %v10362_v35  ;;  %v3492_v14 = vadd.f32 %v10748_v59, %v12221_v29 }
 0x455   : > { %v3242_v53 = vmax.f32 %v3218_v33, 0.0 }
 0x456   : > { %v3058_v19 = vrot.slane %v2885_v54, 2  ;;  %v3171_v27 = vrot.slane %v2995_v45, 4 }
 0x457   : > { %7460 = vst.msk [vmem:[%s9623_s12 + $0xee] sm:$0xfc] %vm3246_vm7, %v3242_v53 }
 0x458   : > { %v3059_v51 = vsel %vm1589_vm2, %v3056_v39, %v3058_v19  ;;  %v3107_v52 = vadd.f32 %v3058_v19, %v10365_v0  ;;  %v3172_v22 = vsel %vm3132_vm6, %v3169_v32, %v3171_v27  ;;  %v12223_v32 = vld [vmem:[#allocation10_spill] sm:$0xff]  ;;  %v3493_v19 = vadd.f32 %v10748_v59, %v10392_v5 }
 0x459   : > { %v3106_v35 = vadd.f32 %v3059_v51, %v10358_v3  ;;  %v12224_v3 = vld [vmem:[#allocation8_spill] sm:$0xff] }
 0x45a   : > { %v3220_v18 = vadd.f32 %v3171_v27, %v3107_v52  ;;  %v10758_v33 = vpop.f32.mrf.mxu2  ;;  %v10760_v31 = vpop.f32.mrf.mxu3 }
 0x45b   : > { %12222 = vst [vmem:[#allocation29_spill] sm:$0xff] %v10760_v31  ;;  %v3219_v15 = vadd.f32 %v3172_v22, %v3106_v35  ;;  %v10762_v54 = vpop.f32.mrf.mxu0  ;;  %v3834_v45 = vpop.f32.mrf.mxu1 }
 0x45c   : > { %v3244_v39 = vmax.f32 %v3220_v18, 0.0  ;;  %v10764_v53 = vadd.f32 %v3834_v45, %v3492_v14  ;;  %v3494_v14 = vadd.f32 %v10748_v59, %v10418_v43  ;;  %v3495_v43 = vadd.f32 %v10748_v59, %v10428_v30 }
 0x45d   : > { %v3243_v0 = vmax.f32 %v3219_v15, 0.0 }
 0x45e   : > { %7462 = vst.msk [vmem:[%s9623_s12 + $0xfe] sm:$0x3] %vm3249_vm8, %v3244_v39  ;;  %7682 = vmatmul.msk.bf16.gmra.mxu0 %vm295_vm0, %v12223_v32  ;;  %7706 = vmatmul.msk.bf16.gmra.mxu1 %vm295_vm0, %v12224_v3 }
 0x45f   : > { %7461 = vst.msk [vmem:[%s9623_s12 + $0xf6] sm:$0xff] %vm1704_vm5, %v3243_v0  ;;  %7730 = vmatmul.msk.bf16.gmra.mxu2 %vm295_vm0, %v12224_v3  ;;  %7750 = vmatmul.msk.bf16.gmra.mxu3 %vm295_vm0, %v12223_v32 }
 0x462   : > { %v3944_v27 = vpop.f32.mrf.mxu2  ;;  %v4025_v51 = vpop.f32.mrf.mxu3 }
 0x463   : > { %v10780_v52 = vadd.f32 %v4025_v51, %v3944_v27  ;;  %v10782_v22 = vpop.f32.mrf.mxu0  ;;  %v3836_v35 = vpop.f32.mrf.mxu1 }
 0x464   : > { %v10784_v29 = vadd.f32 %v3836_v35, %v3493_v19 }
 0x46a   : > { %v3946_v18 = vpop.f32.mrf.mxu2  ;;  %v4027_v15 = vpop.f32.mrf.mxu3 }
 0x46b   : > { %v10788_v45 = vadd.f32 %v4027_v15, %v3946_v18  ;;  %v10790_v39 = vpop.f32.mrf.mxu0  ;;  %v3839_v0 = vpop.f32.mrf.mxu1 }
 0x46c   : > { %v10792_v5 = vadd.f32 %v3839_v0, %v3494_v14  ;;  %v3496_v14 = vadd.f32 %v10748_v59, %v10451_v47  ;;  %v8556_v47 = vld [vmem:[%s11940_s1 + $0x1f8] sm:$0xff] }
 0x46d   : > { %5358 = vmatpush.bf16.msrb.mxu2 %v8556_v47 }
 0x46e   : > { %7683 = vmatmul.msk.bf16.gmra.mxu0 %vm295_vm0, %v10397_v37  ;;  %7707 = vmatmul.msk.bf16.gmra.mxu1 %vm295_vm0, %v10400_v36 }
 0x46f   : > { %7731 = vmatmul.msk.bf16.gmra.mxu2 %vm295_vm0, %v10400_v36  ;;  %7751 = vmatmul.msk.bf16.gmra.mxu3 %vm295_vm0, %v10397_v37 }
 0x472   : > { %v3949_v32 = vpop.f32.mrf.mxu2  ;;  %v4030_v3 = vpop.f32.mrf.mxu3 }
 0x473   : > { %v10804_v19 = vadd.f32 %v4030_v3, %v3949_v32  ;;  %v10806_v27 = vpop.f32.mrf.mxu0  ;;  %v3841_v51 = vpop.f32.mrf.mxu1 }
 0x474   : > { %v10808_v35 = vadd.f32 %v3841_v51, %v3495_v43  ;;  %v3497_v43 = vadd.f32 %v10748_v59, %v10472_v23  ;;  %v3498_v23 = vadd.f32 %v10748_v59, %v10496_v42  ;;  %v8536_v42 = vld [vmem:[%s11940_s1 + $0x1b8] sm:$0xff] }
 0x475   : > { %5280 = vmatpush.bf16.msrb.mxu1 %v8536_v42 }
 0x47a   : > { %v3951_v18 = vpop.f32.mrf.mxu2  ;;  %v4032_v36 = vpop.f32.mrf.mxu3 }
 0x47b   : > { %v10812_v15 = vadd.f32 %v4032_v36, %v3951_v18  ;;  %v10814_v37 = vpop.f32.mrf.mxu0  ;;  %v3844_v0 = vpop.f32.mrf.mxu1 }
 0x47c   : > { %v10816_v30 = vadd.f32 %v3844_v0, %v3496_v14 }
 0x47e   : > { %7684 = vmatmul.msk.bf16.gmra.mxu0 %vm295_vm0, %v10433_v9  ;;  %7708 = vmatmul.msk.bf16.gmra.mxu1 %vm295_vm0, %v10436_v58 }
 0x47f   : > { %7732 = vmatmul.msk.bf16.gmra.mxu2 %vm295_vm0, %v10436_v58  ;;  %7752 = vmatmul.msk.bf16.gmra.mxu3 %vm295_vm0, %v10433_v9  ;;  %v8558_v9 = vld [vmem:[%s11940_s1 + $0x208] sm:$0xff] }
 0x480   : > { %v8554_v58 = vld [vmem:[%s11940_s1 + $0x1e8] sm:$0xff]  ;;  %5468 = vmatpush.bf16.msrb.mxu3 %v8558_v9  ;;  %v3499_v9 = vadd.f32 %v10748_v59, %v10508_v50 }
 0x481   : > { %5207 = vmatpush.bf16.msrb.mxu0 %v8554_v58 }
 0x482   : > { %v3954_v32 = vpop.f32.mrf.mxu2  ;;  %v4035_v3 = vpop.f32.mrf.mxu3 }
 0x483   : > { %v10831_v51 = vadd.f32 %v4035_v3, %v3954_v32  ;;  %v10833_v14 = vpop.f32.mrf.mxu0  ;;  %v3846_v18 = vpop.f32.mrf.mxu1 }
 0x484   : > { %v10835_v36 = vadd.f32 %v3846_v18, %v3497_v43 }
 0x48a   : > { %v3956_v0 = vpop.f32.mrf.mxu2  ;;  %v4037_v47 = vpop.f32.mrf.mxu3 }
 0x48b   : > { %v10845_v32 = vadd.f32 %v4037_v47, %v3956_v0  ;;  %v10847_v3 = vpop.f32.mrf.mxu0  ;;  %v3849_v43 = vpop.f32.mrf.mxu1 }
 0x48c   : > { %v10849_v18 = vadd.f32 %v3849_v43, %v3498_v23 }
 0x48e   : > { %7685 = vmatmul.msk.bf16.gmra.mxu0 %vm295_vm0, %v10477_v62  ;;  %7709 = vmatmul.msk.bf16.gmra.mxu1 %vm295_vm0, %v10480_v41 }
 0x48f   : > { %7733 = vmatmul.msk.bf16.gmra.mxu2 %vm295_vm0, %v10480_v41  ;;  %7753 = vmatmul.msk.bf16.gmra.mxu3 %vm295_vm0, %v10477_v62  ;;  %v3500_v62 = vadd.f32 %v10748_v59, %v10528_v24  ;;  %v3501_v24 = vadd.f32 %v10748_v59, %v10538_v57 }
 0x492   : > { %v3959_v58 = vpop.f32.mrf.mxu2  ;;  %v4040_v23 = vpop.f32.mrf.mxu3 }
 0x493   : > { %v10864_v0 = vadd.f32 %v4040_v23, %v3959_v58  ;;  %v10866_v47 = vpop.f32.mrf.mxu0  ;;  %v3851_v43 = vpop.f32.mrf.mxu1 }
 0x494   : > { %v10868_v41 = vadd.f32 %v3851_v43, %v3499_v9 }
 0x49a   : > { %v3961_v49 = vpop.f32.mrf.mxu2  ;;  %v4042_v31 = vpop.f32.mrf.mxu3 }
 0x49b   : > { %v10873_v7 = vadd.f32 %v4042_v31, %v3961_v49  ;;  %v10875_v42 = vpop.f32.mrf.mxu0  ;;  %v3854_v50 = vpop.f32.mrf.mxu1 }
 0x49c   : > { %v10880_v58 = vadd.f32 %v3854_v50, %v3500_v62  ;;  %v3502_v50 = vadd.f32 %v10748_v59, %v10555_v6  ;;  %v3503_v6 = vadd.f32 %v10748_v59, %v10567_v44 }
 0x49e   : > { %7840 = vmatmul.msk.bf16.vlgmr.msra.gmra.mxu0 %vm295_vm0, %v8504_v13  ;;  %7864 = vmatmul.msk.bf16.vlgmr.msra.gmra.mxu1 %vm295_vm0, %v8504_v13 }
 0x49f   : > { %7888 = vmatmul.msk.bf16.vlgmr.msra.gmra.mxu2 %vm295_vm0, %v8504_v13  ;;  %7991 = vmatmul.msk.bf16.vlgmr.msra.gmra.mxu3 %vm295_vm0, %v10878_v28 }
 0x4a2   : > { %v3964_v49 = vpop.f32.mrf.mxu2  ;;  %v4045_v31 = vpop.f32.mrf.mxu3 }
 0x4a3   : > { %v10889_v9 = vadd.f32 %v4045_v31, %v3964_v49  ;;  %v10891_v23 = vpop.f32.mrf.mxu0  ;;  %v3856_v43 = vpop.f32.mrf.mxu1 }
 0x4a4   : > { %12225 = vst [vmem:[#allocation35_spill] sm:$0xff] %v10891_v23  ;;  %v10893_v62 = vadd.f32 %v3856_v43, %v3501_v24 }
 0x4aa   : > { %v3966_v13 = vpop.f32.mrf.mxu2  ;;  %v4047_v25 = vpop.f32.mrf.mxu3 }
 0x4ab   : > { %v10898_v21 = vadd.f32 %v4047_v25, %v3966_v13  ;;  %v10900_v60 = vpop.f32.mrf.mxu0  ;;  %v3859_v57 = vpop.f32.mrf.mxu1 }
 0x4ac   : > { %12227 = vst [vmem:[#allocation34_spill] sm:$0xff] %v10900_v60  ;;  %v10905_v49 = vadd.f32 %v3859_v57, %v3502_v50  ;;  %v3504_v57 = vadd.f32 %v10748_v59, %v10585_v34 }
 0x4ad   : > { %12226 = vst [vmem:[#allocation33_spill] sm:$0xff] %v10898_v21  ;;  %v8506_v21 = vld [vmem:[%s8828_s26 + $0x64] sm:$0xff] }
 0x4ae   : > { %12229 = vst [vmem:[#allocation3_spill] sm:$0xff] %v10905_v49  ;;  %7841 = vmatmul.msk.bf16.gmra.mxu0 %vm295_vm0, %v8505_v55  ;;  %7865 = vmatmul.msk.bf16.gmra.mxu1 %vm295_vm0, %v8505_v55  ;;  %v10928_v49 = vld [vmem:[%s8828_s26 + $0x10] sm:$0xff] }
 0x4af   : > { %7889 = vmatmul.msk.bf16.gmra.mxu2 %vm295_vm0, %v8505_v55  ;;  %7992 = vmatmul.msk.bf16.gmra.mxu3 %vm295_vm0, %v10903_v61  ;;  %12233 = vst [vmem:[#allocation19_spill] sm:$0xff] %v10928_v49 }
 0x4b2   : > { %v3969_v25 = vpop.f32.mrf.mxu2  ;;  %v4050_v24 = vpop.f32.mrf.mxu3 }
 0x4b3   : > { %v10914_v31 = vadd.f32 %v4050_v24, %v3969_v25  ;;  %v10916_v43 = vpop.f32.mrf.mxu0  ;;  %v3861_v50 = vpop.f32.mrf.mxu1 }
 0x4b4   : > { %v10918_v13 = vadd.f32 %v3861_v50, %v3503_v6 }
 0x4b6   : > { %12230 = vst [vmem:[#allocation27_spill] sm:$0xff] %v10918_v13  ;;  %v10953_v13 = vld [vmem:[%s8828_s26 + $0x18] sm:$0xff] }
 0x4b7   : > { %12238 = vst [vmem:[#allocation38_spill] sm:$0xff] %v10953_v13 }
 0x4ba   : > { %v3971_v55 = vpop.f32.mrf.mxu2  ;;  %v4052_v60 = vpop.f32.mrf.mxu3 }
 0x4bb   : > { %v10923_v23 = vadd.f32 %v4052_v60, %v3971_v55  ;;  %v10925_v61 = vpop.f32.mrf.mxu0  ;;  %v3864_v44 = vpop.f32.mrf.mxu1  ;;  %v3505_v60 = vadd.f32 %v10748_v59, %v10594_v16 }
 0x4bc   : > { %12232 = vst [vmem:[#allocation20_spill] sm:$0xff] %v10925_v61  ;;  %v10930_v25 = vadd.f32 %v3864_v44, %v3504_v57  ;;  %v3506_v44 = vadd.f32 %v10748_v59, %v10614_v8 }
 0x4bd   : > { %12231 = vst [vmem:[#allocation18_spill] sm:$0xff] %v10923_v23 }
 0x4be   : > { %12234 = vst [vmem:[#allocation22_spill] sm:$0xff] %v10930_v25  ;;  %7842 = vmatmul.msk.bf16.gmra.mxu0 %vm295_vm0, %v8506_v21  ;;  %7866 = vmatmul.msk.bf16.gmra.mxu1 %vm295_vm0, %v8506_v21  ;;  %v8507_v25 = vld [vmem:[%s8828_s26 + $0x6c] sm:$0xff] }
 0x4bf   : > { %7890 = vmatmul.msk.bf16.gmra.mxu2 %vm295_vm0, %v8506_v21  ;;  %7993 = vmatmul.msk.bf16.gmra.mxu3 %vm295_vm0, %v10928_v49 }
 0x4c2   : > { %v3974_v34 = vpop.f32.mrf.mxu2  ;;  %v4055_v6 = vpop.f32.mrf.mxu3 }
 0x4c3   : > { %v10939_v24 = vadd.f32 %v4055_v6, %v3974_v34  ;;  %v10941_v50 = vpop.f32.mrf.mxu0  ;;  %v3866_v57 = vpop.f32.mrf.mxu1 }
 0x4c4   : > { %12235 = vst [vmem:[#allocation36_spill] sm:$0xff] %v10941_v50  ;;  %v10943_v55 = vadd.f32 %v3866_v57, %v3505_v60 }
 0x4ca   : > { %v3976_v21 = vpop.f32.mrf.mxu2  ;;  %v4057_v61 = vpop.f32.mrf.mxu3 }
 0x4cb   : > { %v10948_v23 = vadd.f32 %v4057_v61, %v3976_v21  ;;  %v10950_v49 = vpop.f32.mrf.mxu0  ;;  %v3869_v16 = vpop.f32.mrf.mxu1  ;;  %v3507_v61 = vadd.f32 %v10748_v59, %v10624_v46 }
 0x4cc   : > { %12237 = vst [vmem:[#allocation4_spill] sm:$0xff] %v10950_v49  ;;  %v10955_v34 = vadd.f32 %v3869_v16, %v3506_v44  ;;  %v3508_v16 = vadd.f32 %v10748_v59, %v10641_v63  ;;  %v8555_v63 = vld [vmem:[%s11940_s1 + $0x1f0] sm:$0xff] }
 0x4cd   : > { %12236 = vst [vmem:[#allocation37_spill] sm:$0xff] %v10948_v23  ;;  %v10978_v23 = vld [vmem:[%s8828_s26 + $0x20] sm:$0xff]  ;;  %5359 = vmatpush.bf16.msrb.mxu2 %v8555_v63 }
 0x4ce   : > { %12239 = vst [vmem:[#allocation39_spill] sm:$0xff] %v10955_v34  ;;  %7843 = vmatmul.msk.bf16.gmra.mxu0 %vm295_vm0, %v8507_v25  ;;  %7867 = vmatmul.msk.bf16.gmra.mxu1 %vm295_vm0, %v8507_v25  ;;  %v8508_v34 = vld [vmem:[%s8828_s26 + $0x74] sm:$0xff]  ;;  %v8553_v63 = vld [vmem:[%s11940_s1 + $0x1e0] sm:$0xff] }
 0x4cf   : > { %7891 = vmatmul.msk.bf16.gmra.mxu2 %vm295_vm0, %v8507_v25  ;;  %7994 = vmatmul.msk.bf16.gmra.mxu3 %vm295_vm0, %v10953_v13  ;;  %12242 = vst [vmem:[#allocation6_spill] sm:$0xff] %v10978_v23 }
 0x4d0   : > { %5208 = vmatpush.bf16.msrb.mxu0 %v8553_v63 }
 0x4d2   : > { %v3979_v8 = vpop.f32.mrf.mxu2  ;;  %v4060_v60 = vpop.f32.mrf.mxu3 }
 0x4d3   : > { %v10964_v6 = vadd.f32 %v4060_v60, %v3979_v8  ;;  %v10966_v57 = vpop.f32.mrf.mxu0  ;;  %v3871_v44 = vpop.f32.mrf.mxu1 }
 0x4d4   : > { %v10968_v21 = vadd.f32 %v3871_v44, %v3507_v61 }
 0x4da   : > { %v3981_v25 = vpop.f32.mrf.mxu2  ;;  %v4062_v50 = vpop.f32.mrf.mxu3 }
 0x4db   : > { %v10973_v49 = vadd.f32 %v4062_v50, %v3981_v25  ;;  %v10975_v13 = vpop.f32.mrf.mxu0  ;;  %v3874_v46 = vpop.f32.mrf.mxu1  ;;  %v3509_v50 = vadd.f32 %v10748_v59, %v10662_v11  ;;  %v3510_v11 = vadd.f32 %v10748_v59, %v10680_v48  ;;  %v8535_v48 = vld [vmem:[%s11940_s1 + $0x1b0] sm:$0xff] }
 0x4dc   : > { %12241 = vst [vmem:[#allocation5_spill] sm:$0xff] %v10975_v13  ;;  %v10980_v8 = vadd.f32 %v3874_v46, %v3508_v16  ;;  %v8557_v46 = vld [vmem:[%s11940_s1 + $0x200] sm:$0xff]  ;;  %5281 = vmatpush.bf16.msrb.mxu1 %v8535_v48 }
 0x4dd   : > { %12240 = vst [vmem:[#allocation40_spill] sm:$0xff] %v10973_v49  ;;  %5469 = vmatpush.bf16.msrb.mxu3 %v8557_v46  ;;  %v8509_v13 = vld [vmem:[%s8828_s26 + $0x7c] sm:$0xff]  ;;  %v3511_v46 = vadd.f32 %v10748_v59, %v10692_v1 }
 0x4de   : > { %7844 = vmatmul.msk.bf16.gmra.mxu0 %vm295_vm0, %v8508_v34  ;;  %7868 = vmatmul.msk.bf16.gmra.mxu1 %vm295_vm0, %v8508_v34 }
 0x4df   : > { %7892 = vmatmul.msk.bf16.gmra.mxu2 %vm295_vm0, %v8508_v34  ;;  %7995 = vmatmul.msk.bf16.gmra.mxu3 %vm295_vm0, %v10978_v23  ;;  %v11040_v23 = vld [vmem:[%s8828_s26 + $0x30] sm:$0xff] }
 0x4e0   : > { %12253 = vst [vmem:[#allocation48_spill] sm:$0xff] %v11040_v23 }
 0x4e2   : > { %v3984_v61 = vpop.f32.mrf.mxu2  ;;  %v4065_v60 = vpop.f32.mrf.mxu3 }
 0x4e3   : > { %v10992_v44 = vadd.f32 %v4065_v60, %v3984_v61  ;;  %v10994_v16 = vpop.f32.mrf.mxu0  ;;  %v3876_v34 = vpop.f32.mrf.mxu1 }
 0x4e4   : > { %12244 = vst [vmem:[#allocation41_spill] sm:$0xff] %v10994_v16  ;;  %v10996_v25 = vadd.f32 %v3876_v34, %v3509_v50 }
 0x4e5   : > { %12243 = vst [vmem:[#allocation21_spill] sm:$0xff] %v10992_v44 }
 0x4e6   : > { %12245 = vst [vmem:[#allocation42_spill] sm:$0xff] %v10996_v25  ;;  %v11012_v25 = vld [vmem:[%s8828_s26 + $0x28] sm:$0xff] }
 0x4e7   : > { %12248 = vst [vmem:[#allocation45_spill] sm:$0xff] %v11012_v25 }
 0x4ea   : > { %v3986_v61 = vpop.f32.mrf.mxu2  ;;  %v4067_v60 = vpop.f32.mrf.mxu3 }
 0x4eb   : > { %v11007_v16 = vadd.f32 %v4067_v60, %v3986_v61  ;;  %v11009_v50 = vpop.f32.mrf.mxu0  ;;  %v3879_v34 = vpop.f32.mrf.mxu1 }
 0x4ec   : > { %12247 = vst [vmem:[#allocation44_spill] sm:$0xff] %v11009_v50  ;;  %v11014_v44 = vadd.f32 %v3879_v34, %v3510_v11  ;;  %v3512_v50 = vadd.f32 %v10748_v59, %v10712_v12  ;;  %v3513_v12 = vadd.f32 %v10748_v59, %v10722_v4 }
 0x4ed   : > { %12246 = vst [vmem:[#allocation46_spill] sm:$0xff] %v11007_v16  ;;  %v8510_v16 = vld [vmem:[%s8828_s26 + $0x84] sm:$0xff] }
 0x4ee   : > { %12249 = vst [vmem:[#allocation43_spill] sm:$0xff] %v11014_v44  ;;  %7845 = vmatmul.msk.bf16.gmra.mxu0 %vm295_vm0, %v8509_v13  ;;  %7869 = vmatmul.msk.bf16.gmra.mxu1 %vm295_vm0, %v8509_v13 }
 0x4ef   : > { %7893 = vmatmul.msk.bf16.gmra.mxu2 %vm295_vm0, %v8509_v13  ;;  %7996 = vmatmul.msk.bf16.gmra.mxu3 %vm295_vm0, %v11012_v25 }
 0x4f2   : > { %v3989_v63 = vpop.f32.mrf.mxu2  ;;  %v4070_v11 = vpop.f32.mrf.mxu3 }
 0x4f3   : > { %v11026_v61 = vadd.f32 %v4070_v11, %v3989_v63  ;;  %v11028_v60 = vpop.f32.mrf.mxu0  ;;  %v3881_v34 = vpop.f32.mrf.mxu1 }
 0x4f4   : > { %12250 = vst [vmem:[#allocation23_spill] sm:$0xff] %v11028_v60  ;;  %v11030_v13 = vadd.f32 %v3881_v34, %v3511_v46 }
 0x4fa   : > { %v3991_v44 = vpop.f32.mrf.mxu2  ;;  %v4072_v25 = vpop.f32.mrf.mxu3 }
 0x4fb   : > { %v11035_v49 = vadd.f32 %v4072_v25, %v3991_v44  ;;  %v11037_v48 = vpop.f32.mrf.mxu0  ;;  %v3884_v1 = vpop.f32.mrf.mxu1 }
 0x4fc   : > { %12252 = vst [vmem:[#allocation8_spill] sm:$0xff] %v11037_v48  ;;  %v11042_v63 = vadd.f32 %v3884_v1, %v3512_v50  ;;  %v3514_v1 = vadd.f32 %v10748_v59, %v10739_v20  ;;  %v3515_v20 = vadd.f32 %v10748_v59, %v10758_v33 }
 0x4fd   : > { %12251 = vst [vmem:[#allocation10_spill] sm:$0xff] %v11035_v49  ;;  %v11065_v49 = vld [vmem:[%s8828_s26 + $0x38] sm:$0xff] }
 0x4fe   : > { %12254 = vst [vmem:[#allocation49_spill] sm:$0xff] %v11042_v63  ;;  %7846 = vmatmul.msk.bf16.gmra.mxu0 %vm295_vm0, %v8510_v16  ;;  %7870 = vmatmul.msk.bf16.gmra.mxu1 %vm295_vm0, %v8510_v16  ;;  %v8511_v63 = vld [vmem:[%s8828_s26 + $0x8c] sm:$0xff] }
 0x4ff   : > { %7894 = vmatmul.msk.bf16.gmra.mxu2 %vm295_vm0, %v8510_v16  ;;  %7997 = vmatmul.msk.bf16.gmra.mxu3 %vm295_vm0, %v11040_v23  ;;  %12260 = vst [vmem:[#allocation55_spill] sm:$0xff] %v11065_v49 }
 0x502   : > { %v3994_v44 = vpop.f32.mrf.mxu2  ;;  %v4075_v25 = vpop.f32.mrf.mxu3 }
 0x503   : > { %v11051_v46 = vadd.f32 %v4075_v25, %v3994_v44  ;;  %v11053_v11 = vpop.f32.mrf.mxu0  ;;  %v3886_v50 = vpop.f32.mrf.mxu1 }
 0x504   : > { %12256 = vst [vmem:[#allocation51_spill] sm:$0xff] %v11053_v11  ;;  %v11055_v34 = vadd.f32 %v3886_v50, %v3513_v12 }
 0x505   : > { %12255 = vst [vmem:[#allocation50_spill] sm:$0xff] %v11051_v46 }
 0x506   : > { %12257 = vst [vmem:[#allocation52_spill] sm:$0xff] %v11055_v34 }
 0x50a   : > { %v3996_v16 = vpop.f32.mrf.mxu2  ;;  %v4077_v60 = vpop.f32.mrf.mxu3 }
 0x50b   : > { %v11060_v48 = vadd.f32 %v4077_v60, %v3996_v16  ;;  %v11062_v23 = vpop.f32.mrf.mxu0  ;;  %v3889_v4 = vpop.f32.mrf.mxu1 }
 0x50c   : > { %12259 = vst [vmem:[#allocation54_spill] sm:$0xff] %v11062_v23  ;;  %v11067_v44 = vadd.f32 %v3889_v4, %v3514_v1 }
 0x50d   : > { %12258 = vst [vmem:[#allocation53_spill] sm:$0xff] %v11060_v48  ;;  %v8512_v48 = vld [vmem:[%s8828_s26 + $0x94] sm:$0xff] }
 0x50e   : > { %12261 = vst [vmem:[#allocation56_spill] sm:$0xff] %v11067_v44  ;;  %7847 = vmatmul.msk.bf16.gmra.mxu0 %vm295_vm0, %v8511_v63  ;;  %7871 = vmatmul.msk.bf16.gmra.mxu1 %vm295_vm0, %v8511_v63 }
 0x50f   : > { %7895 = vmatmul.msk.bf16.gmra.mxu2 %vm295_vm0, %v8511_v63  ;;  %7998 = vmatmul.msk.bf16.gmra.mxu3 %vm295_vm0, %v11065_v49  ;;  %v11086_v49 = vld [vmem:[%s8828_s26 + $0x40] sm:$0xff] }
 0x510   : > { %12266 = vst [vmem:[#allocation61_spill] sm:$0xff] %v11086_v49 }
 0x512   : > { %v3999_v60 = vpop.f32.mrf.mxu2  ;;  %v4080_v12 = vpop.f32.mrf.mxu3 }
 0x513   : > { %v11076_v25 = vadd.f32 %v4080_v12, %v3999_v60  ;;  %v11078_v50 = vpop.f32.mrf.mxu0  ;;  %v3891_v1 = vpop.f32.mrf.mxu1 }
 0x514   : > { %12263 = vst [vmem:[#allocation58_spill] sm:$0xff] %v11078_v50  ;;  %v11080_v16 = vadd.f32 %v3891_v1, %v3515_v20  ;;  %v12268_v1 = vld [vmem:[#allocation47_spill] sm:$0xff] }
 0x515   : > { %12262 = vst [vmem:[#allocation57_spill] sm:$0xff] %v11076_v25 }
 0x516   : > { %12264 = vst [vmem:[#allocation59_spill] sm:$0xff] %v11080_v16 }
 0x51a   : > { %v4001_v4 = vpop.f32.mrf.mxu2  ;;  %v4082_v23 = vpop.f32.mrf.mxu3 }
 0x51b   : > { %v11083_v11 = vadd.f32 %v4082_v23, %v4001_v4  ;;  %v4235_v63 = vpop.f32.mrf.mxu0  ;;  %v4345_v44 = vpop.f32.mrf.mxu1  ;;  %v3749_v4 = vadd.f32 %v10762_v54, %v12268_v1  ;;  %v3754_v54 = vadd.f32 %v10790_v39, %v10420_v10 }
 0x51c   : > { %v4405_v59 = vadd.f32 %v4345_v44, %v10764_v53 }
 0x51d   : > { %12265 = vst [vmem:[#allocation60_spill] sm:$0xff] %v11083_v11  ;;  %v4295_v16 = vadd.f32 %v4235_v63, %v3749_v4 }
 0x51e   : > { %7848 = vmatmul.msk.bf16.gmra.mxu0 %vm295_vm0, %v8512_v48  ;;  %7872 = vmatmul.msk.bf16.gmra.mxu1 %vm295_vm0, %v8512_v48  ;;  %v4564_v11 = vrot.slane %v4405_v59, 3 }
 0x51f   : > { %7896 = vmatmul.msk.bf16.gmra.mxu2 %vm295_vm0, %v8512_v48  ;;  %7999 = vmatmul.msk.bf16.gmra.mxu3 %vm295_vm0, %v11086_v49 }
 0x522   : > { %v4455_v33 = vpop.f32.mrf.mxu2  ;;  %v11094_v20 = vpop.f32.mrf.mxu3 }
 0x523   : > { %12267 = vst [vmem:[#allocation62_spill] sm:$0xff] %v11094_v20  ;;  %v4237_v23 = vpop.f32.mrf.mxu0  ;;  %v4347_v60 = vpop.f32.mrf.mxu1  ;;  %v4515_v53 = vadd.f32 %v4455_v33, %v10780_v52  ;;  %v8513_v20 = vld [vmem:[%s8828_s26 + $0x9c] sm:$0xff]  ;;  %v3751_v52 = vadd.f32 %v10782_v22, %v10394_v56 }
 0x524   : > { %v4406_v12 = vadd.f32 %v4347_v60, %v10784_v29  ;;  %v11106_v60 = vld [vmem:[%s8828_s26 + $0x48] sm:$0xff] }
 0x526   : > { %v4565_v48 = vrot.slane %v4406_v12, 3 }
 0x528   : > { %v4566_v49 = vsel %vm4563_vm9, %v4564_v11, %v4565_v48 }
 0x529   : > { %v4628_v44 = vadd.f32 %v4566_v49, %v4295_v16  ;;  %v4677_v49 = vrot.slane %v4515_v53, 6 }
 0x52a   : > { %v4457_v50 = vpop.f32.mrf.mxu2  ;;  %v11101_v25 = vpop.f32.mrf.mxu3 }
 0x52b   : > { %v4516_v34 = vadd.f32 %v4457_v50, %v10788_v45  ;;  %v4240_v46 = vpop.f32.mrf.mxu0  ;;  %v4350_v29 = vpop.f32.mrf.mxu1  ;;  %v4296_v45 = vadd.f32 %v4237_v23, %v3751_v52 }
 0x52c   : > { %v4407_v63 = vadd.f32 %v4350_v29, %v10792_v5  ;;  %v4297_v16 = vadd.f32 %v4240_v46, %v3754_v54 }
 0x52d   : > { %v4678_v11 = vrot.slane %v4516_v34, 6 }
 0x52e   : > { %v4567_v59 = vrot.slane %v4407_v63, 3  ;;  %7849 = vmatmul.msk.bf16.gmra.mxu0 %vm295_vm0, %v8513_v20  ;;  %7873 = vmatmul.msk.bf16.gmra.mxu1 %vm295_vm0, %v8513_v20 }
 0x52f   : > { %v4679_v50 = vsel %vm4676_vm10, %v4677_v49, %v4678_v11  ;;  %7897 = vmatmul.msk.bf16.gmra.mxu2 %vm295_vm0, %v8513_v20  ;;  %8000 = vmatmul.msk.bf16.gmra.mxu3 %vm295_vm0, %v11106_v60 }
 0x530   : > { %v4741_v10 = vadd.f32 %v4679_v50, %v4628_v44  ;;  %v4568_v56 = vsel %vm4563_vm9, %v4565_v48, %v4567_v59  ;;  %v4630_v22 = vadd.f32 %v4567_v59, %v4297_v16  ;;  %v11133_v16 = vld [vmem:[%s8828_s26 + $0x50] sm:$0xff]  ;;  %v3756_v59 = vadd.f32 %v10806_v27, %v10430_v40 }
 0x531   : > { %v4629_v39 = vadd.f32 %v4568_v56, %v4296_v45 }
 0x532   : > { %v4765_v5 = vmax.f32 %v4741_v10, 0.0  ;;  %v4460_v46 = vpop.f32.mrf.mxu2  ;;  %v11120_v34 = vpop.f32.mrf.mxu3 }
 0x533   : > { %v4517_v33 = vadd.f32 %v4460_v46, %v10804_v19  ;;  %v4242_v23 = vpop.f32.mrf.mxu0  ;;  %v4352_v12 = vpop.f32.mrf.mxu1  ;;  %v8514_v19 = vld [vmem:[%s8828_s26 + $0xa4] sm:$0xff]  ;;  %v3761_v46 = vadd.f32 %v10833_v14, %v10474_v26 }
 0x534   : > { %7900 = vst.msk [vmem:[%s9623_s12 + $0xff] sm:$0xfe] %vm4790_vm11, %v4765_v5  ;;  %v4408_v29 = vadd.f32 %v4352_v12, %v10808_v35  ;;  %v4298_v35 = vadd.f32 %v4242_v23, %v3756_v59  ;;  %v8574_v23 = vld [vmem:[%s11940_s1 + $0x228] sm:$0xff]  ;;  %v8540_v59 = vld [vmem:[%s11940_s1 + $0x1d8] sm:$0xff] }
 0x535   : > { %v4680_v20 = vrot.slane %v4517_v33, 6  ;;  %5837 = vmatpush.bf16.msra.mxu2 %v8574_v23  ;;  %5541 = vmatpush.bf16.msra.mxu0 %v8540_v59  ;;  %v12269_v23 = vld [vmem:[#allocation9_spill] sm:$0xff] }
 0x536   : > { %v4569_v45 = vrot.slane %v4408_v29, 3 }
 0x537   : > { %v4681_v1 = vsel %vm4676_vm10, %v4678_v11, %v4680_v20  ;;  %v4743_v4 = vadd.f32 %v4680_v20, %v4630_v22 }
 0x538   : > { %v4742_v48 = vadd.f32 %v4681_v1, %v4629_v39 }
 0x539   : > { %v4767_v53 = vmax.f32 %v4743_v4, 0.0 }
 0x53a   : > { %v4766_v44 = vmax.f32 %v4742_v48, 0.0  ;;  %v4462_v54 = vpop.f32.mrf.mxu2  ;;  %v11127_v63 = vpop.f32.mrf.mxu3 }
 0x53b   : > { %7902 = vst.msk [vmem:[%s9623_s12 + $0x10f] sm:$0x1] %vm4793_vm12, %v4767_v53  ;;  %v4245_v52 = vpop.f32.mrf.mxu0  ;;  %v4355_v49 = vpop.f32.mrf.mxu1  ;;  %v4518_v56 = vadd.f32 %v4462_v54, %v10812_v15  ;;  %v3759_v15 = vadd.f32 %v10814_v37, %v10453_v2  ;;  %v8515_v2 = vld [vmem:[%s8828_s26 + $0xac] sm:$0xff] }
 0x53c   : > { %7901 = vst.msk [vmem:[%s9623_s12 + $0x107] sm:$0xff] %vm1704_vm5, %v4766_v44  ;;  %v4409_v11 = vadd.f32 %v4355_v49, %v10816_v30 }
 0x53d   : > { %v4682_v12 = vrot.slane %v4518_v56, 6  ;;  %v4299_v4 = vadd.f32 %v4245_v52, %v3759_v15  ;;  %v8576_v52 = vld [vmem:[%s11940_s1 + $0x238] sm:$0xff]  ;;  %v3764_v15 = vadd.f32 %v10847_v3, %v12269_v23 }
 0x53e   : > { %v4570_v50 = vrot.slane %v4409_v11, 3  ;;  %7850 = vmatmul.msk.bf16.gmra.mxu0 %vm295_vm0, %v8514_v19  ;;  %7874 = vmatmul.msk.bf16.gmra.mxu1 %vm295_vm0, %v8514_v19  ;;  %v11165_v11 = vld [vmem:[%s8828_s26 + $0x58] sm:$0xff] }
 0x53f   : > { %7898 = vmatmul.msk.bf16.gmra.mxu2 %vm295_vm0, %v8514_v19  ;;  %8001 = vmatmul.msk.bf16.gmra.mxu3 %vm295_vm0, %v11133_v16  ;;  %v8572_v56 = vld [vmem:[%s11940_s1 + $0x218] sm:$0xff] }
 0x540   : > { %v4571_v10 = vsel %vm4563_vm9, %v4569_v45, %v4570_v50  ;;  %5947 = vmatpush.bf16.msra.mxu3 %v8576_v52  ;;  %5743 = vmatpush.bf16.msra.mxu1 %v8572_v56 }
 0x541   : > { %v4631_v30 = vadd.f32 %v4571_v10, %v4298_v35 }
 0x542   : > { %v4465_v22 = vpop.f32.mrf.mxu2  ;;  %v11147_v39 = vpop.f32.mrf.mxu3 }
 0x543   : > { %v4519_v40 = vadd.f32 %v4465_v22, %v10831_v51  ;;  %v4247_v27 = vpop.f32.mrf.mxu0  ;;  %v4357_v5 = vpop.f32.mrf.mxu1 }
 0x544   : > { %v4410_v33 = vadd.f32 %v4357_v5, %v10835_v36  ;;  %v4300_v1 = vadd.f32 %v4247_v27, %v3761_v46 }
 0x545   : > { %v4683_v20 = vrot.slane %v4519_v40, 6 }
 0x546   : > { %v4572_v51 = vrot.slane %v4410_v33, 3 }
 0x547   : > { %v4684_v26 = vsel %vm4676_vm10, %v4682_v12, %v4683_v20 }
 0x548   : > { %v4744_v14 = vadd.f32 %v4684_v26, %v4631_v30  ;;  %v4573_v36 = vsel %vm4563_vm9, %v4570_v50, %v4572_v51  ;;  %v4633_v48 = vadd.f32 %v4572_v51, %v4300_v1 }
 0x549   : > { %v4632_v53 = vadd.f32 %v4573_v36, %v4299_v4  ;;  %v8541_v36 = vld [vmem:[%s8828_s26 + $0x30] sm:$0xff] }
 0x54a   : > { %v4768_v44 = vmax.f32 %v4744_v14, 0.0  ;;  %v4467_v29 = vpop.f32.mrf.mxu2  ;;  %v11160_v54 = vpop.f32.mrf.mxu3 }
 0x54b   : > { %v4520_v37 = vadd.f32 %v4467_v29, %v10845_v32  ;;  %v4250_v19 = vpop.f32.mrf.mxu0  ;;  %v4360_v49 = vpop.f32.mrf.mxu1  ;;  %v3766_v29 = vadd.f32 %v10866_v47, %v10510_v38 }
 0x54c   : > { %7903 = vst.msk [vmem:[%s9623_s12 + $0x10f] sm:$0xfe] %vm4790_vm11, %v4768_v44  ;;  %v4411_v22 = vadd.f32 %v4360_v49, %v10849_v18  ;;  %v4301_v1 = vadd.f32 %v4250_v19, %v3764_v15  ;;  %v12270_v15 = vld [vmem:[#allocation3_spill] sm:$0xff] }
 0x54d   : > { %v4685_v45 = vrot.slane %v4520_v37, 6 }
 0x54e   : > { %7851 = vmatmul.msk.bf16.gmra.mxu0 %vm295_vm0, %v8515_v2  ;;  %7875 = vmatmul.msk.bf16.gmra.mxu1 %vm295_vm0, %v8515_v2  ;;  %v4574_v12 = vrot.slane %v4411_v22, 3 }
 0x54f   : > { %v4686_v32 = vsel %vm4676_vm10, %v4683_v20, %v4685_v45  ;;  %v4746_v50 = vadd.f32 %v4685_v45, %v4633_v48  ;;  %7899 = vmatmul.msk.bf16.gmra.mxu2 %vm295_vm0, %v8515_v2  ;;  %8002 = vmatmul.msk.bf16.gmra.mxu3 %vm295_vm0, %v11165_v11 }
 0x550   : > { %v4745_v35 = vadd.f32 %v4686_v32, %v4632_v53 }
 0x551   : > { %v4770_v10 = vmax.f32 %v4746_v50, 0.0 }
 0x552   : > { %v4769_v30 = vmax.f32 %v4745_v35, 0.0  ;;  %v4470_v40 = vpop.f32.mrf.mxu2  ;;  %v11185_v27 = vpop.f32.mrf.mxu3 }
 0x553   : > { %7905 = vst.msk [vmem:[%s9623_s12 + $0x11f] sm:$0x1] %vm4793_vm12, %v4770_v10  ;;  %v4252_v5 = vpop.f32.mrf.mxu0  ;;  %v4362_v46 = vpop.f32.mrf.mxu1  ;;  %v4521_v51 = vadd.f32 %v4470_v40, %v10864_v0 }
 0x554   : > { %7904 = vst.msk [vmem:[%s9623_s12 + $0x117] sm:$0xff] %vm1704_vm5, %v4769_v30  ;;  %v4412_v33 = vadd.f32 %v4362_v46, %v10868_v41  ;;  %v3769_v41 = vadd.f32 %v10875_v42, %v10530_v17 }
 0x555   : > { %v4687_v2 = vrot.slane %v4521_v51, 6 }
 0x556   : > { %v4575_v20 = vrot.slane %v4412_v33, 3  ;;  %v8542_v33 = vld [vmem:[%s8828_s26 + $0x38] sm:$0xff] }
 0x558   : > { %v4576_v18 = vsel %vm4563_vm9, %v4574_v12, %v4575_v20 }
 0x559   : > { %v4634_v4 = vadd.f32 %v4576_v18, %v4301_v1  ;;  %v12272_v1 = vld [vmem:[#allocation35_spill] sm:$0xff] }
 0x55a   : > { %v4472_v26 = vpop.f32.mrf.mxu2  ;;  %v11196_v14 = vpop.f32.mrf.mxu3 }
 0x55b   : > { %v4522_v48 = vadd.f32 %v4472_v26, %v10873_v7  ;;  %v4255_v53 = vpop.f32.mrf.mxu0  ;;  %v4365_v44 = vpop.f32.mrf.mxu1  ;;  %v4302_v7 = vadd.f32 %v4252_v5, %v3766_v29 }
 0x55c   : > { %v4413_v3 = vadd.f32 %v4365_v44, %v10880_v58  ;;  %v4303_v0 = vadd.f32 %v4255_v53, %v3769_v41 }
 0x55d   : > { %v4688_v37 = vrot.slane %v4522_v48, 6  ;;  %v12274_v48 = vld [vmem:[#allocation33_spill] sm:$0xff] }
 0x55e   : > { %v4577_v19 = vrot.slane %v4413_v3, 3  ;;  %8091 = vmatmul.msk.bf16.vlgmr.msrb.gmra.mxu0 %vm295_vm0, %v8541_v36  ;;  %8111 = vmatmul.msk.bf16.vlgmr.msrb.gmra.mxu1 %vm295_vm0, %v10878_v28 }
 0x55f   : > { %v4689_v49 = vsel %vm4676_vm10, %v4687_v2, %v4688_v37  ;;  %8135 = vmatmul.msk.bf16.vlgmr.msrb.gmra.mxu2 %vm295_vm0, %v8541_v36  ;;  %8159 = vmatmul.msk.bf16.vlgmr.msrb.gmra.mxu3 %vm295_vm0, %v8541_v36 }
 0x560   : > { %v4747_v17 = vadd.f32 %v4689_v49, %v4634_v4  ;;  %v4578_v38 = vsel %vm4563_vm9, %v4575_v20, %v4577_v19  ;;  %v4636_v47 = vadd.f32 %v4577_v19, %v4303_v0  ;;  %v12271_v20 = vld [vmem:[#allocation7_spill] sm:$0xff]  ;;  %v12275_v0 = vld [vmem:[#allocation12_spill] sm:$0xff] }
 0x561   : > { %v4635_v42 = vadd.f32 %v4578_v38, %v4302_v7  ;;  %v3771_v18 = vadd.f32 %v12272_v1, %v12271_v20  ;;  %v3776_v19 = vadd.f32 %v10916_v43, %v12275_v0  ;;  %v12276_v7 = vld [vmem:[#allocation27_spill] sm:$0xff]  ;;  %v12278_v38 = vld [vmem:[#allocation34_spill] sm:$0xff] }
 0x562   : > { %v4771_v58 = vmax.f32 %v4747_v17, 0.0  ;;  %v4475_v52 = vpop.f32.mrf.mxu2  ;;  %v11212_v59 = vpop.f32.mrf.mxu3  ;;  %v12277_v17 = vld [vmem:[#allocation25_spill] sm:$0xff] }
 0x563   : > { %v4523_v28 = vadd.f32 %v4475_v52, %v10889_v9  ;;  %v4257_v45 = vpop.f32.mrf.mxu0  ;;  %v4367_v32 = vpop.f32.mrf.mxu1 }
 0x564   : > { %7906 = vst.msk [vmem:[%s9623_s12 + $0x11f] sm:$0xfe] %vm4790_vm11, %v4771_v58  ;;  %v4414_v40 = vadd.f32 %v4367_v32, %v10893_v62  ;;  %v12273_v62 = vld [vmem:[#allocation32_spill] sm:$0xff]  ;;  %v4304_v26 = vadd.f32 %v4257_v45, %v3771_v18 }
 0x565   : > { %v4690_v50 = vrot.slane %v4523_v28, 6 }
 0x566   : > { %v4579_v51 = vrot.slane %v4414_v40, 3  ;;  %v12279_v40 = vld [vmem:[#allocation18_spill] sm:$0xff] }
 0x567   : > { %v4691_v35 = vsel %vm4676_vm10, %v4688_v37, %v4690_v50  ;;  %v4749_v10 = vadd.f32 %v4690_v50, %v4636_v47  ;;  %v3774_v47 = vadd.f32 %v12278_v38, %v12277_v17 }
 0x568   : > { %v4748_v56 = vadd.f32 %v4691_v35, %v4635_v42 }
 0x569   : > { %v4773_v30 = vmax.f32 %v4749_v10, 0.0 }
 0x56a   : > { %v4772_v22 = vmax.f32 %v4748_v56, 0.0  ;;  %v4477_v5 = vpop.f32.mrf.mxu2  ;;  %v11219_v46 = vpop.f32.mrf.mxu3 }
 0x56b   : > { %7908 = vst.msk [vmem:[%s9623_s12 + $0x12f] sm:$0x1] %vm4793_vm12, %v4773_v30  ;;  %v4260_v9 = vpop.f32.mrf.mxu0  ;;  %v4370_v23 = vpop.f32.mrf.mxu1  ;;  %v4524_v53 = vadd.f32 %v4477_v5, %v12274_v48 }
 0x56c   : > { %7907 = vst.msk [vmem:[%s9623_s12 + $0x127] sm:$0xff] %vm1704_vm5, %v4772_v22  ;;  %v4415_v12 = vadd.f32 %v4370_v23, %v12270_v15  ;;  %v4305_v45 = vadd.f32 %v4260_v9, %v3774_v47  ;;  %v8543_v22 = vld [vmem:[%s8828_s26 + $0x40] sm:$0xff] }
 0x56d   : > { %v4692_v42 = vrot.slane %v4524_v53, 6  ;;  %v12280_v15 = vld [vmem:[#allocation19_spill] sm:$0xff] }
 0x56e   : > { %v4580_v4 = vrot.slane %v4415_v12, 3  ;;  %8092 = vmatmul.msk.bf16.gmra.mxu0 %vm295_vm0, %v8542_v33  ;;  %8112 = vmatmul.msk.bf16.gmra.mxu1 %vm295_vm0, %v12273_v62 }
 0x56f   : > { %8136 = vmatmul.msk.bf16.gmra.mxu2 %vm295_vm0, %v8542_v33  ;;  %8160 = vmatmul.msk.bf16.gmra.mxu3 %vm295_vm0, %v8542_v33 }
 0x570   : > { %v4581_v36 = vsel %vm4563_vm9, %v4579_v51, %v4580_v4 }
 0x571   : > { %v4637_v44 = vadd.f32 %v4581_v36, %v4304_v26 }
 0x572   : > { %v4480_v41 = vpop.f32.mrf.mxu2  ;;  %v11236_v3 = vpop.f32.mrf.mxu3 }
 0x573   : > { %v4525_v29 = vadd.f32 %v4480_v41, %v10914_v31  ;;  %v4262_v2 = vpop.f32.mrf.mxu0  ;;  %v4372_v37 = vpop.f32.mrf.mxu1  ;;  %v12282_v41 = vld [vmem:[#allocation24_spill] sm:$0xff] }
 0x574   : > { %v4416_v49 = vadd.f32 %v4372_v37, %v12276_v7  ;;  %v4306_v52 = vadd.f32 %v4262_v2, %v3776_v19 }
 0x575   : > { %v4693_v58 = vrot.slane %v4525_v29, 6  ;;  %v12283_v29 = vld [vmem:[#allocation20_spill] sm:$0xff] }
 0x576   : > { %v4582_v28 = vrot.slane %v4416_v49, 3  ;;  %v3779_v2 = vadd.f32 %v12283_v29, %v12282_v41 }
 0x577   : > { %v4694_v32 = vsel %vm4676_vm10, %v4692_v42, %v4693_v58  ;;  %v8544_v42 = vld [vmem:[%s8828_s26 + $0x48] sm:$0xff] }
 0x578   : > { %v4750_v31 = vadd.f32 %v4694_v32, %v4637_v44  ;;  %v4583_v50 = vsel %vm4563_vm9, %v4580_v4, %v4582_v28  ;;  %v4639_v35 = vadd.f32 %v4582_v28, %v4306_v52  ;;  %v12281_v4 = vld [vmem:[#allocation22_spill] sm:$0xff]  ;;  %v12286_v32 = vld [vmem:[#allocation4_spill] sm:$0xff] }
 0x579   : > { %v4638_v10 = vadd.f32 %v4583_v50, %v4305_v45  ;;  %v12287_v50 = vld [vmem:[#allocation39_spill] sm:$0xff] }
 0x57a   : > { %v4774_v43 = vmax.f32 %v4750_v31, 0.0  ;;  %v4482_v56 = vpop.f32.mrf.mxu2  ;;  %v11246_v30 = vpop.f32.mrf.mxu3 }
 0x57b   : > { %v4526_v5 = vadd.f32 %v4482_v56, %v12279_v40  ;;  %v4265_v33 = vpop.f32.mrf.mxu0  ;;  %v4375_v23 = vpop.f32.mrf.mxu1 }
 0x57c   : > { %7909 = vst.msk [vmem:[%s9623_s12 + $0x12f] sm:$0xfe] %vm4790_vm11, %v4774_v43  ;;  %v4417_v62 = vadd.f32 %v4375_v23, %v12281_v4  ;;  %v4307_v19 = vadd.f32 %v4265_v33, %v3779_v2  ;;  %v12289_v43 = vld [vmem:[#allocation36_spill] sm:$0xff]  ;;  %v12290_v33 = vld [vmem:[#allocation38_spill] sm:$0xff] }
 0x57d   : > { %v4695_v9 = vrot.slane %v4526_v5, 6 }
 0x57e   : > { %8093 = vmatmul.msk.bf16.gmra.mxu0 %vm295_vm0, %v8543_v22  ;;  %8113 = vmatmul.msk.bf16.gmra.mxu1 %vm295_vm0, %v12280_v15  ;;  %v4584_v37 = vrot.slane %v4417_v62, 3 }
 0x57f   : > { %v4696_v12 = vsel %vm4676_vm10, %v4693_v58, %v4695_v9  ;;  %v4752_v20 = vadd.f32 %v4695_v9, %v4639_v35  ;;  %8137 = vmatmul.msk.bf16.gmra.mxu2 %vm295_vm0, %v8543_v22  ;;  %8161 = vmatmul.msk.bf16.gmra.mxu3 %vm295_vm0, %v8543_v22  ;;  %v12284_v58 = vld [vmem:[#allocation37_spill] sm:$0xff] }
 0x580   : > { %v4751_v1 = vadd.f32 %v4696_v12, %v4638_v10  ;;  %v12288_v10 = vld [vmem:[#allocation14_spill] sm:$0xff] }
 0x581   : > { %v4776_v18 = vmax.f32 %v4752_v20, 0.0  ;;  %v3781_v56 = vadd.f32 %v12289_v43, %v12288_v10 }
 0x582   : > { %v4775_v51 = vmax.f32 %v4751_v1, 0.0  ;;  %v4485_v26 = vpop.f32.mrf.mxu2  ;;  %v11259_v36 = vpop.f32.mrf.mxu3 }
 0x583   : > { %7911 = vst.msk [vmem:[%s9623_s12 + $0x13f] sm:$0x1] %vm4793_vm12, %v4776_v18  ;;  %v4267_v48 = vpop.f32.mrf.mxu0  ;;  %v4377_v53 = vpop.f32.mrf.mxu1  ;;  %v4527_v49 = vadd.f32 %v4485_v26, %v10939_v24 }
 0x584   : > { %7910 = vst.msk [vmem:[%s9623_s12 + $0x137] sm:$0xff] %vm1704_vm5, %v4775_v51  ;;  %v4418_v44 = vadd.f32 %v4377_v53, %v10943_v55  ;;  %v12285_v55 = vld [vmem:[#allocation11_spill] sm:$0xff]  ;;  %v4308_v23 = vadd.f32 %v4267_v48, %v3781_v56 }
 0x585   : > { %v3784_v31 = vadd.f32 %v12286_v32, %v12285_v55  ;;  %v4697_v22 = vrot.slane %v4527_v49, 6  ;;  %v8545_v49 = vld [vmem:[%s8828_s26 + $0x50] sm:$0xff]  ;;  %v12293_v32 = vld [vmem:[#allocation40_spill] sm:$0xff] }
 0x586   : > { %v4585_v0 = vrot.slane %v4418_v44, 3 }
 0x588   : > { %v4586_v7 = vsel %vm4563_vm9, %v4584_v37, %v4585_v0 }
 0x589   : > { %v4640_v17 = vadd.f32 %v4586_v7, %v4307_v19 }
 0x58a   : > { %v4487_v38 = vpop.f32.mrf.mxu2  ;;  %v11270_v47 = vpop.f32.mrf.mxu3 }
 0x58b   : > { %v4528_v52 = vadd.f32 %v4487_v38, %v12284_v58  ;;  %v4270_v28 = vpop.f32.mrf.mxu0  ;;  %v4380_v45 = vpop.f32.mrf.mxu1 }
 0x58c   : > { %v4419_v35 = vadd.f32 %v4380_v45, %v12287_v50  ;;  %v4309_v24 = vadd.f32 %v4270_v28, %v3784_v31 }
 0x58d   : > { %v4698_v40 = vrot.slane %v4528_v52, 6 }
 0x58e   : > { %v4587_v5 = vrot.slane %v4419_v35, 3  ;;  %8094 = vmatmul.msk.bf16.gmra.mxu0 %vm295_vm0, %v8544_v42  ;;  %8114 = vmatmul.msk.bf16.gmra.mxu1 %vm295_vm0, %v12290_v33 }
 0x58f   : > { %v4699_v9 = vsel %vm4676_vm10, %v4697_v22, %v4698_v40  ;;  %8138 = vmatmul.msk.bf16.gmra.mxu2 %vm295_vm0, %v8544_v42  ;;  %8162 = vmatmul.msk.bf16.gmra.mxu3 %vm295_vm0, %v8544_v42  ;;  %v12291_v42 = vld [vmem:[#allocation15_spill] sm:$0xff]  ;;  %v12295_v22 = vld [vmem:[#allocation13_spill] sm:$0xff] }
 0x590   : > { %v4753_v15 = vadd.f32 %v4699_v9, %v4640_v17  ;;  %v4588_v12 = vsel %vm4563_vm9, %v4585_v0, %v4587_v5  ;;  %v4642_v20 = vadd.f32 %v4587_v5, %v4309_v24  ;;  %v3786_v58 = vadd.f32 %v10966_v57, %v12291_v42  ;;  %v12294_v57 = vld [vmem:[#allocation21_spill] sm:$0xff]  ;;  %v12297_v5 = vld [vmem:[#allocation42_spill] sm:$0xff]  ;;  %v12298_v9 = vld [vmem:[#allocation16_spill] sm:$0xff] }
 0x591   : > { %v4641_v1 = vadd.f32 %v4588_v12, %v4308_v23  ;;  %v8573_v23 = vld [vmem:[%s11940_s1 + $0x220] sm:$0xff]  ;;  %v8539_v42 = vld [vmem:[%s11940_s1 + $0x1d0] sm:$0xff] }
 0x592   : > { %v4777_v18 = vmax.f32 %v4753_v15, 0.0  ;;  %v4490_v51 = vpop.f32.mrf.mxu2  ;;  %v11286_v4 = vpop.f32.mrf.mxu3  ;;  %v12299_v15 = vld [vmem:[#allocation5_spill] sm:$0xff]  ;;  %5838 = vmatpush.bf16.msra.mxu2 %v8573_v23  ;;  %5542 = vmatpush.bf16.msra.mxu0 %v8539_v42  ;;  %v12311_v42 = vld [vmem:[#allocation48_spill] sm:$0xff] }
 0x593   : > { %v4529_v62 = vadd.f32 %v4490_v51, %v10964_v6  ;;  %v4272_v26 = vpop.f32.mrf.mxu0  ;;  %v4382_v48 = vpop.f32.mrf.mxu1  ;;  %v3789_v12 = vadd.f32 %v12299_v15, %v12298_v9 }
 0x594   : > { %7912 = vst.msk [vmem:[%s9623_s12 + $0x13f] sm:$0xfe] %vm4790_vm11, %v4777_v18  ;;  %v4420_v0 = vadd.f32 %v4382_v48, %v10968_v21  ;;  %v12292_v21 = vld [vmem:[#allocation6_spill] sm:$0xff]  ;;  %v4310_v45 = vadd.f32 %v4272_v26, %v3786_v58 }
 0x595   : > { %v4700_v53 = vrot.slane %v4529_v62, 6 }
 0x596   : > { %v4589_v52 = vrot.slane %v4420_v0, 3  ;;  %v8546_v0 = vld [vmem:[%s8828_s26 + $0x58] sm:$0xff] }
 0x597   : > { %v4701_v44 = vsel %vm4676_vm10, %v4698_v40, %v4700_v53  ;;  %v4755_v41 = vadd.f32 %v4700_v53, %v4642_v20  ;;  %v12296_v40 = vld [vmem:[#allocation41_spill] sm:$0xff] }
 0x598   : > { %v4754_v29 = vadd.f32 %v4701_v44, %v4641_v1  ;;  %v3791_v24 = vadd.f32 %v12296_v40, %v12295_v22  ;;  %v12303_v40 = vld [vmem:[#allocation26_spill] sm:$0xff] }
 0x599   : > { %v4779_v2 = vmax.f32 %v4755_v41, 0.0 }
 0x59a   : > { %v4778_v37 = vmax.f32 %v4754_v29, 0.0  ;;  %v4492_v19 = vpop.f32.mrf.mxu2  ;;  %v11293_v7 = vpop.f32.mrf.mxu3 }
 0x59b   : > { %7914 = vst.msk [vmem:[%s9623_s12 + $0x14f] sm:$0x1] %vm4793_vm12, %v4779_v2  ;;  %v4275_v6 = vpop.f32.mrf.mxu0  ;;  %v4385_v17 = vpop.f32.mrf.mxu1  ;;  %v4530_v31 = vadd.f32 %v4492_v19, %v12293_v32  ;;  %v12300_v19 = vld [vmem:[#allocation46_spill] sm:$0xff]  ;;  %v8571_v32 = vld [vmem:[%s11940_s1 + $0x210] sm:$0xff] }
 0x59c   : > { %7913 = vst.msk [vmem:[%s9623_s12 + $0x147] sm:$0xff] %vm1704_vm5, %v4778_v37  ;;  %v4421_v38 = vadd.f32 %v4385_v17, %v10980_v8  ;;  %v4311_v62 = vadd.f32 %v4275_v6, %v3789_v12  ;;  %v8575_v6 = vld [vmem:[%s11940_s1 + $0x230] sm:$0xff]  ;;  %5744 = vmatpush.bf16.msra.mxu1 %v8571_v32 }
 0x59d   : > { %v4702_v20 = vrot.slane %v4530_v31, 6  ;;  %5948 = vmatpush.bf16.msra.mxu3 %v8575_v6 }
 0x59e   : > { %v4590_v28 = vrot.slane %v4421_v38, 3  ;;  %8095 = vmatmul.msk.bf16.gmra.mxu0 %vm295_vm0, %v8545_v49  ;;  %8115 = vmatmul.msk.bf16.gmra.mxu1 %vm295_vm0, %v12292_v21 }
 0x59f   : > { %8139 = vmatmul.msk.bf16.gmra.mxu2 %vm295_vm0, %v8545_v49  ;;  %8163 = vmatmul.msk.bf16.gmra.mxu3 %vm295_vm0, %v8545_v49 }
 0x5a0   : > { %v4591_v55 = vsel %vm4563_vm9, %v4589_v52, %v4590_v28  ;;  %v12301_v52 = vld [vmem:[#allocation45_spill] sm:$0xff] }
 0x5a1   : > { %v4643_v8 = vadd.f32 %v4591_v55, %v4310_v45 }
 0x5a2   : > { %v4495_v50 = vpop.f32.mrf.mxu2  ;;  %v11310_v35 = vpop.f32.mrf.mxu3 }
 0x5a3   : > { %v4531_v10 = vadd.f32 %v4495_v50, %v12294_v57  ;;  %v4277_v43 = vpop.f32.mrf.mxu0  ;;  %v4387_v56 = vpop.f32.mrf.mxu1 }
 0x5a4   : > { %v4422_v33 = vadd.f32 %v4387_v56, %v12297_v5  ;;  %v4312_v18 = vadd.f32 %v4277_v43, %v3791_v24  ;;  %v12304_v24 = vld [vmem:[#allocation44_spill] sm:$0xff] }
 0x5a5   : > { %v4703_v1 = vrot.slane %v4531_v10, 6  ;;  %v3794_v5 = vadd.f32 %v12304_v24, %v12303_v40 }
 0x5a6   : > { %v4592_v51 = vrot.slane %v4422_v33, 3 }
 0x5a7   : > { %v4704_v26 = vsel %vm4676_vm10, %v4702_v20, %v4703_v1 }
 0x5a8   : > { %v4756_v48 = vadd.f32 %v4704_v26, %v4643_v8  ;;  %v4593_v53 = vsel %vm4563_vm9, %v4590_v28, %v4592_v51  ;;  %v4645_v44 = vadd.f32 %v4592_v51, %v4312_v18  ;;  %v12302_v8 = vld [vmem:[#allocation43_spill] sm:$0xff] }
 0x5a9   : > { %v4644_v41 = vadd.f32 %v4593_v53, %v4311_v62  ;;  %v8547_v51 = vld [vmem:[%s8828_s26 + $0x60] sm:$0xff]  ;;  %v12305_v62 = vld [vmem:[#allocation10_spill] sm:$0xff] }
 0x5aa   : > { %v4780_v29 = vmax.f32 %v4756_v48, 0.0  ;;  %v4497_v2 = vpop.f32.mrf.mxu2  ;;  %v11323_v37 = vpop.f32.mrf.mxu3 }
 0x5ab   : > { %v4532_v49 = vadd.f32 %v4497_v2, %v12300_v19  ;;  %v4280_v17 = vpop.f32.mrf.mxu0  ;;  %v4390_v38 = vpop.f32.mrf.mxu1  ;;  %v12310_v19 = vld [vmem:[#allocation23_spill] sm:$0xff] }
 0x5ac   : > { %7915 = vst.msk [vmem:[%s9623_s12 + $0x14f] sm:$0xfe] %vm4790_vm11, %v4780_v29  ;;  %v4423_v50 = vadd.f32 %v4390_v38, %v12302_v8  ;;  %v4313_v9 = vadd.f32 %v4280_v17, %v3794_v5  ;;  %v12308_v29 = vld [vmem:[#allocation49_spill] sm:$0xff] }
 0x5ad   : > { %v4705_v58 = vrot.slane %v4532_v49, 6 }
 0x5ae   : > { %8096 = vmatmul.msk.bf16.gmra.mxu0 %vm295_vm0, %v8546_v0  ;;  %8116 = vmatmul.msk.bf16.gmra.mxu1 %vm295_vm0, %v12301_v52  ;;  %v4594_v33 = vrot.slane %v4423_v50, 3  ;;  %v12312_v50 = vld [vmem:[#allocation50_spill] sm:$0xff] }
 0x5af   : > { %v4706_v28 = vsel %vm4676_vm10, %v4703_v1, %v4705_v58  ;;  %v4758_v21 = vadd.f32 %v4705_v58, %v4645_v44  ;;  %8140 = vmatmul.msk.bf16.gmra.mxu2 %vm295_vm0, %v8546_v0  ;;  %8164 = vmatmul.msk.bf16.gmra.mxu3 %vm295_vm0, %v8546_v0  ;;  %v12307_v44 = vld [vmem:[#allocation8_spill] sm:$0xff]  ;;  %v12309_v0 = vld [vmem:[#allocation17_spill] sm:$0xff] }
 0x5b0   : > { %v4757_v45 = vadd.f32 %v4706_v28, %v4644_v41  ;;  %v3796_v49 = vadd.f32 %v12310_v19, %v12309_v0 }
 0x5b1   : > { %v4782_v55 = vmax.f32 %v4758_v21, 0.0 }
 0x5b2   : > { %v4781_v31 = vmax.f32 %v4757_v45, 0.0  ;;  %v4500_v57 = vpop.f32.mrf.mxu2  ;;  %v11345_v10 = vpop.f32.mrf.mxu3 }
 0x5b3   : > { %7917 = vst.msk [vmem:[%s9623_s12 + $0x15f] sm:$0x1] %vm4793_vm12, %v4782_v55  ;;  %v4282_v43 = vpop.f32.mrf.mxu0  ;;  %v4392_v56 = vpop.f32.mrf.mxu1  ;;  %v4533_v12 = vadd.f32 %v4500_v57, %v11026_v61 }
 0x5b4   : > { %7916 = vst.msk [vmem:[%s9623_s12 + $0x157] sm:$0xff] %vm1704_vm5, %v4781_v31  ;;  %v4424_v22 = vadd.f32 %v4392_v56, %v11030_v13  ;;  %v12306_v13 = vld [vmem:[#allocation28_spill] sm:$0xff]  ;;  %v4314_v58 = vadd.f32 %v4282_v43, %v3796_v49  ;;  %v12318_v49 = vld [vmem:[#allocation53_spill] sm:$0xff] }
 0x5b5   : > { %v3799_v41 = vadd.f32 %v12307_v44, %v12306_v13  ;;  %v4707_v17 = vrot.slane %v4533_v12, 6  ;;  %v12316_v13 = vld [vmem:[#allocation51_spill] sm:$0xff] }
 0x5b6   : > { %v4595_v23 = vrot.slane %v4424_v22, 3 }
 0x5b8   : > { %v4596_v15 = vsel %vm4563_vm9, %v4594_v33, %v4595_v23 }
 0x5b9   : > { %v4646_v20 = vadd.f32 %v4596_v15, %v4313_v9  ;;  %v12313_v9 = vld [vmem:[#allocation52_spill] sm:$0xff] }
 0x5ba   : > { %v4502_v1 = vpop.f32.mrf.mxu2  ;;  %v11356_v18 = vpop.f32.mrf.mxu3 }
 0x5bb   : > { %v4534_v26 = vadd.f32 %v4502_v1, %v12305_v62  ;;  %v4285_v48 = vpop.f32.mrf.mxu0  ;;  %v4395_v53 = vpop.f32.mrf.mxu1  ;;  %v8548_v1 = vld [vmem:[%s8828_s26 + $0x68] sm:$0xff] }
 0x5bc   : > { %v4425_v2 = vadd.f32 %v4395_v53, %v12308_v29  ;;  %v4315_v61 = vadd.f32 %v4285_v48, %v3799_v41  ;;  %v12315_v53 = vld [vmem:[#allocation30_spill] sm:$0xff] }
 0x5bd   : > { %v4708_v38 = vrot.slane %v4534_v26, 6  ;;  %v12314_v26 = vld [vmem:[#allocation56_spill] sm:$0xff]  ;;  %v3801_v44 = vadd.f32 %v12316_v13, %v12315_v53 }
 0x5be   : > { %v4597_v6 = vrot.slane %v4425_v2, 3  ;;  %8097 = vmatmul.msk.bf16.gmra.mxu0 %vm295_vm0, %v8547_v51  ;;  %8117 = vmatmul.msk.bf16.gmra.mxu1 %vm295_vm0, %v12311_v42  ;;  %v12317_v2 = vld [vmem:[#allocation55_spill] sm:$0xff]  ;;  %v12319_v42 = vld [vmem:[#allocation57_spill] sm:$0xff]  ;;  %v12325_v53 = vld [vmem:[#allocation60_spill] sm:$0xff] }
 0x5bf   : > { %v4709_v52 = vsel %vm4676_vm10, %v4707_v17, %v4708_v38  ;;  %8141 = vmatmul.msk.bf16.gmra.mxu2 %vm295_vm0, %v8547_v51  ;;  %8165 = vmatmul.msk.bf16.gmra.mxu3 %vm295_vm0, %v8547_v51 }
 0x5c0   : > { %v4759_v28 = vadd.f32 %v4709_v52, %v4646_v20  ;;  %v4598_v21 = vsel %vm4563_vm9, %v4595_v23, %v4597_v6  ;;  %v4648_v45 = vadd.f32 %v4597_v6, %v4315_v61 }
 0x5c1   : > { %v4647_v55 = vadd.f32 %v4598_v21, %v4314_v58  ;;  %v12320_v21 = vld [vmem:[#allocation29_spill] sm:$0xff] }
 0x5c2   : > { %v4783_v32 = vmax.f32 %v4759_v28, 0.0  ;;  %v4505_v31 = vpop.f32.mrf.mxu2  ;;  %v11372_v8 = vpop.f32.mrf.mxu3 }
 0x5c3   : > { %v4535_v57 = vadd.f32 %v4505_v31, %v12312_v50  ;;  %v4287_v43 = vpop.f32.mrf.mxu0  ;;  %v4397_v56 = vpop.f32.mrf.mxu1  ;;  %v12323_v50 = vld [vmem:[#allocation31_spill] sm:$0xff] }
 0x5c4   : > { %7918 = vst.msk [vmem:[%s9623_s12 + $0x15f] sm:$0xfe] %vm4790_vm11, %v4783_v32  ;;  %v4426_v15 = vadd.f32 %v4397_v56, %v12313_v9  ;;  %v4316_v0 = vadd.f32 %v4287_v43, %v3801_v44  ;;  %v12322_v32 = vld [vmem:[#allocation59_spill] sm:$0xff] }
 0x5c5   : > { %v4710_v22 = vrot.slane %v4535_v57, 6  ;;  %v12324_v57 = vld [vmem:[#allocation54_spill] sm:$0xff] }
 0x5c6   : > { %v4599_v41 = vrot.slane %v4426_v15, 3  ;;  %v3804_v43 = vadd.f32 %v12324_v57, %v12323_v50 }
 0x5c7   : > { %v4711_v40 = vsel %vm4676_vm10, %v4708_v38, %v4710_v22  ;;  %v4761_v24 = vadd.f32 %v4710_v22, %v4648_v45  ;;  %v12321_v45 = vld [vmem:[#allocation58_spill] sm:$0xff] }
 0x5c8   : > { %v4760_v5 = vadd.f32 %v4711_v40, %v4647_v55  ;;  %v3806_v55 = vadd.f32 %v12321_v45, %v12320_v21 }
 0x5c9   : > { %v4785_v33 = vmax.f32 %v4761_v24, 0.0 }
 0x5ca   : > { %v4784_v23 = vmax.f32 %v4760_v5, 0.0  ;;  %v4507_v12 = vpop.f32.mrf.mxu2  ;;  %v11379_v20 = vpop.f32.mrf.mxu3 }
 0x5cb   : > { %7920 = vst.msk [vmem:[%s9623_s12 + $0x16f] sm:$0x1] %vm4793_vm12, %v4785_v33  ;;  %v4290_v51 = vpop.f32.mrf.mxu0  ;;  %v4400_v62 = vpop.f32.mrf.mxu1  ;;  %v4536_v17 = vadd.f32 %v4507_v12, %v12318_v49 }
 0x5cc   : > { %7919 = vst.msk [vmem:[%s9623_s12 + $0x167] sm:$0xff] %vm1704_vm5, %v4784_v23  ;;  %v4427_v48 = vadd.f32 %v4400_v62, %v12314_v26  ;;  %v4317_v5 = vadd.f32 %v4290_v51, %v3804_v43  ;;  %v8550_v43 = vld [vmem:[%s8828_s26 + $0x78] sm:$0xff] }
 0x5cd   : > { %v4712_v56 = vrot.slane %v4536_v17, 6 }
 0x5ce   : > { %v4600_v29 = vrot.slane %v4427_v48, 3  ;;  %8098 = vmatmul.msk.bf16.gmra.mxu0 %vm295_vm0, %v8548_v1  ;;  %8118 = vmatmul.msk.bf16.gmra.mxu1 %vm295_vm0, %v12317_v2  ;;  %v8549_v48 = vld [vmem:[%s8828_s26 + $0x70] sm:$0xff] }
 0x5cf   : > { %8142 = vmatmul.msk.bf16.gmra.mxu2 %vm295_vm0, %v8548_v1  ;;  %8166 = vmatmul.msk.bf16.gmra.mxu3 %vm295_vm0, %v8548_v1 }
 0x5d0   : > { %v4601_v19 = vsel %vm4563_vm9, %v4599_v41, %v4600_v29 }
 0x5d1   : > { %v4649_v38 = vadd.f32 %v4601_v19, %v4316_v0  ;;  %v12326_v0 = vld [vmem:[#allocation61_spill] sm:$0xff] }
 0x5d2   : > { %v4510_v61 = vpop.f32.mrf.mxu2  ;;  %v11396_v6 = vpop.f32.mrf.mxu3 }
 0x5d3   : > { %v4537_v58 = vadd.f32 %v4510_v61, %v12319_v42  ;;  %v4292_v52 = vpop.f32.mrf.mxu0  ;;  %v4402_v28 = vpop.f32.mrf.mxu1 }
 0x5d4   : > { %v4428_v31 = vadd.f32 %v4402_v28, %v12322_v32  ;;  %v4318_v40 = vadd.f32 %v4292_v52, %v3806_v55 }
 0x5d5   : > { %v4713_v22 = vrot.slane %v4537_v58, 6 }
 0x5d6   : > { %v4602_v24 = vrot.slane %v4428_v31, 3 }
 0x5d7   : > { %v4714_v33 = vsel %vm4676_vm10, %v4712_v56, %v4713_v22 }
 0x5d8   : > { %v4762_v23 = vadd.f32 %v4714_v33, %v4649_v38  ;;  %v4603_v9 = vsel %vm4563_vm9, %v4600_v29, %v4602_v24  ;;  %v4651_v15 = vadd.f32 %v4602_v24, %v4318_v40  ;;  %v11417_v29 = vld [vmem:[%s11941_s2 + $0x3] ss:$0 sm:$0xff]  ;;  %v12327_v38 = vld [vmem:[#allocation62_spill] sm:$0xff] }
 0x5d9   : > { %v4650_v12 = vadd.f32 %v4603_v9, %v4317_v5  ;;  %v5035_v61 = vadd.f32 %v11417_v29, %v12327_v38  ;;  %v5036_v31 = vadd.f32 %v11417_v29, %v11101_v25  ;;  %v5037_v25 = vadd.f32 %v11417_v29, %v11120_v34 }
 0x5da   : > { %v4786_v1 = vmax.f32 %v4762_v23, 0.0  ;;  %v4512_v62 = vpop.f32.mrf.mxu2  ;;  %v11406_v26 = vpop.f32.mrf.mxu3 }
 0x5db   : > { %v4538_v13 = vadd.f32 %v4512_v62, %v12325_v53  ;;  %v5210_v44 = vpop.f32.mrf.mxu0  ;;  %v5283_v41 = vpop.f32.mrf.mxu1  ;;  %v8551_v62 = vld [vmem:[%s8828_s26 + $0x80] sm:$0xff] }
 0x5dc   : > { %7921 = vst.msk [vmem:[%s9623_s12 + $0x16f] sm:$0xfe] %vm4790_vm11, %v4786_v1  ;;  %v11412_v51 = vadd.f32 %v5283_v41, %v5210_v44 }
 0x5dd   : > { %v4715_v2 = vrot.slane %v4538_v13, 6 }
 0x5de   : > { %8099 = vmatmul.msk.bf16.gmra.mxu0 %vm295_vm0, %v8549_v48  ;;  %8119 = vmatmul.msk.bf16.gmra.mxu1 %vm295_vm0, %v12326_v0 }
 0x5df   : > { %v4716_v19 = vsel %vm4676_vm10, %v4713_v22, %v4715_v2  ;;  %v4764_v49 = vadd.f32 %v4715_v2, %v4651_v15  ;;  %8143 = vmatmul.msk.bf16.gmra.mxu2 %vm295_vm0, %v8549_v48  ;;  %8167 = vmatmul.msk.bf16.gmra.mxu3 %vm295_vm0, %v8549_v48 }
 0x5e0   : > { %v4763_v17 = vadd.f32 %v4716_v19, %v4650_v12  ;;  %v5038_v12 = vadd.f32 %v11417_v29, %v11127_v63  ;;  %v5039_v63 = vadd.f32 %v11417_v29, %v11147_v39 }
 0x5e1   : > { %v4788_v42 = vmax.f32 %v4764_v49, 0.0  ;;  %v5040_v49 = vadd.f32 %v11417_v29, %v11160_v54  ;;  %v5041_v54 = vadd.f32 %v11417_v29, %v11185_v27  ;;  %v8639_v27 = vld [vmem:[%s8828_s26] sm:$0xff] }
 0x5e2   : > { %v4787_v58 = vmax.f32 %v4763_v17, 0.0  ;;  %v5361_v52 = vpop.f32.mrf.mxu2  ;;  %v5471_v28 = vpop.f32.mrf.mxu3 }
 0x5e3   : > { %7923 = vst.msk [vmem:[%s9623_s12 + $0x17f] sm:$0x1] %vm4793_vm12, %v4788_v42  ;;  %v11429_v21 = vadd.f32 %v5361_v52, %v5035_v61  ;;  %v5212_v45 = vpop.f32.mrf.mxu0  ;;  %v5285_v55 = vpop.f32.mrf.mxu1 }
 0x5e4   : > { %7922 = vst.msk [vmem:[%s9623_s12 + $0x177] sm:$0xff] %vm1704_vm5, %v4787_v58  ;;  %v11433_v32 = vadd.f32 %v5285_v55, %v5212_v45 }
 0x5ea   : > { %v5363_v50 = vpop.f32.mrf.mxu2  ;;  %v11437_v57 = vpop.f32.mrf.mxu3 }
 0x5eb   : > { %v11440_v56 = vadd.f32 %v5363_v50, %v5036_v31  ;;  %v5215_v22 = vpop.f32.mrf.mxu0  ;;  %v5288_v40 = vpop.f32.mrf.mxu1 }
 0x5ec   : > { %v8559_v40 = vld [vmem:[%s8828_s26 + $0x60] sm:$0xff] }
 0x5ee   : > { %8100 = vmatmul.msk.bf16.gmra.mxu0 %vm295_vm0, %v8550_v43  ;;  %8120 = vmatmul.msk.bf16.gmra.mxu1 %vm295_vm0, %v11106_v60 }
 0x5ef   : > { %8144 = vmatmul.msk.bf16.gmra.mxu2 %vm295_vm0, %v8550_v43  ;;  %8168 = vmatmul.msk.bf16.gmra.mxu3 %vm295_vm0, %v8550_v43  ;;  %v5042_v43 = vadd.f32 %v11417_v29, %v11196_v14  ;;  %v5043_v14 = vadd.f32 %v11417_v29, %v11212_v59 }
 0x5f2   : > { %v5366_v24 = vpop.f32.mrf.mxu2  ;;  %v11449_v5 = vpop.f32.mrf.mxu3 }
 0x5f3   : > { %v11451_v33 = vadd.f32 %v5366_v24, %v5037_v25  ;;  %v5216_v23 = vpop.f32.mrf.mxu0  ;;  %v5289_v9 = vpop.f32.mrf.mxu1 }
 0x5f4   : > { %v11453_v15 = vadd.f32 %v5289_v9, %v5216_v23 }
 0x5fa   : > { %v5368_v60 = vpop.f32.mrf.mxu2  ;;  %v5477_v1 = vpop.f32.mrf.mxu3 }
 0x5fb   : > { %v11458_v48 = vadd.f32 %v5368_v60, %v5038_v12  ;;  %v5219_v53 = vpop.f32.mrf.mxu0  ;;  %v5292_v34 = vpop.f32.mrf.mxu1 }
 0x5fc   : > { %v11460_v13 = vadd.f32 %v5292_v34, %v5219_v53  ;;  %v5044_v34 = vadd.f32 %v11417_v29, %v11219_v46  ;;  %v5045_v46 = vadd.f32 %v11417_v29, %v11236_v3  ;;  %v8641_v3 = vld [vmem:[%s8828_s26 + $0x10] sm:$0xff] }
 0x5fe   : > { %8101 = vmatmul.msk.bf16.gmra.mxu0 %vm295_vm0, %v8551_v62  ;;  %8121 = vmatmul.msk.bf16.gmra.mxu1 %vm295_vm0, %v11133_v16  ;;  %v8552_v16 = vld [vmem:[%s8828_s26 + $0x88] sm:$0xff] }
 0x5ff   : > { %8145 = vmatmul.msk.bf16.gmra.mxu2 %vm295_vm0, %v8551_v62  ;;  %8169 = vmatmul.msk.bf16.gmra.mxu3 %vm295_vm0, %v8551_v62 }
 0x602   : > { %v5371_v44 = vpop.f32.mrf.mxu2  ;;  %v11469_v41 = vpop.f32.mrf.mxu3 }
 0x603   : > { %v11471_v2 = vadd.f32 %v5371_v44, %v5039_v63  ;;  %v5221_v0 = vpop.f32.mrf.mxu0  ;;  %v5294_v19 = vpop.f32.mrf.mxu1 }
 0x604   : > { %v8560_v0 = vld [vmem:[%s8828_s26 + $0x68] sm:$0xff] }
 0x60a   : > { %v5373_v17 = vpop.f32.mrf.mxu2  ;;  %v11475_v38 = vpop.f32.mrf.mxu3 }
 0x60b   : > { %v11478_v61 = vadd.f32 %v5373_v17, %v5040_v49  ;;  %v5223_v42 = vpop.f32.mrf.mxu0  ;;  %v5296_v58 = vpop.f32.mrf.mxu1 }
 0x60c   : > { %v11480_v39 = vadd.f32 %v5296_v58, %v5223_v42 }
 0x60e   : > { %8102 = vmatmul.msk.bf16.gmra.mxu0 %vm295_vm0, %v8552_v16  ;;  %8122 = vmatmul.msk.bf16.gmra.mxu1 %vm295_vm0, %v11165_v11 }
 0x60f   : > { %8146 = vmatmul.msk.bf16.gmra.mxu2 %vm295_vm0, %v8552_v16  ;;  %8170 = vmatmul.msk.bf16.gmra.mxu3 %vm295_vm0, %v8552_v16  ;;  %v8640_v16 = vld [vmem:[%s8828_s26 + $0x8] sm:$0xff] }
 0x612   : > { %v5376_v52 = vpop.f32.mrf.mxu2  ;;  %v5484_v28 = vpop.f32.mrf.mxu3 }
 0x613   : > { %v11489_v45 = vadd.f32 %v5376_v52, %v5041_v54  ;;  %v5225_v55 = vpop.f32.mrf.mxu0  ;;  %v5298_v31 = vpop.f32.mrf.mxu1 }
 0x614   : > { %v11491_v50 = vadd.f32 %v5298_v31, %v5225_v55  ;;  %v5046_v55 = vadd.f32 %v11417_v29, %v11246_v30  ;;  %v5047_v30 = vadd.f32 %v11417_v29, %v11259_v36  ;;  %v8642_v36 = vld [vmem:[%s8828_s26 + $0x18] sm:$0xff] }
 0x61a   : > { %v5378_v11 = vpop.f32.mrf.mxu2  ;;  %v11495_v22 = vpop.f32.mrf.mxu3 }
 0x61b   : > { %v11498_v25 = vadd.f32 %v5378_v11, %v5042_v43  ;;  %v5228_v24 = vpop.f32.mrf.mxu0  ;;  %v5301_v23 = vpop.f32.mrf.mxu1  ;;  %v8561_v11 = vld [vmem:[%s8828_s26 + $0x70] sm:$0xff] }
 0x61e   : > { %8179 = vmatmul.msk.bf16.vlgmr.msra.gmra.mxu0 %vm295_vm0, %v8639_v27  ;;  %8277 = vmatmul.msk.bf16.vlgmr.msra.gmra.mxu1 %vm295_vm0, %v8559_v40 }
 0x61f   : > { %8301 = vmatmul.msk.bf16.vlgmr.msra.gmra.mxu2 %vm295_vm0, %v8559_v40  ;;  %8325 = vmatmul.msk.bf16.vlgmr.msra.gmra.mxu3 %vm295_vm0, %v8559_v40 }
 0x622   : > { %v5381_v9 = vpop.f32.mrf.mxu2  ;;  %v11507_v12 = vpop.f32.mrf.mxu3 }
 0x623   : > { %v11509_v60 = vadd.f32 %v5381_v9, %v5043_v14  ;;  %v5229_v1 = vpop.f32.mrf.mxu0  ;;  %v5302_v62 = vpop.f32.mrf.mxu1 }
 0x624   : > { %v11511_v53 = vadd.f32 %v5302_v62, %v5229_v1 }
 0x62a   : > { %v5383_v63 = vpop.f32.mrf.mxu2  ;;  %v5490_v44 = vpop.f32.mrf.mxu3 }
 0x62b   : > { %v11516_v19 = vadd.f32 %v5383_v63, %v5044_v34  ;;  %v5232_v49 = vpop.f32.mrf.mxu0  ;;  %v5305_v17 = vpop.f32.mrf.mxu1  ;;  %v5048_v44 = vadd.f32 %v11417_v29, %v11270_v47  ;;  %v5049_v47 = vadd.f32 %v11417_v29, %v11286_v4 }
 0x62c   : > { %v11518_v59 = vadd.f32 %v5305_v17, %v5232_v49  ;;  %v8562_v17 = vld [vmem:[%s8828_s26 + $0x78] sm:$0xff] }
 0x62e   : > { %8180 = vmatmul.msk.bf16.gmra.mxu0 %vm295_vm0, %v8640_v16  ;;  %8278 = vmatmul.msk.bf16.gmra.mxu1 %vm295_vm0, %v8560_v0 }
 0x62f   : > { %8302 = vmatmul.msk.bf16.gmra.mxu2 %vm295_vm0, %v8560_v0  ;;  %8326 = vmatmul.msk.bf16.gmra.mxu3 %vm295_vm0, %v8560_v0 }
 0x632   : > { %v5386_v42 = vpop.f32.mrf.mxu2  ;;  %v11527_v58 = vpop.f32.mrf.mxu3 }
 0x633   : > { %v11529_v54 = vadd.f32 %v5386_v42, %v5045_v46  ;;  %v5234_v52 = vpop.f32.mrf.mxu0  ;;  %v5307_v28 = vpop.f32.mrf.mxu1 }
 0x63a   : > { %v5388_v31 = vpop.f32.mrf.mxu2  ;;  %v11533_v43 = vpop.f32.mrf.mxu3 }
 0x63b   : > { %v11536_v40 = vadd.f32 %v5388_v31, %v5046_v55  ;;  %v5236_v24 = vpop.f32.mrf.mxu0  ;;  %v5309_v23 = vpop.f32.mrf.mxu1 }
 0x63c   : > { %v11538_v27 = vadd.f32 %v5309_v23, %v5236_v24  ;;  %v5050_v23 = vadd.f32 %v11417_v29, %v11293_v7  ;;  %v5051_v7 = vadd.f32 %v11417_v29, %v11310_v35  ;;  %v8644_v35 = vld [vmem:[%s8828_s26 + $0x28] sm:$0xff] }
 0x63e   : > { %8181 = vmatmul.msk.bf16.gmra.mxu0 %vm295_vm0, %v8641_v3  ;;  %8279 = vmatmul.msk.bf16.gmra.mxu1 %vm295_vm0, %v8561_v11 }
 0x63f   : > { %8303 = vmatmul.msk.bf16.gmra.mxu2 %vm295_vm0, %v8561_v11  ;;  %8327 = vmatmul.msk.bf16.gmra.mxu3 %vm295_vm0, %v8561_v11 }
 0x642   : > { %v5391_v14 = vpop.f32.mrf.mxu2  ;;  %v5497_v9 = vpop.f32.mrf.mxu3 }
 0x643   : > { %v11547_v1 = vadd.f32 %v5391_v14, %v5047_v30  ;;  %v5238_v62 = vpop.f32.mrf.mxu0  ;;  %v5311_v34 = vpop.f32.mrf.mxu1  ;;  %v8563_v14 = vld [vmem:[%s8828_s26 + $0x80] sm:$0xff] }
 0x644   : > { %v11549_v63 = vadd.f32 %v5311_v34, %v5238_v62 }
 0x64a   : > { %v5393_v0 = vpop.f32.mrf.mxu2  ;;  %v11553_v49 = vpop.f32.mrf.mxu3 }
 0x64b   : > { %v11556_v16 = vadd.f32 %v5393_v0, %v5048_v44  ;;  %v5241_v46 = vpop.f32.mrf.mxu0  ;;  %v5314_v42 = vpop.f32.mrf.mxu1  ;;  %v8643_v44 = vld [vmem:[%s8828_s26 + $0x20] sm:$0xff] }
 0x64e   : > { %8182 = vmatmul.msk.bf16.gmra.mxu0 %vm295_vm0, %v8642_v36  ;;  %8280 = vmatmul.msk.bf16.gmra.mxu1 %vm295_vm0, %v8562_v17 }
 0x64f   : > { %8304 = vmatmul.msk.bf16.gmra.mxu2 %vm295_vm0, %v8562_v17  ;;  %8328 = vmatmul.msk.bf16.gmra.mxu3 %vm295_vm0, %v8562_v17 }
 0x652   : > { %v5396_v52 = vpop.f32.mrf.mxu2  ;;  %v11565_v28 = vpop.f32.mrf.mxu3 }
 0x653   : > { %v11567_v55 = vadd.f32 %v5396_v52, %v5049_v47  ;;  %v5242_v31 = vpop.f32.mrf.mxu0  ;;  %v5315_v11 = vpop.f32.mrf.mxu1  ;;  %v5052_v47 = vadd.f32 %v11417_v29, %v11323_v37  ;;  %v5053_v37 = vadd.f32 %v11417_v29, %v11345_v10  ;;  %v8645_v10 = vld [vmem:[%s8828_s26 + $0x30] sm:$0xff] }
 0x654   : > { %v11569_v24 = vadd.f32 %v5315_v11, %v5242_v31  ;;  %v8564_v11 = vld [vmem:[%s8828_s26 + $0x88] sm:$0xff] }
 0x65a   : > { %v5398_v3 = vpop.f32.mrf.mxu2  ;;  %v5503_v30 = vpop.f32.mrf.mxu3 }
 0x65b   : > { %v11574_v9 = vadd.f32 %v5398_v3, %v5050_v23  ;;  %v5245_v62 = vpop.f32.mrf.mxu0  ;;  %v5318_v34 = vpop.f32.mrf.mxu1 }
 0x65c   : > { %v11576_v4 = vadd.f32 %v5318_v34, %v5245_v62 }
 0x65e   : > { %8183 = vmatmul.msk.bf16.gmra.mxu0 %vm295_vm0, %v8643_v44  ;;  %8281 = vmatmul.msk.bf16.gmra.mxu1 %vm295_vm0, %v8563_v14 }
 0x65f   : > { %8305 = vmatmul.msk.bf16.gmra.mxu2 %vm295_vm0, %v8563_v14  ;;  %8329 = vmatmul.msk.bf16.gmra.mxu3 %vm295_vm0, %v8563_v14 }
 0x662   : > { %v5401_v0 = vpop.f32.mrf.mxu2  ;;  %v11585_v17 = vpop.f32.mrf.mxu3 }
 0x663   : > { %v11587_v46 = vadd.f32 %v5401_v0, %v5051_v7  ;;  %v5247_v42 = vpop.f32.mrf.mxu0  ;;  %v5320_v36 = vpop.f32.mrf.mxu1 }
 0x664   : > { %v5054_v36 = vadd.f32 %v11417_v29, %v11356_v18  ;;  %v5055_v18 = vadd.f32 %v11417_v29, %v11372_v8 }
 0x66a   : > { %v5403_v52 = vpop.f32.mrf.mxu2  ;;  %v11591_v31 = vpop.f32.mrf.mxu3 }
 0x66b   : > { %v11594_v23 = vadd.f32 %v5403_v52, %v5052_v47  ;;  %v5249_v3 = vpop.f32.mrf.mxu0  ;;  %v5322_v30 = vpop.f32.mrf.mxu1 }
 0x66c   : > { %v11596_v14 = vadd.f32 %v5322_v30, %v5249_v3  ;;  %v8565_v3 = vld [vmem:[%s8828_s26 + $0x90] sm:$0xff] }
 0x66e   : > { %8184 = vmatmul.msk.bf16.gmra.mxu0 %vm295_vm0, %v8644_v35  ;;  %8282 = vmatmul.msk.bf16.gmra.mxu1 %vm295_vm0, %v8564_v11 }
 0x66f   : > { %8306 = vmatmul.msk.bf16.gmra.mxu2 %vm295_vm0, %v8564_v11  ;;  %8330 = vmatmul.msk.bf16.gmra.mxu3 %vm295_vm0, %v8564_v11 }
 0x672   : > { %v5406_v62 = vpop.f32.mrf.mxu2  ;;  %v5510_v34 = vpop.f32.mrf.mxu3 }
 0x673   : > { %v11605_v44 = vadd.f32 %v5406_v62, %v5053_v37  ;;  %v5251_v7 = vpop.f32.mrf.mxu0  ;;  %v5324_v0 = vpop.f32.mrf.mxu1 }
 0x674   : > { %v11607_v42 = vadd.f32 %v5324_v0, %v5251_v7 }
 0x676   : > { %12328 = vst [vmem:[#allocation47_spill] sm:$0xff] %v11607_v42 }
 0x67a   : > { %v5408_v47 = vpop.f32.mrf.mxu2  ;;  %v11611_v52 = vpop.f32.mrf.mxu3 }
 0x67b   : > { %12329 = vst [vmem:[#allocation9_spill] sm:$0xff] %v11611_v52  ;;  %v11614_v30 = vadd.f32 %v5408_v47, %v5054_v36  ;;  %v5254_v11 = vpop.f32.mrf.mxu0  ;;  %v5327_v35 = vpop.f32.mrf.mxu1  ;;  %v5056_v47 = vadd.f32 %v11417_v29, %v11379_v20  ;;  %v5057_v20 = vadd.f32 %v11417_v29, %v11396_v6  ;;  %v8647_v6 = vld [vmem:[%s8828_s26 + $0x40] sm:$0xff] }
 0x67e   : > { %8185 = vmatmul.msk.bf16.gmra.mxu0 %vm295_vm0, %v8645_v10  ;;  %8283 = vmatmul.msk.bf16.gmra.mxu1 %vm295_vm0, %v8565_v3  ;;  %v8566_v10 = vld [vmem:[%s8828_s26 + $0x98] sm:$0xff] }
 0x67f   : > { %8307 = vmatmul.msk.bf16.gmra.mxu2 %vm295_vm0, %v8565_v3  ;;  %8331 = vmatmul.msk.bf16.gmra.mxu3 %vm295_vm0, %v8565_v3 }
 0x682   : > { %v5411_v37 = vpop.f32.mrf.mxu2  ;;  %v11623_v62 = vpop.f32.mrf.mxu3 }
 0x683   : > { %12330 = vst [vmem:[#allocation3_spill] sm:$0xff] %v11623_v62  ;;  %v11625_v34 = vadd.f32 %v5411_v37, %v5055_v18  ;;  %v5255_v7 = vpop.f32.mrf.mxu0  ;;  %v5328_v0 = vpop.f32.mrf.mxu1  ;;  %v8646_v62 = vld [vmem:[%s8828_s26 + $0x38] sm:$0xff] }
 0x684   : > { %v11627_v36 = vadd.f32 %v5328_v0, %v5255_v7 }
 0x686   : > { %12331 = vst [vmem:[#allocation7_spill] sm:$0xff] %v11627_v36 }
 0x68a   : > { %v5413_v11 = vpop.f32.mrf.mxu2  ;;  %v5516_v35 = vpop.f32.mrf.mxu3 }
 0x68b   : > { %v11632_v3 = vadd.f32 %v5413_v11, %v5056_v47  ;;  %v5258_v42 = vpop.f32.mrf.mxu0  ;;  %v5331_v52 = vpop.f32.mrf.mxu1  ;;  %v8567_v11 = vld [vmem:[%s8828_s26 + $0xa0] sm:$0xff] }
 0x68c   : > { %v11634_v8 = vadd.f32 %v5331_v52, %v5258_v42 }
 0x68e   : > { %12332 = vst [vmem:[#allocation35_spill] sm:$0xff] %v11634_v8  ;;  %8186 = vmatmul.msk.bf16.gmra.mxu0 %vm295_vm0, %v8646_v62  ;;  %8284 = vmatmul.msk.bf16.gmra.mxu1 %vm295_vm0, %v8566_v10  ;;  %v5058_v62 = vadd.f32 %v11417_v29, %v11406_v26 }
 0x68f   : > { %8308 = vmatmul.msk.bf16.gmra.mxu2 %vm295_vm0, %v8566_v10  ;;  %8332 = vmatmul.msk.bf16.gmra.mxu3 %vm295_vm0, %v8566_v10 }
 0x692   : > { %v5416_v18 = vpop.f32.mrf.mxu2  ;;  %v11643_v37 = vpop.f32.mrf.mxu3 }
 0x693   : > { %12333 = vst [vmem:[#allocation32_spill] sm:$0xff] %v11643_v37  ;;  %v11645_v7 = vadd.f32 %v5416_v18, %v5057_v20  ;;  %v5260_v42 = vpop.f32.mrf.mxu0  ;;  %v5333_v52 = vpop.f32.mrf.mxu1 }
 0x695   : > { %12334 = vst [vmem:[#allocation33_spill] sm:$0xff] %v11645_v7  ;;  %v8648_v7 = vld [vmem:[%s8828_s26 + $0x48] sm:$0xff] }
 0x69a   : > { %v5418_v0 = vpop.f32.mrf.mxu2  ;;  %v11649_v47 = vpop.f32.mrf.mxu3 }
 0x69b   : > { %12335 = vst [vmem:[#allocation12_spill] sm:$0xff] %v11649_v47  ;;  %v11652_v35 = vadd.f32 %v5418_v0, %v5058_v62  ;;  %v5544_v10 = vpop.f32.mrf.mxu0  ;;  %v5746_v8 = vpop.f32.mrf.mxu1  ;;  %v8568_v0 = vld [vmem:[%s8828_s26 + $0xa8] sm:$0xff] }
 0x69c   : > { %v5798_v36 = vadd.f32 %v5746_v8, %v11412_v51 }
 0x69d   : > { %12336 = vst [vmem:[#allocation27_spill] sm:$0xff] %v11652_v35 }
 0x69e   : > { %8187 = vmatmul.msk.bf16.gmra.mxu0 %vm295_vm0, %v8647_v6  ;;  %8285 = vmatmul.msk.bf16.gmra.mxu1 %vm295_vm0, %v8567_v11 }
 0x69f   : > { %8309 = vmatmul.msk.bf16.gmra.mxu2 %vm295_vm0, %v8567_v11  ;;  %8333 = vmatmul.msk.bf16.gmra.mxu3 %vm295_vm0, %v8567_v11 }
 0x6a2   : > { %v5840_v26 = vpop.f32.mrf.mxu2  ;;  %v5950_v29 = vpop.f32.mrf.mxu3 }
 0x6a3   : > { %v5545_v20 = vpop.f32.mrf.mxu0  ;;  %v5748_v18 = vpop.f32.mrf.mxu1  ;;  %v5900_v42 = vadd.f32 %v5840_v26, %v11429_v21 }
 0x6a4   : > { %v5546_v11 = vadd.f32 %v5545_v20, %v11437_v57 }
 0x6a5   : > { %v6042_v35 = vrot.slane %v5900_v42, 4 }
 0x6aa   : > { %v5842_v52 = vpop.f32.mrf.mxu2  ;;  %v5951_v62 = vpop.f32.mrf.mxu3 }
 0x6ab   : > { %v5901_v10 = vadd.f32 %v5842_v52, %v11440_v56  ;;  %v5548_v47 = vpop.f32.mrf.mxu0  ;;  %v5751_v6 = vpop.f32.mrf.mxu1  ;;  %v6002_v56 = vadd.f32 %v5951_v62, %v5546_v11 }
 0x6ad   : > { %v6043_v37 = vrot.slane %v5901_v10, 4 }
 0x6ae   : > { %8188 = vmatmul.msk.bf16.gmra.mxu0 %vm295_vm0, %v8648_v7  ;;  %8286 = vmatmul.msk.bf16.gmra.mxu1 %vm295_vm0, %v8568_v0 }
 0x6af   : > { %v6044_v21 = vsel %vm3132_vm6, %v6042_v35, %v6043_v37  ;;  %8310 = vmatmul.msk.bf16.gmra.mxu2 %vm295_vm0, %v8568_v0  ;;  %8334 = vmatmul.msk.bf16.gmra.mxu3 %vm295_vm0, %v8568_v0  ;;  %v5799_v35 = vadd.f32 %v5748_v18, %v11433_v32  ;;  %v5549_v0 = vadd.f32 %v5548_v47, %v11449_v5 }
 0x6b0   : > { %v6098_v26 = vadd.f32 %v6044_v21, %v5798_v36 }
 0x6b2   : > { %v6114_v29 = vadd.f32 %v6098_v26, %v6002_v56  ;;  %v5845_v42 = vpop.f32.mrf.mxu2  ;;  %v5954_v51 = vpop.f32.mrf.mxu3 }
 0x6b3   : > { %v5902_v57 = vadd.f32 %v5845_v42, %v11451_v33  ;;  %v5550_v8 = vpop.f32.mrf.mxu0  ;;  %v5752_v20 = vpop.f32.mrf.mxu1  ;;  %v6003_v62 = vadd.f32 %v5954_v51, %v5549_v0  ;;  %v8569_v33 = vld [vmem:[%s8828_s26 + $0xb0] sm:$0xff] }
 0x6b4   : > { %v6130_v7 = vmax.f32 %v6114_v29, 0.0  ;;  %v8649_v29 = vld [vmem:[%s8828_s26 + $0x50] sm:$0xff] }
 0x6b5   : > { %v6045_v52 = vrot.slane %v5902_v57, 4 }
 0x6b6   : > { %8337 = vst.msk [vmem:[%s9623_s12 + $0x180] sm:$0xff] %vm1704_vm5, %v6130_v7  ;;  %v5800_v7 = vadd.f32 %v5752_v20, %v11453_v15 }
 0x6b7   : > { %v6046_v36 = vsel %vm3132_vm6, %v6043_v37, %v6045_v52 }
 0x6b8   : > { %v6099_v10 = vadd.f32 %v6046_v36, %v5799_v35 }
 0x6ba   : > { %v6115_v6 = vadd.f32 %v6099_v10, %v6003_v62  ;;  %v5847_v11 = vpop.f32.mrf.mxu2  ;;  %v5956_v21 = vpop.f32.mrf.mxu3 }
 0x6bb   : > { %v5552_v56 = vpop.f32.mrf.mxu0  ;;  %v5755_v26 = vpop.f32.mrf.mxu1  ;;  %v5903_v32 = vadd.f32 %v5847_v11, %v11458_v48 }
 0x6bc   : > { %v6131_v42 = vmax.f32 %v6115_v6, 0.0  ;;  %v5553_v52 = vadd.f32 %v5552_v56, %v11469_v41  ;;  %v8570_v6 = vld [vmem:[%s8828_s26 + $0xb8] sm:$0xff] }
 0x6bd   : > { %v6047_v57 = vrot.slane %v5903_v32, 4  ;;  %v8650_v41 = vld [vmem:[%s8828_s26 + $0x58] sm:$0xff]  ;;  %s8577_s26 = sshll.u32 (%p8773_p5), %s8689_s14, 4 }
 0x6be   : > { %8338 = vst.msk [vmem:[%s9623_s12 + $0x188] sm:$0xff] %vm1704_vm5, %v6131_v42  ;;  %8189 = vmatmul.msk.bf16.gmra.mxu0 %vm295_vm0, %v8649_v29  ;;  %8287 = vmatmul.msk.bf16.gmra.mxu1 %vm295_vm0, %v8569_v33  ;;  %v5801_v29 = vadd.f32 %v5755_v26, %v11460_v13  ;;  %s6173_s11 = sadd.s32 (%p8773_p5), %s8577_s26, %s8356_s10 }
 0x6bf   : > { %8311 = vmatmul.msk.bf16.gmra.mxu2 %vm295_vm0, %v8569_v33  ;;  %8335 = vmatmul.msk.bf16.gmra.mxu3 %vm295_vm0, %v8569_v33  ;;  %s8357_s21 = sshll.u32 (%p8773_p5), %s6173_s11, 3 }
 0x6c0   : > { %s11790_s24 = scalar_lea.vmem (%p8773_p5), %s11942_s3, %s8357_s21 }
 0x6c2   : > { %v5850_v5 = vpop.f32.mrf.mxu2  ;;  %v5958_v37 = vpop.f32.mrf.mxu3 }
 0x6c3   : > { %v5904_v47 = vadd.f32 %v5850_v5, %v11471_v2  ;;  %v5554_v18 = vpop.f32.mrf.mxu0  ;;  %v5757_v51 = vpop.f32.mrf.mxu1  ;;  %v6004_v0 = vadd.f32 %v5958_v37, %v5553_v52 }
 0x6c4   : > { %v5555_v15 = vadd.f32 %v5554_v18, %v11475_v38 }
 0x6c5   : > { %v6048_v8 = vrot.slane %v5904_v47, 4 }
 0x6c7   : > { %v6049_v35 = vsel %vm3132_vm6, %v6047_v57, %v6048_v8 }
 0x6c8   : > { %v6100_v36 = vadd.f32 %v6049_v35, %v5800_v7 }
 0x6ca   : > { %v6116_v48 = vadd.f32 %v6100_v36, %v6004_v0  ;;  %v5852_v62 = vpop.f32.mrf.mxu2  ;;  %v5960_v10 = vpop.f32.mrf.mxu3 }
 0x6cb   : > { %v5905_v2 = vadd.f32 %v5852_v62, %v11478_v61  ;;  %v5557_v11 = vpop.f32.mrf.mxu0  ;;  %v5759_v21 = vpop.f32.mrf.mxu1  ;;  %v6005_v61 = vadd.f32 %v5960_v10, %v5555_v15 }
 0x6cc   : > { %v6132_v33 = vmax.f32 %v6116_v48, 0.0  ;;  %v5802_v0 = vadd.f32 %v5759_v21, %v11480_v39 }
 0x6cd   : > { %v6050_v42 = vrot.slane %v5905_v2, 4 }
 0x6ce   : > { %8339 = vst.msk [vmem:[%s9623_s12 + $0x190] sm:$0xff] %vm1704_vm5, %v6132_v33  ;;  %8190 = vmatmul.msk.bf16.gmra.mxu0 %vm295_vm0, %v8650_v41  ;;  %8288 = vmatmul.msk.bf16.gmra.mxu1 %vm295_vm0, %v8570_v6 }
 0x6cf   : > { %v6051_v20 = vsel %vm3132_vm6, %v6048_v8, %v6050_v42  ;;  %8312 = vmatmul.msk.bf16.gmra.mxu2 %vm295_vm0, %v8570_v6  ;;  %8336 = vmatmul.msk.bf16.gmra.mxu3 %vm295_vm0, %v8570_v6 }
 0x6d0   : > { %v6101_v56 = vadd.f32 %v6051_v20, %v5801_v29 }
 0x6d2   : > { %v6117_v32 = vadd.f32 %v6101_v56, %v6005_v61  ;;  %v5855_v13 = vpop.f32.mrf.mxu2  ;;  %v5963_v26 = vpop.f32.mrf.mxu3 }
 0x6d3   : > { %v5558_v5 = vpop.f32.mrf.mxu0  ;;  %v5761_v37 = vpop.f32.mrf.mxu1  ;;  %v5906_v38 = vadd.f32 %v5855_v13, %v11489_v45 }
 0x6d4   : > { %v6133_v47 = vmax.f32 %v6117_v32, 0.0  ;;  %v5559_v36 = vadd.f32 %v5558_v5, %v11495_v22  ;;  %v5803_v15 = vadd.f32 %v5761_v37, %v11491_v50 }
 0x6d5   : > { %v6052_v52 = vrot.slane %v5906_v38, 4 }
 0x6d6   : > { %8340 = vst.msk [vmem:[%s9623_s12 + $0x198] sm:$0xff] %vm1704_vm5, %v6133_v47 }
 0x6da   : > { %v5857_v18 = vpop.f32.mrf.mxu2  ;;  %v5964_v51 = vpop.f32.mrf.mxu3 }
 0x6db   : > { %v5907_v57 = vadd.f32 %v5857_v18, %v11498_v25  ;;  %v5561_v8 = vpop.f32.mrf.mxu0  ;;  %v5764_v7 = vpop.f32.mrf.mxu1  ;;  %v6006_v62 = vadd.f32 %v5964_v51, %v5559_v36 }
 0x6dc   : > { %v5562_v39 = vadd.f32 %v5561_v8, %v11507_v12 }
 0x6dd   : > { %v6053_v35 = vrot.slane %v5907_v57, 4 }
 0x6df   : > { %v6054_v48 = vsel %vm3132_vm6, %v6052_v52, %v6053_v35 }
 0x6e0   : > { %v6102_v10 = vadd.f32 %v6054_v48, %v5802_v0 }
 0x6e2   : > { %v6118_v6 = vadd.f32 %v6102_v10, %v6006_v62  ;;  %v5860_v2 = vpop.f32.mrf.mxu2  ;;  %v5967_v45 = vpop.f32.mrf.mxu3 }
 0x6e3   : > { %v5908_v11 = vadd.f32 %v5860_v2, %v11509_v60  ;;  %v5563_v33 = vpop.f32.mrf.mxu0  ;;  %v5765_v25 = vpop.f32.mrf.mxu1  ;;  %v6007_v21 = vadd.f32 %v5967_v45, %v5562_v39 }
 0x6e4   : > { %v6134_v42 = vmax.f32 %v6118_v6, 0.0  ;;  %v5804_v51 = vadd.f32 %v5765_v25, %v11511_v53 }
 0x6e5   : > { %v6055_v29 = vrot.slane %v5908_v11, 4 }
 0x6e6   : > { %8341 = vst.msk [vmem:[%s9623_s12 + $0x1a0] sm:$0xff] %vm1704_vm5, %v6134_v42 }
 0x6e7   : > { %v6056_v22 = vsel %vm3132_vm6, %v6053_v35, %v6055_v29 }
 0x6e8   : > { %v6103_v41 = vadd.f32 %v6056_v22, %v5803_v15 }
 0x6ea   : > { %v6119_v20 = vadd.f32 %v6103_v41, %v6007_v21  ;;  %v5862_v61 = vpop.f32.mrf.mxu2  ;;  %v5969_v56 = vpop.f32.mrf.mxu3 }
 0x6eb   : > { %v5565_v32 = vpop.f32.mrf.mxu0  ;;  %v5768_v60 = vpop.f32.mrf.mxu1  ;;  %v5909_v26 = vadd.f32 %v5862_v61, %v11516_v19 }
 0x6ec   : > { %v6135_v13 = vmax.f32 %v6119_v20, 0.0  ;;  %v5566_v57 = vadd.f32 %v5565_v32, %v11527_v58  ;;  %v5805_v6 = vadd.f32 %v5768_v60, %v11518_v59 }
 0x6ed   : > { %v6057_v38 = vrot.slane %v5909_v26, 4 }
 0x6ee   : > { %8342 = vst.msk [vmem:[%s9623_s12 + $0x1a8] sm:$0xff] %vm1704_vm5, %v6135_v13 }
 0x6f2   : > { %v5865_v5 = vpop.f32.mrf.mxu2  ;;  %v5971_v50 = vpop.f32.mrf.mxu3 }
 0x6f3   : > { %v5910_v37 = vadd.f32 %v5865_v5, %v11529_v54  ;;  %v5567_v47 = vpop.f32.mrf.mxu0  ;;  %v5770_v12 = vpop.f32.mrf.mxu1  ;;  %v6008_v7 = vadd.f32 %v5971_v50, %v5566_v57 }
 0x6f4   : > { %v5568_v53 = vadd.f32 %v5567_v47, %v11533_v43 }
 0x6f5   : > { %v6058_v18 = vrot.slane %v5910_v37, 4 }
 0x6f7   : > { %v6059_v8 = vsel %vm3132_vm6, %v6057_v38, %v6058_v18 }
 0x6f8   : > { %v6104_v52 = vadd.f32 %v6059_v8, %v5804_v51 }
 0x6fa   : > { %v6120_v35 = vadd.f32 %v6104_v52, %v6008_v7  ;;  %v5867_v0 = vpop.f32.mrf.mxu2  ;;  %v5973_v19 = vpop.f32.mrf.mxu3 }
 0x6fb   : > { %v5911_v36 = vadd.f32 %v5867_v0, %v11536_v40  ;;  %v5570_v48 = vpop.f32.mrf.mxu0  ;;  %v5772_v54 = vpop.f32.mrf.mxu1  ;;  %v6009_v2 = vadd.f32 %v5973_v19, %v5568_v53 }
 0x6fc   : > { %v6136_v62 = vmax.f32 %v6120_v35, 0.0  ;;  %v5806_v61 = vadd.f32 %v5772_v54, %v11538_v27 }
 0x6fd   : > { %v6060_v10 = vrot.slane %v5911_v36, 4 }
 0x6fe   : > { %8343 = vst.msk [vmem:[%s9623_s12 + $0x1b0] sm:$0xff] %vm1704_vm5, %v6136_v62 }
 0x6ff   : > { %v6061_v58 = vsel %vm3132_vm6, %v6058_v18, %v6060_v10 }
 0x700   : > { %v6105_v45 = vadd.f32 %v6061_v58, %v5805_v6 }
 0x702   : > { %v6121_v11 = vadd.f32 %v6105_v45, %v6009_v2  ;;  %v5870_v33 = vpop.f32.mrf.mxu2  ;;  %v5976_v25 = vpop.f32.mrf.mxu3 }
 0x703   : > { %v5571_v42 = vpop.f32.mrf.mxu0  ;;  %v5774_v40 = vpop.f32.mrf.mxu1  ;;  %v5912_v15 = vadd.f32 %v5870_v33, %v11547_v1 }
 0x704   : > { %v6137_v29 = vmax.f32 %v6121_v11, 0.0  ;;  %v5572_v56 = vadd.f32 %v5571_v42, %v11553_v49  ;;  %v5807_v38 = vadd.f32 %v5774_v40, %v11549_v63 }
 0x705   : > { %v6062_v41 = vrot.slane %v5912_v15, 4 }
 0x706   : > { %8344 = vst.msk [vmem:[%s9623_s12 + $0x1b8] sm:$0xff] %vm1704_vm5, %v6137_v29 }
 0x70a   : > { %v5872_v39 = vpop.f32.mrf.mxu2  ;;  %v5977_v59 = vpop.f32.mrf.mxu3 }
 0x70b   : > { %v5913_v22 = vadd.f32 %v5872_v39, %v11556_v16  ;;  %v5574_v21 = vpop.f32.mrf.mxu0  ;;  %v5777_v43 = vpop.f32.mrf.mxu1  ;;  %v6010_v60 = vadd.f32 %v5977_v59, %v5572_v56 }
 0x70c   : > { %v5575_v27 = vadd.f32 %v5574_v21, %v11565_v28 }
 0x70d   : > { %v6063_v20 = vrot.slane %v5913_v22, 4 }
 0x70f   : > { %v6064_v32 = vsel %vm3132_vm6, %v6062_v41, %v6063_v20 }
 0x710   : > { %v6106_v13 = vadd.f32 %v6064_v32, %v5806_v61 }
 0x712   : > { %v6122_v26 = vadd.f32 %v6106_v13, %v6010_v60  ;;  %v5875_v5 = vpop.f32.mrf.mxu2  ;;  %v5980_v1 = vpop.f32.mrf.mxu3 }
 0x713   : > { %v5914_v50 = vadd.f32 %v5875_v5, %v11567_v55  ;;  %v5576_v37 = vpop.f32.mrf.mxu0  ;;  %v5778_v16 = vpop.f32.mrf.mxu1  ;;  %v6011_v18 = vadd.f32 %v5980_v1, %v5575_v27  ;;  %v12337_v5 = vld [vmem:[#allocation9_spill] sm:$0xff] }
 0x714   : > { %v6138_v47 = vmax.f32 %v6122_v26, 0.0  ;;  %v5808_v10 = vadd.f32 %v5778_v16, %v11569_v24 }
 0x715   : > { %v6065_v12 = vrot.slane %v5914_v50, 4 }
 0x716   : > { %8345 = vst.msk [vmem:[%s9623_s12 + $0x1c0] sm:$0xff] %vm1704_vm5, %v6138_v47 }
 0x717   : > { %v6066_v49 = vsel %vm3132_vm6, %v6063_v20, %v6065_v12 }
 0x718   : > { %v6107_v51 = vadd.f32 %v6066_v49, %v5807_v38 }
 0x71a   : > { %v6123_v57 = vadd.f32 %v6107_v51, %v6011_v18  ;;  %v5877_v8 = vpop.f32.mrf.mxu2  ;;  %v5982_v7 = vpop.f32.mrf.mxu3  ;;  %v12338_v51 = vld [vmem:[#allocation47_spill] sm:$0xff] }
 0x71b   : > { %v5578_v52 = vpop.f32.mrf.mxu0  ;;  %v5781_v55 = vpop.f32.mrf.mxu1  ;;  %v5915_v0 = vadd.f32 %v5877_v8, %v11574_v9 }
 0x71c   : > { %v6139_v35 = vmax.f32 %v6123_v57, 0.0  ;;  %v5579_v6 = vadd.f32 %v5578_v52, %v11585_v17  ;;  %v5809_v29 = vadd.f32 %v5781_v55, %v11576_v4 }
 0x71d   : > { %v6067_v54 = vrot.slane %v5915_v0, 4 }
 0x71e   : > { %8346 = vst.msk [vmem:[%s9623_s12 + $0x1c8] sm:$0xff] %vm1704_vm5, %v6139_v35 }
 0x722   : > { %v5880_v19 = vpop.f32.mrf.mxu2  ;;  %v5984_v63 = vpop.f32.mrf.mxu3 }
 0x723   : > { %v5916_v36 = vadd.f32 %v5880_v19, %v11587_v46  ;;  %v5580_v48 = vpop.f32.mrf.mxu0  ;;  %v5783_v28 = vpop.f32.mrf.mxu1  ;;  %v6012_v58 = vadd.f32 %v5984_v63, %v5579_v6 }
 0x724   : > { %v5581_v24 = vadd.f32 %v5580_v48, %v11591_v31 }
 0x725   : > { %v6068_v62 = vrot.slane %v5916_v36, 4 }
 0x727   : > { %v6069_v53 = vsel %vm3132_vm6, %v6067_v54, %v6068_v62  ;;  %v12340_v54 = vld [vmem:[#allocation33_spill] sm:$0xff] }
 0x728   : > { %v6108_v2 = vadd.f32 %v6069_v53, %v5808_v10 }
 0x72a   : > { %v6124_v45 = vadd.f32 %v6108_v2, %v6012_v58  ;;  %v5882_v11 = vpop.f32.mrf.mxu2  ;;  %v5986_v9 = vpop.f32.mrf.mxu3  ;;  %v12341_v2 = vld [vmem:[#allocation7_spill] sm:$0xff] }
 0x72b   : > { %v5917_v33 = vadd.f32 %v5882_v11, %v11594_v23  ;;  %v5583_v25 = vpop.f32.mrf.mxu0  ;;  %v5785_v46 = vpop.f32.mrf.mxu1  ;;  %v6013_v15 = vadd.f32 %v5986_v9, %v5581_v24  ;;  %v12342_v11 = vld [vmem:[#allocation32_spill] sm:$0xff] }
 0x72c   : > { %v6140_v42 = vmax.f32 %v6124_v45, 0.0  ;;  %v5810_v26 = vadd.f32 %v5785_v46, %v11596_v14  ;;  %v12339_v14 = vld [vmem:[#allocation3_spill] sm:$0xff] }
 0x72d   : > { %v6070_v40 = vrot.slane %v5917_v33, 4 }
 0x72e   : > { %8347 = vst.msk [vmem:[%s9623_s12 + $0x1d0] sm:$0xff] %vm1704_vm5, %v6140_v42 }
 0x72f   : > { %v6071_v17 = vsel %vm3132_vm6, %v6068_v62, %v6070_v40 }
 0x730   : > { %v6109_v39 = vadd.f32 %v6071_v17, %v5809_v29  ;;  %v12343_v29 = vld [vmem:[#allocation27_spill] sm:$0xff] }
 0x732   : > { %v6125_v59 = vadd.f32 %v6109_v39, %v6013_v15  ;;  %v5885_v22 = vpop.f32.mrf.mxu2  ;;  %v5989_v21 = vpop.f32.mrf.mxu3 }
 0x733   : > { %v5584_v43 = vpop.f32.mrf.mxu0  ;;  %v5787_v23 = vpop.f32.mrf.mxu1  ;;  %v5918_v20 = vadd.f32 %v5885_v22, %v11605_v44  ;;  %v12345_v21 = vld [vmem:[#allocation12_spill] sm:$0xff] }
 0x734   : > { %v6141_v41 = vmax.f32 %v6125_v59, 0.0  ;;  %v5585_v1 = vadd.f32 %v5584_v43, %v12337_v5  ;;  %v5811_v57 = vadd.f32 %v5787_v23, %v12338_v51  ;;  %v12344_v59 = vld [vmem:[#allocation35_spill] sm:$0xff]  ;;  %v6342_v5 = vld [vmem:[%s9623_s12 + $0x30] sm:$0xff] (%p8773_p5)  ;;  %v6368_v51 = vld [vmem:[%s9623_s12 + $0x98] sm:$0xff] (%p8773_p5) }
 0x735   : > { %v6072_v60 = vrot.slane %v5918_v20, 4  ;;  %6343 = vst [vmem:[%s11790_s24 + $0x30] sm:$0xff] (%p8773_p5), %v6342_v5 }
 0x736   : > { %8348 = vst.msk [vmem:[%s9623_s12 + $0x1d8] sm:$0xff] %vm1704_vm5, %v6141_v41 }
 0x737   : > { %6369 = vst [vmem:[%s11790_s24 + $0x118] sm:$0xff] (%p8773_p5), %v6368_v51 }
 0x73a   : > { %v5887_v61 = vpop.f32.mrf.mxu2  ;;  %v5990_v4 = vpop.f32.mrf.mxu3 }
 0x73b   : > { %v5919_v56 = vadd.f32 %v5887_v61, %v11614_v30  ;;  %v5587_v32 = vpop.f32.mrf.mxu0  ;;  %v5790_v31 = vpop.f32.mrf.mxu1  ;;  %v6014_v37 = vadd.f32 %v5990_v4, %v5585_v1  ;;  %v6344_v1 = vld [vmem:[%s9623_s12 + $0x38] sm:$0xff] (%p8773_p5) }
 0x73c   : > { %v5588_v8 = vadd.f32 %v5587_v32, %v12339_v14  ;;  %v6332_v32 = vld [vmem:[%s9623_s12 + $0x8] sm:$0xff] (%p8773_p5)  ;;  %v6334_v31 = vld [vmem:[%s9623_s12 + $0x10] sm:$0xff] (%p8773_p5)  ;;  %6345 = vst [vmem:[%s11790_s24 + $0x38] sm:$0xff] (%p8773_p5), %v6344_v1 }
 0x73d   : > { %v6073_v13 = vrot.slane %v5919_v56, 4  ;;  %v6330_v56 = vld [vmem:[%s9623_s12] sm:$0xff] (%p8773_p5)  ;;  %6333 = vst [vmem:[%s11790_s24 + $0x8] sm:$0xff] (%p8773_p5), %v6332_v32  ;;  %v6372_v14 = vld [vmem:[%s9623_s12 + $0xa8] sm:$0xff] (%p8773_p5) }
 0x73e   : > { %6331 = vst [vmem:[%s11790_s24] sm:$0xff] (%p8773_p5), %v6330_v56 }
 0x73f   : > { %v6074_v50 = vsel %vm3132_vm6, %v6072_v60, %v6073_v13  ;;  %v6336_v60 = vld [vmem:[%s9623_s12 + $0x18] sm:$0xff] (%p8773_p5)  ;;  %6335 = vst [vmem:[%s11790_s24 + $0x10] sm:$0xff] (%p8773_p5), %v6334_v31 }
 0x740   : > { %v6110_v16 = vadd.f32 %v6074_v50, %v5810_v26  ;;  %v6340_v26 = vld [vmem:[%s9623_s12 + $0x28] sm:$0xff] (%p8773_p5)  ;;  %6337 = vst [vmem:[%s11790_s24 + $0x18] sm:$0xff] (%p8773_p5), %v6336_v60  ;;  %v6346_v50 = vld [vmem:[%s9623_s12 + $0x40] sm:$0xff] (%p8773_p5) }
 0x741   : > { %6341 = vst [vmem:[%s11790_s24 + $0x28] sm:$0xff] (%p8773_p5), %v6340_v26 }
 0x742   : > { %v6126_v47 = vadd.f32 %v6110_v16, %v6014_v37  ;;  %v5890_v12 = vpop.f32.mrf.mxu2  ;;  %v5993_v44 = vpop.f32.mrf.mxu3  ;;  %v6348_v37 = vld [vmem:[%s9623_s12 + $0x48] sm:$0xff] (%p8773_p5)  ;;  %v6350_v16 = vld [vmem:[%s9623_s12 + $0x50] sm:$0xff] (%p8773_p5)  ;;  %6347 = vst [vmem:[%s11790_s24 + $0x40] sm:$0xff] (%p8773_p5), %v6346_v50 }
 0x743   : > { %v5920_v38 = vadd.f32 %v5890_v12, %v11625_v34  ;;  %v5589_v30 = vpop.f32.mrf.mxu0  ;;  %v5791_v27 = vpop.f32.mrf.mxu1  ;;  %v6015_v52 = vadd.f32 %v5993_v44, %v5588_v8  ;;  %6349 = vst [vmem:[%s11790_s24 + $0x48] sm:$0xff] (%p8773_p5), %v6348_v37  ;;  %v6354_v12 = vld [vmem:[%s9623_s12 + $0x60] sm:$0xff] (%p8773_p5)  ;;  %v6356_v44 = vld [vmem:[%s9623_s12 + $0x68] sm:$0xff] (%p8773_p5)  ;;  %v6374_v8 = vld [vmem:[%s9623_s12 + $0xb0] sm:$0xff] (%p8773_p5) }
 0x744   : > { %v6142_v49 = vmax.f32 %v6126_v47, 0.0  ;;  %v5812_v45 = vadd.f32 %v5791_v27, %v12341_v2  ;;  %v6352_v47 = vld [vmem:[%s9623_s12 + $0x58] sm:$0xff] (%p8773_p5)  ;;  %6351 = vst [vmem:[%s11790_s24 + $0x50] sm:$0xff] (%p8773_p5), %v6350_v16  ;;  %v6362_v27 = vld [vmem:[%s9623_s12 + $0x80] sm:$0xff] (%p8773_p5) }
 0x745   : > { %v6075_v18 = vrot.slane %v5920_v38, 4  ;;  %6353 = vst [vmem:[%s11790_s24 + $0x58] sm:$0xff] (%p8773_p5), %v6352_v47  ;;  %v6358_v38 = vld [vmem:[%s9623_s12 + $0x70] sm:$0xff] (%p8773_p5)  ;;  %v6360_v30 = vld [vmem:[%s9623_s12 + $0x78] sm:$0xff] (%p8773_p5)  ;;  %v6410_v2 = vld [vmem:[%s9623_s12 + $0x140] sm:$0xff] (%p8773_p5) }
 0x746   : > { %8349 = vst.msk [vmem:[%s9623_s12 + $0x1e0] sm:$0xff] %vm1704_vm5, %v6142_v49  ;;  %v6364_v49 = vld [vmem:[%s9623_s12 + $0x88] sm:$0xff] (%p8773_p5) }
 0x747   : > { %v6076_v7 = vsel %vm3132_vm6, %v6073_v13, %v6075_v18  ;;  %v6338_v13 = vld [vmem:[%s9623_s12 + $0x20] sm:$0xff] (%p8773_p5)  ;;  %6355 = vst [vmem:[%s11790_s24 + $0x60] sm:$0xff] (%p8773_p5), %v6354_v12  ;;  %v6366_v18 = vld [vmem:[%s9623_s12 + $0x90] sm:$0xff] (%p8773_p5) }
 0x748   : > { %v6111_v55 = vadd.f32 %v6076_v7, %v5811_v57  ;;  %6339 = vst [vmem:[%s11790_s24 + $0x20] sm:$0xff] (%p8773_p5), %v6338_v13  ;;  %v6370_v57 = vld [vmem:[%s9623_s12 + $0xa0] sm:$0xff] (%p8773_p5)  ;;  %v6376_v7 = vld [vmem:[%s9623_s12 + $0xb8] sm:$0xff] (%p8773_p5) }
 0x749   : > { %6357 = vst [vmem:[%s11790_s24 + $0x68] sm:$0xff] (%p8773_p5), %v6356_v44 }
 0x74a   : > { %v6127_v35 = vadd.f32 %v6111_v55, %v6015_v52  ;;  %v5892_v0 = vpop.f32.mrf.mxu2  ;;  %v5995_v19 = vpop.f32.mrf.mxu3  ;;  %6359 = vst [vmem:[%s11790_s24 + $0x70] sm:$0xff] (%p8773_p5), %v6358_v38  ;;  %v6378_v52 = vld [vmem:[%s9623_s12 + $0xc0] sm:$0xff] (%p8773_p5)  ;;  %v6380_v55 = vld [vmem:[%s9623_s12 + $0xc8] sm:$0xff] (%p8773_p5) }
 0x74b   : > { %v5794_v63 = vpop.f32.mrf.mxu1  ;;  %v5921_v36 = vadd.f32 %v5892_v0, %v11632_v3  ;;  %v5591_v48 = vpop.f32.mrf.mxu0  ;;  %6361 = vst [vmem:[%s11790_s24 + $0x78] sm:$0xff] (%p8773_p5), %v6360_v30  ;;  %v6384_v0 = vld [vmem:[%s9623_s12 + $0xd8] sm:$0xff] (%p8773_p5)  ;;  %v6386_v19 = vld [vmem:[%s9623_s12 + $0xe0] sm:$0xff] (%p8773_p5) }
 0x74c   : > { %v6143_v34 = vmax.f32 %v6127_v35, 0.0  ;;  %v5592_v9 = vadd.f32 %v5591_v48, %v12342_v11  ;;  %v5813_v22 = vadd.f32 %v5794_v63, %v12344_v59  ;;  %6363 = vst [vmem:[%s11790_s24 + $0x100] sm:$0xff] (%p8773_p5), %v6362_v27  ;;  %v6382_v35 = vld [vmem:[%s9623_s12 + $0xd0] sm:$0xff] (%p8773_p5)  ;;  %v6388_v63 = vld [vmem:[%s9623_s12 + $0xe8] sm:$0xff] (%p8773_p5)  ;;  %v6394_v48 = vld [vmem:[%s9623_s12 + $0x100] sm:$0xff] (%p8773_p5) }
 0x74d   : > { %v6077_v53 = vrot.slane %v5921_v36, 4  ;;  %6365 = vst [vmem:[%s11790_s24 + $0x108] sm:$0xff] (%p8773_p5), %v6364_v49  ;;  %v6392_v36 = vld [vmem:[%s9623_s12 + $0xf8] sm:$0xff] (%p8773_p5)  ;;  %v6414_v11 = vld [vmem:[%s9623_s12 + $0x150] sm:$0xff] (%p8773_p5) }
 0x74e   : > { %8350 = vst.msk [vmem:[%s9623_s12 + $0x1e8] sm:$0xff] %vm1704_vm5, %v6143_v34  ;;  %v6390_v34 = vld [vmem:[%s9623_s12 + $0xf0] sm:$0xff] (%p8773_p5)  ;;  %v6440_v59 = vld [vmem:[%s9623_s12 + $0x1b8] sm:$0xff] (%p8773_p5) }
 0x74f   : > { %6367 = vst [vmem:[%s11790_s24 + $0x110] sm:$0xff] (%p8773_p5), %v6366_v18 }
 0x750   : > { %6371 = vst [vmem:[%s11790_s24 + $0x120] sm:$0xff] (%p8773_p5), %v6370_v57 }
 0x751   : > { %6373 = vst [vmem:[%s11790_s24 + $0x128] sm:$0xff] (%p8773_p5), %v6372_v14 }
 0x752   : > { %v5895_v28 = vpop.f32.mrf.mxu2  ;;  %v5997_v10 = vpop.f32.mrf.mxu3  ;;  %6375 = vst [vmem:[%s11790_s24 + $0x130] sm:$0xff] (%p8773_p5), %v6374_v8 }
 0x753   : > { %v5922_v62 = vadd.f32 %v5895_v28, %v12340_v54  ;;  %v5796_v6 = vpop.f32.mrf.mxu1  ;;  %v6016_v25 = vadd.f32 %v5997_v10, %v5592_v9  ;;  %v5593_v40 = vpop.f32.mrf.mxu0  ;;  %6377 = vst [vmem:[%s11790_s24 + $0x138] sm:$0xff] (%p8773_p5), %v6376_v7  ;;  %v6396_v28 = vld [vmem:[%s9623_s12 + $0x108] sm:$0xff] (%p8773_p5)  ;;  %v6398_v54 = vld [vmem:[%s9623_s12 + $0x110] sm:$0xff] (%p8773_p5)  ;;  %v6402_v10 = vld [vmem:[%s9623_s12 + $0x120] sm:$0xff] (%p8773_p5) }
 0x754   : > { %v5594_v43 = vadd.f32 %v5593_v40, %v12345_v21  ;;  %6379 = vst [vmem:[%s11790_s24 + $0x140] sm:$0xff] (%p8773_p5), %v6378_v52  ;;  %v6404_v6 = vld [vmem:[%s9623_s12 + $0x128] sm:$0xff] (%p8773_p5)  ;;  %v6416_v9 = vld [vmem:[%s9623_s12 + $0x158] sm:$0xff] (%p8773_p5) }
 0x755   : > { %v6078_v58 = vrot.slane %v5922_v62, 4  ;;  %6381 = vst [vmem:[%s11790_s24 + $0x148] sm:$0xff] (%p8773_p5), %v6380_v55  ;;  %v6400_v62 = vld [vmem:[%s9623_s12 + $0x118] sm:$0xff] (%p8773_p5)  ;;  %v6428_v40 = vld [vmem:[%s9623_s12 + $0x188] sm:$0xff] (%p8773_p5) }
 0x756   : > { %6383 = vst [vmem:[%s11790_s24 + $0x150] sm:$0xff] (%p8773_p5), %v6382_v35  ;;  %v6444_v21 = vld [vmem:[%s9623_s12 + $0x1c8] sm:$0xff] (%p8773_p5) }
 0x757   : > { %v6079_v33 = vsel %vm3132_vm6, %v6077_v53, %v6078_v58  ;;  %6385 = vst [vmem:[%s11790_s24 + $0x158] sm:$0xff] (%p8773_p5), %v6384_v0  ;;  %v6406_v53 = vld [vmem:[%s9623_s12 + $0x130] sm:$0xff] (%p8773_p5) }
 0x758   : > { %v6112_v46 = vadd.f32 %v6079_v33, %v5812_v45  ;;  %6387 = vst [vmem:[%s11790_s24 + $0x160] sm:$0xff] (%p8773_p5), %v6386_v19  ;;  %v6412_v45 = vld [vmem:[%s9623_s12 + $0x148] sm:$0xff] (%p8773_p5)  ;;  %v6418_v33 = vld [vmem:[%s9623_s12 + $0x160] sm:$0xff] (%p8773_p5) }
 0x759   : > { %6389 = vst [vmem:[%s11790_s24 + $0x168] sm:$0xff] (%p8773_p5), %v6388_v63 }
 0x75a   : > { %v6128_v42 = vadd.f32 %v6112_v46, %v6016_v25  ;;  %v5897_v3 = vpop.f32.mrf.mxu2  ;;  %v5999_v39 = vpop.f32.mrf.mxu3  ;;  %6391 = vst [vmem:[%s11790_s24 + $0x170] sm:$0xff] (%p8773_p5), %v6390_v34  ;;  %v6420_v25 = vld [vmem:[%s9623_s12 + $0x168] sm:$0xff] (%p8773_p5)  ;;  %v6422_v46 = vld [vmem:[%s9623_s12 + $0x170] sm:$0xff] (%p8773_p5) }
 0x75b   : > { %v5923_v24 = vadd.f32 %v5897_v3, %v12343_v29  ;;  %v6017_v41 = vadd.f32 %v5999_v39, %v5594_v43  ;;  %6393 = vst [vmem:[%s11790_s24 + $0x178] sm:$0xff] (%p8773_p5), %v6392_v36  ;;  %v6426_v3 = vld [vmem:[%s9623_s12 + $0x180] sm:$0xff] (%p8773_p5)  ;;  %v6430_v29 = vld [vmem:[%s9623_s12 + $0x190] sm:$0xff] (%p8773_p5) }
 0x75c   : > { %v6144_v17 = vmax.f32 %v6128_v42, 0.0  ;;  %6395 = vst [vmem:[%s11790_s24 + $0x200] sm:$0xff] (%p8773_p5), %v6394_v48  ;;  %v6424_v42 = vld [vmem:[%s9623_s12 + $0x178] sm:$0xff] (%p8773_p5)  ;;  %v6438_v39 = vld [vmem:[%s9623_s12 + $0x1b0] sm:$0xff] (%p8773_p5) }
 0x75d   : > { %v6080_v15 = vrot.slane %v5923_v24, 4  ;;  %6397 = vst [vmem:[%s11790_s24 + $0x208] sm:$0xff] (%p8773_p5), %v6396_v28  ;;  %v6432_v24 = vld [vmem:[%s9623_s12 + $0x198] sm:$0xff] (%p8773_p5)  ;;  %v6446_v43 = vld [vmem:[%s9623_s12 + $0x1d0] sm:$0xff] (%p8773_p5) }
 0x75e   : > { %8351 = vst.msk [vmem:[%s9623_s12 + $0x1f0] sm:$0xff] %vm1704_vm5, %v6144_v17  ;;  %v6434_v17 = vld [vmem:[%s9623_s12 + $0x1a0] sm:$0xff] (%p8773_p5) }
 0x75f   : > { %v6081_v23 = vsel %vm3132_vm6, %v6078_v58, %v6080_v15  ;;  %6399 = vst [vmem:[%s11790_s24 + $0x210] sm:$0xff] (%p8773_p5), %v6398_v54  ;;  %v6408_v58 = vld [vmem:[%s9623_s12 + $0x138] sm:$0xff] (%p8773_p5)  ;;  %v6436_v15 = vld [vmem:[%s9623_s12 + $0x1a8] sm:$0xff] (%p8773_p5) }
 0x760   : > { %v6113_v20 = vadd.f32 %v6081_v23, %v5813_v22  ;;  %6401 = vst [vmem:[%s11790_s24 + $0x218] sm:$0xff] (%p8773_p5), %v6400_v62  ;;  %v6442_v22 = vld [vmem:[%s9623_s12 + $0x1c0] sm:$0xff] (%p8773_p5)  ;;  %v6448_v23 = vld [vmem:[%s9623_s12 + $0x1d8] sm:$0xff] (%p8773_p5) }
 0x761   : > { %6403 = vst [vmem:[%s11790_s24 + $0x220] sm:$0xff] (%p8773_p5), %v6402_v10 }
 0x762   : > { %v6129_v61 = vadd.f32 %v6113_v20, %v6017_v41  ;;  %6169 = sbr.rel (!%p8773_p5) target bundleno = 1918 (0x77e), region = 36  ;;  %6405 = vst [vmem:[%s11790_s24 + $0x228] sm:$0xff] (%p8773_p5), %v6404_v6  ;;  %v6450_v41 = vld [vmem:[%s9623_s12 + $0x1e0] sm:$0xff] (%p8773_p5)  ;;  %v6452_v20 = vld [vmem:[%s9623_s12 + $0x1e8] sm:$0xff] (%p8773_p5) }
 0x763   : > { %6407 = vst [vmem:[%s11790_s24 + $0x230] sm:$0xff] (%p8773_p5), %v6406_v53 }
 0x764   : > { %v6145_v4 = vmax.f32 %v6129_v61, 0.0  ;;  %6409 = vst [vmem:[%s11790_s24 + $0x238] sm:$0xff] (%p8773_p5), %v6408_v58 }
 0x765   : > { %6411 = vst [vmem:[%s11790_s24 + $0x240] sm:$0xff] (%p8773_p5), %v6410_v2  ;;  %v6454_v61 = vld [vmem:[%s9623_s12 + $0x1f0] sm:$0xff] (%p8773_p5) }
 0x766   : > { %8352 = vst.msk [vmem:[%s9623_s12 + $0x1f8] sm:$0xff] %vm1704_vm5, %v6145_v4 }
 0x767   : > { %6413 = vst [vmem:[%s11790_s24 + $0x248] sm:$0xff] %v6412_v45 }
 0x768   : > { %6415 = vst [vmem:[%s11790_s24 + $0x250] sm:$0xff] %v6414_v11 }
 0x769   : > { %6417 = vst [vmem:[%s11790_s24 + $0x258] sm:$0xff] %v6416_v9 }
 0x76a   : > { %6419 = vst [vmem:[%s11790_s24 + $0x260] sm:$0xff] %v6418_v33 }
 0x76b   : > { %6421 = vst [vmem:[%s11790_s24 + $0x268] sm:$0xff] %v6420_v25 }
 0x76c   : > { %6423 = vst [vmem:[%s11790_s24 + $0x270] sm:$0xff] %v6422_v46 }
 0x76d   : > { %6425 = vst [vmem:[%s11790_s24 + $0x278] sm:$0xff] %v6424_v42  ;;  %v6456_v4 = vld [vmem:[%s9623_s12 + $0x1f8] sm:$0xff] }
 0x76e   : > { %6427 = vst [vmem:[%s11790_s24 + $0x300] sm:$0xff] %v6426_v3 }
 0x76f   : > { %6429 = vst [vmem:[%s11790_s24 + $0x308] sm:$0xff] %v6428_v40 }
 0x770   : > { %6431 = vst [vmem:[%s11790_s24 + $0x310] sm:$0xff] %v6430_v29 }
 0x771   : > { %6433 = vst [vmem:[%s11790_s24 + $0x318] sm:$0xff] %v6432_v24 }
 0x772   : > { %6435 = vst [vmem:[%s11790_s24 + $0x320] sm:$0xff] %v6434_v17 }
 0x773   : > { %6437 = vst [vmem:[%s11790_s24 + $0x328] sm:$0xff] %v6436_v15 }
 0x774   : > { %6439 = vst [vmem:[%s11790_s24 + $0x330] sm:$0xff] %v6438_v39 }
 0x775   : > { %6441 = vst [vmem:[%s11790_s24 + $0x338] sm:$0xff] %v6440_v59 }
 0x776   : > { %6443 = vst [vmem:[%s11790_s24 + $0x340] sm:$0xff] %v6442_v22 }
 0x777   : > { %6445 = vst [vmem:[%s11790_s24 + $0x348] sm:$0xff] %v6444_v21 }
 0x778   : > { %6447 = vst [vmem:[%s11790_s24 + $0x350] sm:$0xff] %v6446_v43 }
 0x779   : > { %6449 = vst [vmem:[%s11790_s24 + $0x358] sm:$0xff] %v6448_v23 }
 0x77a   : > { %6451 = vst [vmem:[%s11790_s24 + $0x360] sm:$0xff] %v6450_v41 }
 0x77b   : > { %6453 = vst [vmem:[%s11790_s24 + $0x368] sm:$0xff] %v6452_v20 }
 0x77c   : > { %6455 = vst [vmem:[%s11790_s24 + $0x370] sm:$0xff] %v6454_v61 }
 0x77d   : > { %6457 = vst [vmem:[%s11790_s24 + $0x378] sm:$0xff] %v6456_v4 }
 0x77e PF: > { %s13_s18 = sadd.s32 1, %s8705_s18   ;;  %s12346_s12 = smov %s8685_s13 }
 0x77f   : > { %p10_p10 = scmp.ge.s32.totalorder %s13_s18, 6   ;;  %s12347_s13 = smov %s8784_s27 }
 0x780   : > { %s12348_s14 = smov %s8697_s16  ;;  %s12349_s15 = smov %s8701_s17 }
 0x781   : > { %s12350_s16 = smov %s12353_s19  ;;  %s12351_s17 = smov %s12357_s20 }
 0x782   :  { %12 = sbr.rel (!%p10_p10) target bundleno = 4 (0x4), region = 150 }

</bundles_post_ra>
